<compile_context>
chip_gen: v6e
topology: v6e:2x2x1
jax: 0.10.0
libtpu: 0.0.40
codegen_flags: <defaults>
</compile_context>

<pallas_src>
import functools
import math

import jax
import jax.numpy as jnp
from jax import lax
from jax.experimental import pallas as pl
from jax.experimental.pallas import tpu as pltpu

# ---------------------------------------------------------------------------
# Fused sincos constants (FreeBSD/musl __kernel_sindf / __kernel_cosdf style),
# with the module's 1000x output scaling folded into the coefficients.
# ---------------------------------------------------------------------------
_ROW_STRIP = 128                       # rows per inner strip

_TWO_OVER_PI = 0.6366197723675814
_PIO2_HI = 1.5703125                   # exact in f32, 16 trailing zero bits
_PIO2_LO = 4.83826794897e-04           # float32(pi/2 - _PIO2_HI)

_SCALING = 1000.0
_S1K = _SCALING * -0.16666666641626524
_S2K = _SCALING * 0.008333329385889463
_S3K = _SCALING * -0.00019839334836096632
_S4K = _SCALING * 2.718311493989822e-06
_C0K = _SCALING * -0.499999997251031
_C1K = _SCALING * 0.04166662332373906
_C2K = _SCALING * -0.0013886763774609929
_C3K = _SCALING * 2.439044879627741e-05


def _pixel_pos_enc_kernel(px_ref, w_ref, o_ref):
    # px_ref : (TM, 2)       f32  -- raw pixel indices tile
    # w_ref  : (2, HALF)     f32  -- weight with (2*pi / image_size) folded in
    # o_ref  : (TM, 2*HALF)  out dtype -- [ 1000*sin(proj) | 1000*cos(proj) ]
    half = w_ref.shape[1]
    rs = _ROW_STRIP
    n_strips = o_ref.shape[0] // rs    # tm is always a multiple of _ROW_STRIP

    w0 = w_ref[0:1, :]                 # (1, half) -- hoisted out of the loop
    w1 = w_ref[1:2, :]                 # (1, half)

    def strip(s, carry):
        r0 = pl.multiple_of(s * rs, rs)
        px = px_ref[pl.ds(r0, rs), :]                        # (rs, 2)

        # K=2 contraction as two broadcast FMAs on the VPU.
        # TODO(synk): if a bundle dump shows the (rs,1)->(rs,half) lane
        # broadcasts saturating the XLU (v6e), switch to jnp.dot on the idle MXU.
        proj = px[:, 0:1] * w0 + px[:, 1:2] * w1             # (rs, half)

        # --- fused sincos (1000x folded in), |proj| <= ~9 ------------------
        kf = jnp.round(proj * _TWO_OVER_PI)                  # nearest quadrant
        r = proj - kf * _PIO2_HI
        r = r - kf * _PIO2_LO
        z = r * r                                            # shared r^2
        sin_p = r * (_SCALING + z * (_S1K + z * (_S2K + z * (_S3K + z * _S4K))))
        cos_p = _SCALING + z * (_C0K + z * (_C1K + z * (_C2K + z * _C3K)))

        q = kf.astype(jnp.int32) & 3                         # quadrant (mod 4)
        swap = (q == 1) | (q == 3)
        sin_v = jnp.where(swap, cos_p, sin_p)
        cos_v = jnp.where(swap, sin_p, cos_p)
        sin_v = jnp.where((q == 2) | (q == 3), -sin_v, sin_v)
        cos_v = jnp.where((q == 1) | (q == 2), -cos_v, cos_v)

        # Two direct half-width stores (lane-dense when half % 128 == 0);
        # no materialized concat, sin half can retire while cos is computed.
        o_ref[pl.ds(r0, rs), pl.ds(0, half)] = sin_v.astype(o_ref.dtype)
        o_ref[pl.ds(r0, rs), pl.ds(half, half)] = cos_v.astype(o_ref.dtype)
        return carry

    lax.fori_loop(0, n_strips, strip, 0, unroll=True)


def pixel_positional_encoding(pixel_indices, image_size, weight, *,
                              tile_m=1024, out_dtype=jnp.float32):
    """Pallas wrapper.

    pixel_indices: (..., 2) float array (values in [0, image_size])
    image_size   : (2,)     float array
    weight       : (out_features//2, 2) -- same layout as torch nn.Linear.weight
    out_dtype    : output dtype (float32 matches the PyTorch module; bfloat16
                   halves writeback bytes on v5e if the consumer tolerates it)
    returns      : (..., out_features)
    """
    lead_shape = pixel_indices.shape[:-1]
    assert pixel_indices.shape[-1] == 2
    n = 1
    for s in lead_shape:
        n *= int(s)

    px = pixel_indices.reshape(n, 2).astype(jnp.float32)

    # Fold normalization + 2*pi into the weight: (px*s) @ W.T == px @ (diag(s)@W.T)
    img = jnp.asarray(image_size, jnp.float32).reshape(2)
    scale = (2.0 * math.pi) / img                             # (2,)
    w_t = jnp.asarray(weight, jnp.float32).T                  # (2, HALF)
    w_scaled = scale[:, None] * w_t                           # (2, HALF)

    half = w_t.shape[1]
    out_dim = 2 * half
    assert out_dim % 2 == 0
    # Note: half % 128 == 0 keeps the two per-strip stores lane-dense (perf
    # only); other sizes still produce correct (masked) stores.

    rs = _ROW_STRIP
    itemsize_out = jnp.dtype(out_dtype).itemsize

    # Tile-size selection: multiple of the 128-row strip, input block counted
    # as lane-padded to 128 lanes in VMEM (tm*512 B, not tm*8 B), both streams
    # double-buffered, comfortably inside every generation's scoped VMEM.
    bytes_per_row = 2 * (128 * 4) + 2 * (out_dim * itemsize_out)
    vmem_budget = 12 * 1024 * 1024
    max_rows = max(rs, (vmem_budget // bytes_per_row) // rs * rs)
    tm = max(rs, (min(int(tile_m), max_rows) // rs) * rs)
    # v7x megacore: keep at least 2 grid steps so both TensorCores get work.
    if n >= 2 * rs:
        tm = min(tm, pl.cdiv(pl.cdiv(n, 2), rs) * rs)
    # don't make the tile bigger than the (strip-padded) problem
    tm = min(tm, pl.cdiv(n, rs) * rs)

    grid = (pl.cdiv(n, tm),)   # ragged last block is masked by Pallas

    half_pad = pl.cdiv(half, 128) * 128
    footprint = (2 * tm * 128 * 4                  # double-buffered padded input
                 + 2 * tm * out_dim * itemsize_out  # double-buffered output
                 + 2 * 8 * half_pad * 4)            # weight block
    vmem_limit = int(min(32 * 1024 * 1024, max(2 * footprint, 8 * 1024 * 1024)))

    out = pl.pallas_call(
        _pixel_pos_enc_kernel,
        out_shape=jax.ShapeDtypeStruct((n, out_dim), out_dtype),
        grid_spec=pltpu.PrefetchScalarGridSpec(
            num_scalar_prefetch=0,
            grid=grid,
            in_specs=[
                pl.BlockSpec((tm, 2), lambda i: (i, 0)),        # pixel indices
                pl.BlockSpec((2, half), lambda i: (0, 0)),      # folded weight
            ],
            out_specs=pl.BlockSpec((tm, out_dim), lambda i: (i, 0)),
        ),
        compiler_params=pltpu.CompilerParams(
            dimension_semantics=("parallel",),
            vmem_limit_bytes=vmem_limit),
    )(px, w_scaled)

    return out.reshape(*lead_shape, out_dim)


def _reference(pixel_indices, image_size, weight):
    # pure-JAX reference mirroring the PyTorch forward
    positions = pixel_indices / image_size
    positions = positions * 2.0 * math.pi
    proj = positions @ weight.T
    return jnp.concatenate([jnp.sin(proj), jnp.cos(proj)], axis=-1) * 1000.0


if __name__ == "__main__":
    key = jax.random.PRNGKey(0)
    k_w, k_px = jax.random.split(key)

    out_features = 256          # HALF = 128 keeps both half-stores lane-dense
    half = out_features // 2
    in_features = 2

    # deterministic init matching nn.Linear(2, half, bias=False):
    # uniform(-1/sqrt(in_features), 1/sqrt(in_features)), shape (half, in_features)
    bound = 1.0 / math.sqrt(in_features)
    weight = jax.random.uniform(
        k_w, (half, in_features), jnp.float32, minval=-bound, maxval=bound)

    # small example: batch=2, 300 pixel indices each (exercises the ragged
    # last grid block and the >=2-step grid), image 16x16
    batch, n_pix = 2, 300
    image_size = jnp.array([16.0, 16.0], jnp.float32)
    pixel_indices = jax.random.uniform(
        k_px, (batch, n_pix, 2), jnp.float32, minval=0.0, maxval=16.0)

    out = pixel_positional_encoding(pixel_indices, image_size, weight)
    out = jax.block_until_ready(out)

    # sanity check against the pure-JAX reference
    ref = _reference(pixel_indices, image_size, weight)
    max_err = float(jnp.max(jnp.abs(out - ref)))
    assert out.shape == (batch, n_pix, out_features)
    assert max_err < 1e-1, f"max abs error too large: {max_err}"

    # TODO(synk): the PyTorch module asserts positions are in [0, 1]; no
    # in-kernel runtime assert is emitted here (the fused sincos relies on that
    # bound only for accuracy, and invalid ragged-tail lanes cannot contaminate
    # valid lanes since all ops are elementwise).

    print("KERNEL_OK")
</pallas_src>

<mosaic_0001>
module attributes {stable_mosaic.version = 11 : i64} {
  func.func @_pixel_pos_enc_kernel(%arg0: i32, %arg1: memref<384x2xf32, #tpu.memory_space<vmem>>, %arg2: memref<2x128xf32, #tpu.memory_space<vmem>>, %arg3: memref<384x256xf32, #tpu.memory_space<vmem>>) attributes {dimension_semantics = [#tpu.dimension_semantics<parallel>], iteration_bounds = array<i64: 2>, scalar_prefetch = 0 : i64, scratch_operands = 0 : i64, tpu.core_type = #tpu.core_type<tc>, window_params = [{transform_indices = @transform_0, window_bounds = array<i64: 384, 2>}, {pipeline_mode = #tpu.pipeline_mode<synchronous>, transform_indices = @transform_1, window_bounds = array<i64: 2, 128>}, {transform_indices = @transform_2, window_bounds = array<i64: 384, 256>}]} {
    %c0 = arith.constant 0 : index
    %c0_0 = arith.constant 0 : index
    %0 = vector.load %arg2[%c0, %c0_0] : memref<2x128xf32, #tpu.memory_space<vmem>>, vector<1x128xf32>
    %c1 = arith.constant 1 : index
    %c0_1 = arith.constant 0 : index
    %1 = vector.load %arg2[%c1, %c0_1] : memref<2x128xf32, #tpu.memory_space<vmem>>, vector<1x128xf32>
    %c0_i32 = arith.constant 0 : i32
    %c128_i32 = arith.constant 128 : i32
    %2 = arith.muli %c0_i32, %c128_i32 : i32
    %3 = tpu.assume_multiple %2, 128 : i32
    %4 = arith.index_cast %3 : i32 to index
    %c0_2 = arith.constant 0 : index
    %5 = vector.load %arg1[%4, %c0_2] : memref<384x2xf32, #tpu.memory_space<vmem>>, vector<128x2xf32>
    %6 = vector.extract_strided_slice %5 {offsets = [0, 0], sizes = [128, 1], strides = [1, 1]} : vector<128x2xf32> to vector<128x1xf32>
    %7 = vector.broadcast %6 : vector<128x1xf32> to vector<128x128xf32>
    %8 = vector.broadcast %0 : vector<1x128xf32> to vector<128x128xf32>
    %9 = arith.mulf %7, %8 : vector<128x128xf32>
    %10 = vector.extract_strided_slice %5 {offsets = [0, 1], sizes = [128, 1], strides = [1, 1]} : vector<128x2xf32> to vector<128x1xf32>
    %11 = vector.broadcast %10 : vector<128x1xf32> to vector<128x128xf32>
    %12 = vector.broadcast %1 : vector<1x128xf32> to vector<128x128xf32>
    %13 = arith.mulf %11, %12 : vector<128x128xf32>
    %14 = arith.addf %9, %13 : vector<128x128xf32>
    %cst = arith.constant 0.636619746 : f32
    %15 = vector.broadcast %cst : f32 to vector<128x128xf32>
    %16 = arith.mulf %14, %15 : vector<128x128xf32>
    %17 = math.roundeven %16 : vector<128x128xf32>
    %cst_3 = arith.constant 1.5703125 : f32
    %18 = vector.broadcast %cst_3 : f32 to vector<128x128xf32>
    %19 = arith.mulf %17, %18 : vector<128x128xf32>
    %20 = arith.subf %14, %19 : vector<128x128xf32>
    %cst_4 = arith.constant 4.83826792E-4 : f32
    %21 = vector.broadcast %cst_4 : f32 to vector<128x128xf32>
    %22 = arith.mulf %17, %21 : vector<128x128xf32>
    %23 = arith.subf %20, %22 : vector<128x128xf32>
    %24 = arith.mulf %23, %23 : vector<128x128xf32>
    %cst_5 = arith.constant 0.0027183115 : f32
    %25 = vector.broadcast %cst_5 : f32 to vector<128x128xf32>
    %26 = arith.mulf %24, %25 : vector<128x128xf32>
    %cst_6 = arith.constant -0.198393345 : f32
    %27 = vector.broadcast %cst_6 : f32 to vector<128x128xf32>
    %28 = arith.addf %27, %26 : vector<128x128xf32>
    %29 = arith.mulf %24, %28 : vector<128x128xf32>
    %cst_7 = arith.constant 8.3333292 : f32
    %30 = vector.broadcast %cst_7 : f32 to vector<128x128xf32>
    %31 = arith.addf %30, %29 : vector<128x128xf32>
    %32 = arith.mulf %24, %31 : vector<128x128xf32>
    %cst_8 = arith.constant -166.666672 : f32
    %33 = vector.broadcast %cst_8 : f32 to vector<128x128xf32>
    %34 = arith.addf %33, %32 : vector<128x128xf32>
    %35 = arith.mulf %24, %34 : vector<128x128xf32>
    %cst_9 = arith.constant 1.000000e+03 : f32
    %36 = vector.broadcast %cst_9 : f32 to vector<128x128xf32>
    %37 = arith.addf %36, %35 : vector<128x128xf32>
    %38 = arith.mulf %23, %37 : vector<128x128xf32>
    %cst_10 = arith.constant 0.0243904479 : f32
    %39 = vector.broadcast %cst_10 : f32 to vector<128x128xf32>
    %40 = arith.mulf %24, %39 : vector<128x128xf32>
    %cst_11 = arith.constant -1.3886764 : f32
    %41 = vector.broadcast %cst_11 : f32 to vector<128x128xf32>
    %42 = arith.addf %41, %40 : vector<128x128xf32>
    %43 = arith.mulf %24, %42 : vector<128x128xf32>
    %cst_12 = arith.constant 41.6666222 : f32
    %44 = vector.broadcast %cst_12 : f32 to vector<128x128xf32>
    %45 = arith.addf %44, %43 : vector<128x128xf32>
    %46 = arith.mulf %24, %45 : vector<128x128xf32>
    %cst_13 = arith.constant -5.000000e+02 : f32
    %47 = vector.broadcast %cst_13 : f32 to vector<128x128xf32>
    %48 = arith.addf %47, %46 : vector<128x128xf32>
    %49 = arith.mulf %24, %48 : vector<128x128xf32>
    %cst_14 = arith.constant 1.000000e+03 : f32
    %50 = vector.broadcast %cst_14 : f32 to vector<128x128xf32>
    %51 = arith.addf %50, %49 : vector<128x128xf32>
    %52 = arith.fptosi %17 : vector<128x128xf32> to vector<128x128xi32>
    %c3_i32 = arith.constant 3 : i32
    %53 = vector.broadcast %c3_i32 : i32 to vector<128x128xi32>
    %54 = arith.andi %52, %53 : vector<128x128xi32>
    %c1_i32 = arith.constant 1 : i32
    %55 = vector.broadcast %c1_i32 : i32 to vector<128x128xi32>
    %56 = arith.cmpi eq, %54, %55 : vector<128x128xi32>
    %c3_i32_15 = arith.constant 3 : i32
    %57 = vector.broadcast %c3_i32_15 : i32 to vector<128x128xi32>
    %58 = arith.cmpi eq, %54, %57 : vector<128x128xi32>
    %59 = arith.ori %56, %58 : vector<128x128xi1>
    %60 = arith.select %59, %51, %38 : vector<128x128xi1>, vector<128x128xf32>
    %61 = arith.select %59, %38, %51 : vector<128x128xi1>, vector<128x128xf32>
    %c2_i32 = arith.constant 2 : i32
    %62 = vector.broadcast %c2_i32 : i32 to vector<128x128xi32>
    %63 = arith.cmpi eq, %54, %62 : vector<128x128xi32>
    %c3_i32_16 = arith.constant 3 : i32
    %64 = vector.broadcast %c3_i32_16 : i32 to vector<128x128xi32>
    %65 = arith.cmpi eq, %54, %64 : vector<128x128xi32>
    %66 = arith.ori %63, %65 : vector<128x128xi1>
    %cst_17 = arith.constant 0.000000e+00 : f32
    %67 = vector.broadcast %cst_17 : f32 to vector<128x128xf32>
    %68 = arith.subf %67, %60 : vector<128x128xf32>
    %69 = arith.select %66, %68, %60 : vector<128x128xi1>, vector<128x128xf32>
    %c1_i32_18 = arith.constant 1 : i32
    %70 = vector.broadcast %c1_i32_18 : i32 to vector<128x128xi32>
    %71 = arith.cmpi eq, %54, %70 : vector<128x128xi32>
    %c2_i32_19 = arith.constant 2 : i32
    %72 = vector.broadcast %c2_i32_19 : i32 to vector<128x128xi32>
    %73 = arith.cmpi eq, %54, %72 : vector<128x128xi32>
    %74 = arith.ori %71, %73 : vector<128x128xi1>
    %cst_20 = arith.constant 0.000000e+00 : f32
    %75 = vector.broadcast %cst_20 : f32 to vector<128x128xf32>
    %76 = arith.subf %75, %61 : vector<128x128xf32>
    %77 = arith.select %74, %76, %61 : vector<128x128xi1>, vector<128x128xf32>
    %78 = arith.index_cast %3 : i32 to index
    %c0_21 = arith.constant 0 : index
    %79 = vector.load %arg3[%78, %c0_21] : memref<384x256xf32, #tpu.memory_space<vmem>>, vector<128x128xf32>
    tpu.vector_store %arg3[%78, %c0_21], %69 {strides = array<i32>} : memref<384x256xf32, #tpu.memory_space<vmem>>, vector<128x128xf32>,
    %80 = arith.index_cast %3 : i32 to index
    %c128 = arith.constant 128 : index
    %81 = vector.load %arg3[%80, %c128] : memref<384x256xf32, #tpu.memory_space<vmem>>, vector<128x128xf32>
    tpu.vector_store %arg3[%80, %c128], %77 {strides = array<i32>} : memref<384x256xf32, #tpu.memory_space<vmem>>, vector<128x128xf32>,
    %c1_i32_22 = arith.constant 1 : i32
    %c128_i32_23 = arith.constant 128 : i32
    %82 = arith.muli %c1_i32_22, %c128_i32_23 : i32
    %83 = tpu.assume_multiple %82, 128 : i32
    %84 = arith.index_cast %83 : i32 to index
    %c0_24 = arith.constant 0 : index
    %85 = vector.load %arg1[%84, %c0_24] : memref<384x2xf32, #tpu.memory_space<vmem>>, vector<128x2xf32>
    %86 = vector.extract_strided_slice %85 {offsets = [0, 0], sizes = [128, 1], strides = [1, 1]} : vector<128x2xf32> to vector<128x1xf32>
    %87 = vector.broadcast %86 : vector<128x1xf32> to vector<128x128xf32>
    %88 = vector.broadcast %0 : vector<1x128xf32> to vector<128x128xf32>
    %89 = arith.mulf %87, %88 : vector<128x128xf32>
    %90 = vector.extract_strided_slice %85 {offsets = [0, 1], sizes = [128, 1], strides = [1, 1]} : vector<128x2xf32> to vector<128x1xf32>
    %91 = vector.broadcast %90 : vector<128x1xf32> to vector<128x128xf32>
    %92 = vector.broadcast %1 : vector<1x128xf32> to vector<128x128xf32>
    %93 = arith.mulf %91, %92 : vector<128x128xf32>
    %94 = arith.addf %89, %93 : vector<128x128xf32>
    %cst_25 = arith.constant 0.636619746 : f32
    %95 = vector.broadcast %cst_25 : f32 to vector<128x128xf32>
    %96 = arith.mulf %94, %95 : vector<128x128xf32>
    %97 = math.roundeven %96 : vector<128x128xf32>
    %cst_26 = arith.constant 1.5703125 : f32
    %98 = vector.broadcast %cst_26 : f32 to vector<128x128xf32>
    %99 = arith.mulf %97, %98 : vector<128x128xf32>
    %100 = arith.subf %94, %99 : vector<128x128xf32>
    %cst_27 = arith.constant 4.83826792E-4 : f32
    %101 = vector.broadcast %cst_27 : f32 to vector<128x128xf32>
    %102 = arith.mulf %97, %101 : vector<128x128xf32>
    %103 = arith.subf %100, %102 : vector<128x128xf32>
    %104 = arith.mulf %103, %103 : vector<128x128xf32>
    %cst_28 = arith.constant 0.0027183115 : f32
    %105 = vector.broadcast %cst_28 : f32 to vector<128x128xf32>
    %106 = arith.mulf %104, %105 : vector<128x128xf32>
    %cst_29 = arith.constant -0.198393345 : f32
    %107 = vector.broadcast %cst_29 : f32 to vector<128x128xf32>
    %108 = arith.addf %107, %106 : vector<128x128xf32>
    %109 = arith.mulf %104, %108 : vector<128x128xf32>
    %cst_30 = arith.constant 8.3333292 : f32
    %110 = vector.broadcast %cst_30 : f32 to vector<128x128xf32>
    %111 = arith.addf %110, %109 : vector<128x128xf32>
    %112 = arith.mulf %104, %111 : vector<128x128xf32>
    %cst_31 = arith.constant -166.666672 : f32
    %113 = vector.broadcast %cst_31 : f32 to vector<128x128xf32>
    %114 = arith.addf %113, %112 : vector<128x128xf32>
    %115 = arith.mulf %104, %114 : vector<128x128xf32>
    %cst_32 = arith.constant 1.000000e+03 : f32
    %116 = vector.broadcast %cst_32 : f32 to vector<128x128xf32>
    %117 = arith.addf %116, %115 : vector<128x128xf32>
    %118 = arith.mulf %103, %117 : vector<128x128xf32>
    %cst_33 = arith.constant 0.0243904479 : f32
    %119 = vector.broadcast %cst_33 : f32 to vector<128x128xf32>
    %120 = arith.mulf %104, %119 : vector<128x128xf32>
    %cst_34 = arith.constant -1.3886764 : f32
    %121 = vector.broadcast %cst_34 : f32 to vector<128x128xf32>
    %122 = arith.addf %121, %120 : vector<128x128xf32>
    %123 = arith.mulf %104, %122 : vector<128x128xf32>
    %cst_35 = arith.constant 41.6666222 : f32
    %124 = vector.broadcast %cst_35 : f32 to vector<128x128xf32>
    %125 = arith.addf %124, %123 : vector<128x128xf32>
    %126 = arith.mulf %104, %125 : vector<128x128xf32>
    %cst_36 = arith.constant -5.000000e+02 : f32
    %127 = vector.broadcast %cst_36 : f32 to vector<128x128xf32>
    %128 = arith.addf %127, %126 : vector<128x128xf32>
    %129 = arith.mulf %104, %128 : vector<128x128xf32>
    %cst_37 = arith.constant 1.000000e+03 : f32
    %130 = vector.broadcast %cst_37 : f32 to vector<128x128xf32>
    %131 = arith.addf %130, %129 : vector<128x128xf32>
    %132 = arith.fptosi %97 : vector<128x128xf32> to vector<128x128xi32>
    %c3_i32_38 = arith.constant 3 : i32
    %133 = vector.broadcast %c3_i32_38 : i32 to vector<128x128xi32>
    %134 = arith.andi %132, %133 : vector<128x128xi32>
    %c1_i32_39 = arith.constant 1 : i32
    %135 = vector.broadcast %c1_i32_39 : i32 to vector<128x128xi32>
    %136 = arith.cmpi eq, %134, %135 : vector<128x128xi32>
    %c3_i32_40 = arith.constant 3 : i32
    %137 = vector.broadcast %c3_i32_40 : i32 to vector<128x128xi32>
    %138 = arith.cmpi eq, %134, %137 : vector<128x128xi32>
    %139 = arith.ori %136, %138 : vector<128x128xi1>
    %140 = arith.select %139, %131, %118 : vector<128x128xi1>, vector<128x128xf32>
    %141 = arith.select %139, %118, %131 : vector<128x128xi1>, vector<128x128xf32>
    %c2_i32_41 = arith.constant 2 : i32
    %142 = vector.broadcast %c2_i32_41 : i32 to vector<128x128xi32>
    %143 = arith.cmpi eq, %134, %142 : vector<128x128xi32>
    %c3_i32_42 = arith.constant 3 : i32
    %144 = vector.broadcast %c3_i32_42 : i32 to vector<128x128xi32>
    %145 = arith.cmpi eq, %134, %144 : vector<128x128xi32>
    %146 = arith.ori %143, %145 : vector<128x128xi1>
    %cst_43 = arith.constant 0.000000e+00 : f32
    %147 = vector.broadcast %cst_43 : f32 to vector<128x128xf32>
    %148 = arith.subf %147, %140 : vector<128x128xf32>
    %149 = arith.select %146, %148, %140 : vector<128x128xi1>, vector<128x128xf32>
    %c1_i32_44 = arith.constant 1 : i32
    %150 = vector.broadcast %c1_i32_44 : i32 to vector<128x128xi32>
    %151 = arith.cmpi eq, %134, %150 : vector<128x128xi32>
    %c2_i32_45 = arith.constant 2 : i32
    %152 = vector.broadcast %c2_i32_45 : i32 to vector<128x128xi32>
    %153 = arith.cmpi eq, %134, %152 : vector<128x128xi32>
    %154 = arith.ori %151, %153 : vector<128x128xi1>
    %cst_46 = arith.constant 0.000000e+00 : f32
    %155 = vector.broadcast %cst_46 : f32 to vector<128x128xf32>
    %156 = arith.subf %155, %141 : vector<128x128xf32>
    %157 = arith.select %154, %156, %141 : vector<128x128xi1>, vector<128x128xf32>
    %158 = arith.index_cast %83 : i32 to index
    %c0_47 = arith.constant 0 : index
    %159 = vector.load %arg3[%158, %c0_47] : memref<384x256xf32, #tpu.memory_space<vmem>>, vector<128x128xf32>
    tpu.vector_store %arg3[%158, %c0_47], %149 {strides = array<i32>} : memref<384x256xf32, #tpu.memory_space<vmem>>, vector<128x128xf32>,
    %160 = arith.index_cast %83 : i32 to index
    %c128_48 = arith.constant 128 : index
    %161 = vector.load %arg3[%160, %c128_48] : memref<384x256xf32, #tpu.memory_space<vmem>>, vector<128x128xf32>
    tpu.vector_store %arg3[%160, %c128_48], %157 {strides = array<i32>} : memref<384x256xf32, #tpu.memory_space<vmem>>, vector<128x128xf32>,
    %c2_i32_49 = arith.constant 2 : i32
    %c128_i32_50 = arith.constant 128 : i32
    %162 = arith.muli %c2_i32_49, %c128_i32_50 : i32
    %163 = tpu.assume_multiple %162, 128 : i32
    %164 = arith.index_cast %163 : i32 to index
    %c0_51 = arith.constant 0 : index
    %165 = vector.load %arg1[%164, %c0_51] : memref<384x2xf32, #tpu.memory_space<vmem>>, vector<128x2xf32>
    %166 = vector.extract_strided_slice %165 {offsets = [0, 0], sizes = [128, 1], strides = [1, 1]} : vector<128x2xf32> to vector<128x1xf32>
    %167 = vector.broadcast %166 : vector<128x1xf32> to vector<128x128xf32>
    %168 = vector.broadcast %0 : vector<1x128xf32> to vector<128x128xf32>
    %169 = arith.mulf %167, %168 : vector<128x128xf32>
    %170 = vector.extract_strided_slice %165 {offsets = [0, 1], sizes = [128, 1], strides = [1, 1]} : vector<128x2xf32> to vector<128x1xf32>
    %171 = vector.broadcast %170 : vector<128x1xf32> to vector<128x128xf32>
    %172 = vector.broadcast %1 : vector<1x128xf32> to vector<128x128xf32>
    %173 = arith.mulf %171, %172 : vector<128x128xf32>
    %174 = arith.addf %169, %173 : vector<128x128xf32>
    %cst_52 = arith.constant 0.636619746 : f32
    %175 = vector.broadcast %cst_52 : f32 to vector<128x128xf32>
    %176 = arith.mulf %174, %175 : vector<128x128xf32>
    %177 = math.roundeven %176 : vector<128x128xf32>
    %cst_53 = arith.constant 1.5703125 : f32
    %178 = vector.broadcast %cst_53 : f32 to vector<128x128xf32>
    %179 = arith.mulf %177, %178 : vector<128x128xf32>
    %180 = arith.subf %174, %179 : vector<128x128xf32>
    %cst_54 = arith.constant 4.83826792E-4 : f32
    %181 = vector.broadcast %cst_54 : f32 to vector<128x128xf32>
    %182 = arith.mulf %177, %181 : vector<128x128xf32>
    %183 = arith.subf %180, %182 : vector<128x128xf32>
    %184 = arith.mulf %183, %183 : vector<128x128xf32>
    %cst_55 = arith.constant 0.0027183115 : f32
    %185 = vector.broadcast %cst_55 : f32 to vector<128x128xf32>
    %186 = arith.mulf %184, %185 : vector<128x128xf32>
    %cst_56 = arith.constant -0.198393345 : f32
    %187 = vector.broadcast %cst_56 : f32 to vector<128x128xf32>
    %188 = arith.addf %187, %186 : vector<128x128xf32>
    %189 = arith.mulf %184, %188 : vector<128x128xf32>
    %cst_57 = arith.constant 8.3333292 : f32
    %190 = vector.broadcast %cst_57 : f32 to vector<128x128xf32>
    %191 = arith.addf %190, %189 : vector<128x128xf32>
    %192 = arith.mulf %184, %191 : vector<128x128xf32>
    %cst_58 = arith.constant -166.666672 : f32
    %193 = vector.broadcast %cst_58 : f32 to vector<128x128xf32>
    %194 = arith.addf %193, %192 : vector<128x128xf32>
    %195 = arith.mulf %184, %194 : vector<128x128xf32>
    %cst_59 = arith.constant 1.000000e+03 : f32
    %196 = vector.broadcast %cst_59 : f32 to vector<128x128xf32>
    %197 = arith.addf %196, %195 : vector<128x128xf32>
    %198 = arith.mulf %183, %197 : vector<128x128xf32>
    %cst_60 = arith.constant 0.0243904479 : f32
    %199 = vector.broadcast %cst_60 : f32 to vector<128x128xf32>
    %200 = arith.mulf %184, %199 : vector<128x128xf32>
    %cst_61 = arith.constant -1.3886764 : f32
    %201 = vector.broadcast %cst_61 : f32 to vector<128x128xf32>
    %202 = arith.addf %201, %200 : vector<128x128xf32>
    %203 = arith.mulf %184, %202 : vector<128x128xf32>
    %cst_62 = arith.constant 41.6666222 : f32
    %204 = vector.broadcast %cst_62 : f32 to vector<128x128xf32>
    %205 = arith.addf %204, %203 : vector<128x128xf32>
    %206 = arith.mulf %184, %205 : vector<128x128xf32>
    %cst_63 = arith.constant -5.000000e+02 : f32
    %207 = vector.broadcast %cst_63 : f32 to vector<128x128xf32>
    %208 = arith.addf %207, %206 : vector<128x128xf32>
    %209 = arith.mulf %184, %208 : vector<128x128xf32>
    %cst_64 = arith.constant 1.000000e+03 : f32
    %210 = vector.broadcast %cst_64 : f32 to vector<128x128xf32>
    %211 = arith.addf %210, %209 : vector<128x128xf32>
    %212 = arith.fptosi %177 : vector<128x128xf32> to vector<128x128xi32>
    %c3_i32_65 = arith.constant 3 : i32
    %213 = vector.broadcast %c3_i32_65 : i32 to vector<128x128xi32>
    %214 = arith.andi %212, %213 : vector<128x128xi32>
    %c1_i32_66 = arith.constant 1 : i32
    %215 = vector.broadcast %c1_i32_66 : i32 to vector<128x128xi32>
    %216 = arith.cmpi eq, %214, %215 : vector<128x128xi32>
    %c3_i32_67 = arith.constant 3 : i32
    %217 = vector.broadcast %c3_i32_67 : i32 to vector<128x128xi32>
    %218 = arith.cmpi eq, %214, %217 : vector<128x128xi32>
    %219 = arith.ori %216, %218 : vector<128x128xi1>
    %220 = arith.select %219, %211, %198 : vector<128x128xi1>, vector<128x128xf32>
    %221 = arith.select %219, %198, %211 : vector<128x128xi1>, vector<128x128xf32>
    %c2_i32_68 = arith.constant 2 : i32
    %222 = vector.broadcast %c2_i32_68 : i32 to vector<128x128xi32>
    %223 = arith.cmpi eq, %214, %222 : vector<128x128xi32>
    %c3_i32_69 = arith.constant 3 : i32
    %224 = vector.broadcast %c3_i32_69 : i32 to vector<128x128xi32>
    %225 = arith.cmpi eq, %214, %224 : vector<128x128xi32>
    %226 = arith.ori %223, %225 : vector<128x128xi1>
    %cst_70 = arith.constant 0.000000e+00 : f32
    %227 = vector.broadcast %cst_70 : f32 to vector<128x128xf32>
    %228 = arith.subf %227, %220 : vector<128x128xf32>
    %229 = arith.select %226, %228, %220 : vector<128x128xi1>, vector<128x128xf32>
    %c1_i32_71 = arith.constant 1 : i32
    %230 = vector.broadcast %c1_i32_71 : i32 to vector<128x128xi32>
    %231 = arith.cmpi eq, %214, %230 : vector<128x128xi32>
    %c2_i32_72 = arith.constant 2 : i32
    %232 = vector.broadcast %c2_i32_72 : i32 to vector<128x128xi32>
    %233 = arith.cmpi eq, %214, %232 : vector<128x128xi32>
    %234 = arith.ori %231, %233 : vector<128x128xi1>
    %cst_73 = arith.constant 0.000000e+00 : f32
    %235 = vector.broadcast %cst_73 : f32 to vector<128x128xf32>
    %236 = arith.subf %235, %221 : vector<128x128xf32>
    %237 = arith.select %234, %236, %221 : vector<128x128xi1>, vector<128x128xf32>
    %238 = arith.index_cast %163 : i32 to index
    %c0_74 = arith.constant 0 : index
    %239 = vector.load %arg3[%238, %c0_74] : memref<384x256xf32, #tpu.memory_space<vmem>>, vector<128x128xf32>
    tpu.vector_store %arg3[%238, %c0_74], %229 {strides = array<i32>} : memref<384x256xf32, #tpu.memory_space<vmem>>, vector<128x128xf32>,
    %240 = arith.index_cast %163 : i32 to index
    %c128_75 = arith.constant 128 : index
    %241 = vector.load %arg3[%240, %c128_75] : memref<384x256xf32, #tpu.memory_space<vmem>>, vector<128x128xf32>
    tpu.vector_store %arg3[%240, %c128_75], %237 {strides = array<i32>} : memref<384x256xf32, #tpu.memory_space<vmem>>, vector<128x128xf32>,
    %c3_i32_76 = arith.constant 3 : i32
    return
  }
  func.func @transform_0(%arg0: i32) -> (i32, i32) {
    %c0_i32 = arith.constant 0 : i32
    %c0_i32_0 = arith.constant 0 : i32
    return %arg0, %c0_i32 : i32, i32
  }
  func.func @transform_1(%arg0: i32) -> (i32, i32) {
    %c0_i32 = arith.constant 0 : i32
    %c0_i32_0 = arith.constant 0 : i32
    %c0_i32_1 = arith.constant 0 : i32
    return %c0_i32, %c0_i32_0 : i32, i32
  }
  func.func @transform_2(%arg0: i32) -> (i32, i32) {
    %c0_i32 = arith.constant 0 : i32
    %c0_i32_0 = arith.constant 0 : i32
    return %arg0, %c0_i32 : i32, i32
  }
}

</mosaic_0001>

<bundles_post_ra>
// kernel: tpu_custom_call.1
= control target key start
LH: loop header
LB: loop body
LE: loop exit
PB: predicated region body
PF: predicated region fallthrough
CT: control target
= control target key end

     0   :  { %7 = vsyncpa [#allocation3], 0  ;;  %s6378_s0 = inlined_call_operand.vmem [shape: f32[600,2], index: 0, kind: input, shape index: {}]   ;;  %s6379_s1 = inlined_call_operand.vmem [shape: f32[2,128], index: 1, kind: input, shape index: {}]   ;;  %s6380_s2 = inlined_call_operand.hbm [shape: f32[600,256], index: 2, kind: output, shape index: {}]  }
   0x1   :  { %9 = vsyncpa [#allocation3 + $0x1], 0  ;;  %s3605_s9 = smov 0   ;;  %s3607_s10 = smov 0  }
   0x2   :  { %s3609_s11 = smov 0   ;;  %s3611_s12 = smov 0  }
   0x3 LB: > { %s3626_s13 = sadd.s32 4294967295, %s3583_s12   ;;  %s2821_s14 = sadd.s32 4294967294, %s3583_s12   ;;  %s3583_s12 = sphi %s3611_s12, %s6396_s12   ;;  %s3579_s11 = sphi %s3609_s11, %s6395_s11   ;;  %s3575_s10 = sphi %s3607_s10, %s6394_s10   ;;  %s3571_s9 = sphi %s3605_s9, %s6393_s9  }
   0x4   : > { %s3630_s15 = sadd.s32 1, %s3583_s12   ;;  %s69_s16 = sadd.s32 1, %s3579_s11 }
   0x5   : > { %s66_s17 = ssub.s32 %s3583_s12, %s3630_s15  ;;  %p79_p0 = scmp.ne.s32.totalorder %s3579_s11, %s3575_s10 }
   0x6   : > { %p67_p1 = scmp.eq.s32.totalorder %s66_s17, 0  ;;  %p80_p2 = scmp.eq.s32.totalorder %s3626_s13, 1 }
   0x7   : > { %p85_p3 = scmp.ne.s32.totalorder %s3575_s10, %s3571_s9  ;;  %p86_p4 = scmp.eq.s32.totalorder %s2821_s14, 1 }
   0x8   : > { %s3641_s18 = scalar_select %p67_p1, %s3579_s11, %s69_s16  }
   0x9   : > { %p3643_p5 = por %p80_p2, %p79_p0  ;;  %p3647_p6 = por %p86_p4, %p85_p3 }
   0xa   : > { %p2824_p7 = scmp.ge.s32.totalorder %s3583_s12, 1  ;;  %p124_p8 = scmp.lt.s32.totalorder %s3583_s12, 3 }
   0xc   : > { %p125_p9 = pnand %p2824_p7, %p124_p8 }
   0xd   : > { %s3654_s21 = smul.u32 (!%p125_p9), 48, %s3626_s13  ;;  %s147_s3 = sand.u32 (!%p125_p9), 1, %s3575_s10  }
   0xe   : > { %128 = sbr.rel (%p125_p9) target bundleno = 761 (0x2f9), region = 28  ;;  %s6318_s30 = scalar_lea.sflag (!%p125_p9), [#allocation3], %s147_s3 }
   0xf   : > { %p155_p10 = scmp.lt.s32.totalorder (!%p125_p9), %s3654_s21, 74  ;;  %s3948_s4 = smul.u32 (!%p125_p9), 768, %s147_s3 }
  0x11   : > { %s3982_s5 = scalar_lea.vmem (!%p125_p9), [#allocation2], %s3948_s4 }
  0x13   : > { %v3585_v0 = vmov 0   ;;  %s156_s22 = scalar_select %p155_p10, %s3654_s21, 74  ;;  %v3586_v18 = vmov 1   ;;  %v3798_v63 = vld [vmem:[%s6379_s1 + $0x1] ss:$0 sm:$0xff] }
  0x14   : > { %3509 = vset.pattern.permute.xlu1 %v3585_v0  ;;  %3508 = vset.pattern.permute.xlu0 %v3585_v0  ;;  %s2744_s4 = ssub.s32 (%p3643_p5), 75, %s3654_s21 }
  0x15   : > { %s2825_s23 = sshll.u32 %s156_s22, 3  ;;  %p2745_p11 = scmp.lt.s32.totalorder (%p3643_p5), %s2744_s4, 48 }
  0x16   : > { %s3663_s26 = scalar_lea.vmem %s6378_s0, %s2825_s23 }
  0x17   : > { %v174_v1 = vld [vmem:[%s3663_s26 + $0x10] sm:$0xff]  ;;  %v3667_v2 = vld [vmem:[%s3663_s26] sm:$0xff]  ;;  %v3671_v3 = vld [vmem:[%s3663_s26 + $0x18] sm:$0xff] }
  0x18   : > { %200 = vperm.xlu1 %3509, %v174_v1   ;;  %190 = vperm.xlu0 %3508, %v3667_v2   ;;  %v173_v4 = vld [vmem:[%s3663_s26 + $0x8] sm:$0xff]  ;;  %v176_v6 = vld [vmem:[%s3663_s26 + $0x20] sm:$0xff]  ;;  %v3681_v7 = vld [vmem:[%s3663_s26 + $0x38] sm:$0xff] }
  0x19   : > { %v3676_v5 = vld [vmem:[%s3663_s26 + $0x28] sm:$0xff]  ;;  %v178_v8 = vld [vmem:[%s3663_s26 + $0x30] sm:$0xff]  ;;  %v180_v10 = vld [vmem:[%s3663_s26 + $0x40] sm:$0xff] }
  0x1a   : > { %v3686_v9 = vld [vmem:[%s3663_s26 + $0x48] sm:$0xff]  ;;  %v3691_v11 = vld [vmem:[%s3663_s26 + $0x58] sm:$0xff]  ;;  %v182_v12 = vld [vmem:[%s3663_s26 + $0x50] sm:$0xff] }
  0x1b   : > { %v3696_v13 = vld [vmem:[%s3663_s26 + $0x68] sm:$0xff]  ;;  %v184_v14 = vld [vmem:[%s3663_s26 + $0x60] sm:$0xff]  ;;  %v3701_v15 = vld [vmem:[%s3663_s26 + $0x78] sm:$0xff] }
  0x1c   : > { %205 = vperm.xlu1 %3509, %v3671_v3   ;;  %195 = vperm.xlu0 %3508, %v173_v4   ;;  %v186_v16 = vld [vmem:[%s3663_s26 + $0x70] sm:$0xff]  ;;  %v2829_v17 = vld [vmem:[%s3663_s26 + $0x88] sm:$0xff]  ;;  %v2832_v19 = vld [vmem:[%s3663_s26 + $0xa0] sm:$0xff] }
  0x1d   : > { %v2834_v20 = vld [vmem:[%s3663_s26 + $0xb0] sm:$0xff]  ;;  %v2836_v21 = vld [vmem:[%s3663_s26 + $0xc0] sm:$0xff]  ;;  %v3714_v25 = vld [vmem:[%s3663_s26 + $0x108] sm:$0xff] }
  0x1e   : > { %v2838_v22 = vld [vmem:[%s3663_s26 + $0xd0] sm:$0xff]  ;;  %v2840_v23 = vld [vmem:[%s3663_s26 + $0xe0] sm:$0xff]  ;;  %v2831_v31 = vld [vmem:[%s3663_s26 + $0x98] sm:$0xff] }
  0x1f   : > { %v2842_v24 = vld [vmem:[%s3663_s26 + $0xf0] sm:$0xff]  ;;  %v3718_v26 = vld [vmem:[%s3663_s26 + $0x120] sm:$0xff]  ;;  %v2833_v33 = vld [vmem:[%s3663_s26 + $0xa8] sm:$0xff] }
  0x20   : > { %215 = vperm.xlu1 %3509, %v3676_v5   ;;  %210 = vperm.xlu0 %3508, %v176_v6   ;;  %v2828_v27 = vld [vmem:[%s3663_s26 + $0x80] sm:$0xff]  ;;  %v3724_v28 = vld [vmem:[%s3663_s26 + $0x130] sm:$0xff]  ;;  %v2835_v35 = vld [vmem:[%s3663_s26 + $0xb8] sm:$0xff] }
  0x21   : > { %v2830_v29 = vld [vmem:[%s3663_s26 + $0x90] sm:$0xff]  ;;  %v3729_v30 = vld [vmem:[%s3663_s26 + $0x140] sm:$0xff]  ;;  %v2837_v37 = vld [vmem:[%s3663_s26 + $0xc8] sm:$0xff] }
  0x22   : > { %v3734_v32 = vld [vmem:[%s3663_s26 + $0x150] sm:$0xff]  ;;  %v3739_v34 = vld [vmem:[%s3663_s26 + $0x160] sm:$0xff]  ;;  %v2839_v38 = vld [vmem:[%s3663_s26 + $0xd8] sm:$0xff] }
  0x23   : > { %v3744_v36 = vld [vmem:[%s3663_s26 + $0x170] sm:$0xff]  ;;  %v2841_v39 = vld [vmem:[%s3663_s26 + $0xe8] sm:$0xff]  ;;  %v2843_v40 = vld [vmem:[%s3663_s26 + $0xf8] sm:$0xff] }
  0x24   : > { %225 = vperm.xlu1 %3509, %v3681_v7   ;;  %220 = vperm.xlu0 %3508, %v178_v8   ;;  %v2876_v47 = vld [vmem:[%s3663_s26 + $0x100] sm:$0xff]  ;;  %v3772_v50 = vld [vmem:[%s3663_s26 + $0x110] sm:$0xff]  ;;  %v2879_v53 = vld [vmem:[%s3663_s26 + $0x118] sm:$0xff] }
  0x25   : > { %v2881_v56 = vld [vmem:[%s3663_s26 + $0x128] sm:$0xff]  ;;  %v2883_v59 = vld [vmem:[%s3663_s26 + $0x138] sm:$0xff] }
  0x26   : > { %v2885_v62 = vld [vmem:[%s3663_s26 + $0x148] sm:$0xff] }
  0x28   : > { %235 = vperm.xlu1 %3509, %v3686_v9   ;;  %230 = vperm.xlu0 %3508, %v180_v10  }
  0x2c   : > { %245 = vperm.xlu1 %3509, %v3691_v11   ;;  %240 = vperm.xlu0 %3508, %v182_v12  }
  0x30   : > { %255 = vperm.xlu1 %3509, %v3696_v13   ;;  %250 = vperm.xlu0 %3508, %v184_v14  }
  0x34   : > { %265 = vperm.xlu1 %3509, %v3701_v15   ;;  %260 = vperm.xlu0 %3508, %v186_v16  }
  0x38   : > { %3510 = vset.pattern.permute.xlu1 %v3586_v18  ;;  %1055 = vperm.xlu0 %3508, %v2829_v17  }
  0x39   : > { %293 = vperm.xlu1 %3510, %v173_v4  }
  0x3c   : > { %1070 = vperm.xlu0 %3508, %v2832_v19  }
  0x3d   : > { %297 = vperm.xlu1 %3510, %v174_v1   ;;  %v3805_v1 = vld [vmem:[%s6379_s1] ss:$0 sm:$0xff] }
  0x40   : > { %1080 = vperm.xlu0 %3508, %v2834_v20  }
  0x41   : > { %305 = vperm.xlu1 %3510, %v176_v6  }
  0x44   : > { %1090 = vperm.xlu0 %3508, %v2836_v21  }
  0x45   : > { %313 = vperm.xlu1 %3510, %v178_v8  }
  0x48   : > { %1100 = vperm.xlu0 %3508, %v2838_v22  }
  0x49   : > { %321 = vperm.xlu1 %3510, %v180_v10  }
  0x4c   : > { %1110 = vperm.xlu0 %3508, %v2840_v23  }
  0x4d   : > { %329 = vperm.xlu1 %3510, %v182_v12   ;;  %v2889_v12 = vld [vmem:[%s3663_s26 + $0x168] sm:$0xff] }
  0x50   : > { %1120 = vperm.xlu0 %3508, %v2842_v24  }
  0x51   : > { %337 = vperm.xlu1 %3510, %v184_v14  }
  0x54   : > { %1907 = vperm.xlu0 %3508, %v3714_v25  }
  0x55   : > { %345 = vperm.xlu1 %3510, %v186_v16  }
  0x58   : > { %1922 = vperm.xlu0 %3508, %v3718_v26  }
  0x59   : > { %3511 = vset.pattern.permute.xlu1 %v3585_v0 }
  0x5a   : > { %1050 = vperm.xlu1 %3511, %v2828_v27  }
  0x5c   : > { %1932 = vperm.xlu0 %3508, %v3724_v28  }
  0x5e   : > { %1060 = vperm.xlu1 %3511, %v2830_v29  }
  0x60   : > { %1942 = vperm.xlu0 %3508, %v3729_v30  }
  0x62   : > { %1065 = vperm.xlu1 %3511, %v2831_v31  }
  0x64   : > { %1952 = vperm.xlu0 %3508, %v3734_v32  }
  0x66   : > { %1075 = vperm.xlu1 %3511, %v2833_v33  }
  0x68   : > { %1962 = vperm.xlu0 %3508, %v3739_v34  }
  0x6a   : > { %1085 = vperm.xlu1 %3511, %v2835_v35  }
  0x6c   : > { %1972 = vperm.xlu0 %3508, %v3744_v36  }
  0x6e   : > { %1095 = vperm.xlu1 %3511, %v2837_v37  }
  0x70   : > { %3514 = vset.pattern.permute.xlu0 %v3586_v18 }
  0x71   : > { %289 = vperm.xlu0 %3514, %v3667_v2  }
  0x72   : > { %1105 = vperm.xlu1 %3511, %v2839_v38  }
  0x75   : > { %301 = vperm.xlu0 %3514, %v3671_v3  }
  0x76   : > { %1115 = vperm.xlu1 %3511, %v2841_v39  }
  0x79   : > { %309 = vperm.xlu0 %3514, %v3676_v5   ;;  %v2887_v5 = vld [vmem:[%s3663_s26 + $0x158] sm:$0xff] }
  0x7a   : > { %1125 = vperm.xlu1 %3511, %v2843_v40  }
  0x7d   : > { %317 = vperm.xlu0 %3514, %v3681_v7  }
  0x7e   : > { %3512 = vset.pattern.permute.xlu1 %v3586_v18 }
  0x7f   : > { %1149 = vperm.xlu1 %3512, %v2829_v17  }
  0x81   : > { %325 = vperm.xlu0 %3514, %v3686_v9  }
  0x83   : > { %1153 = vperm.xlu1 %3512, %v2830_v29  }
  0x85   : > { %333 = vperm.xlu0 %3514, %v3691_v11  }
  0x87   : > { %1161 = vperm.xlu1 %3512, %v2832_v19  }
  0x89   : > { %341 = vperm.xlu0 %3514, %v3696_v13  }
  0x8b   : > { %1169 = vperm.xlu1 %3512, %v2834_v20   ;;  %v3823_v20 = vld [vmem:[%s3663_s26 + $0x178] sm:$0xff] }
  0x8d   : > { %349 = vperm.xlu0 %3514, %v3701_v15  }
  0x8f   : > { %1177 = vperm.xlu1 %3512, %v2836_v21  }
  0x91   : > { %1145 = vperm.xlu0 %3514, %v2828_v27  }
  0x93   : > { %v201_v41 = vpop.permute.xlu1 %200  ;;  %1185 = vperm.xlu1 %3512, %v2838_v22   ;;  %v3761_v42 = vpop.permute.xlu0 %190 }
  0x94   : > { %v274_v9 = vmul.f32 %v3805_v1, %v201_v41 }
  0x95   : > { %1157 = vperm.xlu0 %3514, %v2831_v31  }
  0x97   : > { %v3763_v43 = vpop.permute.xlu1 %205  ;;  %1193 = vperm.xlu1 %3512, %v2840_v23   ;;  %v196_v44 = vpop.permute.xlu0 %195 }
  0x98   : > { %v273_v3 = vmul.f32 %v3805_v1, %v196_v44 }
  0x99   : > { %1165 = vperm.xlu0 %3514, %v2833_v33  }
  0x9b   : > { %v3765_v45 = vpop.permute.xlu1 %215  ;;  %1201 = vperm.xlu1 %3512, %v2842_v24   ;;  %v211_v46 = vpop.permute.xlu0 %210 }
  0x9c   : > { %v276_v21 = vmul.f32 %v3805_v1, %v211_v46 }
  0x9d   : > { %1173 = vperm.xlu0 %3514, %v2835_v35  }
  0x9f   : > { %v3768_v48 = vpop.permute.xlu1 %225  ;;  %3513 = vset.pattern.permute.xlu1 %v3585_v0  ;;  %v221_v49 = vpop.permute.xlu0 %220 }
  0xa0   : > { %1902 = vperm.xlu1 %3513, %v2876_v47  }
  0xa1   : > { %1181 = vperm.xlu0 %3514, %v2837_v37   ;;  %v278_v37 = vmul.f32 %v3805_v1, %v221_v49 }
  0xa3   : > { %v3774_v51 = vpop.permute.xlu1 %235  ;;  %v3776_v52 = vpop.permute.xlu0 %230 }
  0xa4   : > { %1912 = vperm.xlu1 %3513, %v3772_v50  }
  0xa5   : > { %1189 = vperm.xlu0 %3514, %v2839_v38  }
  0xa7   : > { %v3780_v54 = vpop.permute.xlu1 %245  ;;  %v3782_v55 = vpop.permute.xlu0 %240 }
  0xa8   : > { %1917 = vperm.xlu1 %3513, %v2879_v53  }
  0xa9   : > { %1197 = vperm.xlu0 %3514, %v2841_v39  }
  0xab   : > { %v3785_v57 = vpop.permute.xlu1 %255  ;;  %v3787_v58 = vpop.permute.xlu0 %250 }
  0xac   : > { %1927 = vperm.xlu1 %3513, %v2881_v56  }
  0xad   : > { %1205 = vperm.xlu0 %3514, %v2843_v40  }
  0xaf   : > { %v3790_v60 = vpop.permute.xlu1 %265  ;;  %v3792_v61 = vpop.permute.xlu0 %260 }
  0xb0   : > { %1937 = vperm.xlu1 %3513, %v2883_v59  }
  0xb1   : > { %1997 = vperm.xlu0 %3514, %v2876_v47  }
  0xb3   : > { %v3800_v0 = vpop.permute.xlu0 %1055 }
  0xb4   : > { %1947 = vperm.xlu1 %3513, %v2885_v62   ;;  %v294_v2 = vpop.permute.xlu1 %293 }
  0xb5   : > { %v357_v4 = vmul.f32 %v3798_v63, %v294_v2  ;;  %2009 = vperm.xlu0 %3514, %v2879_v53  }
  0xb7   : > { %v373_v6 = vadd.f32 %v357_v4, %v273_v3  ;;  %v3810_v7 = vpop.permute.xlu0 %1070 }
  0xb8   : > { %1957 = vperm.xlu1 %3513, %v2887_v5   ;;  %v298_v8 = vpop.permute.xlu1 %297 }
  0xb9   : > { %v389_v10 = vmul.f32 0.63661975, %v373_v6  ;;  %v358_v11 = vmul.f32 %v3798_v63, %v298_v8  ;;  %2017 = vperm.xlu0 %3514, %v2881_v56  }
  0xbb   : > { %v2948_v13 = vcvt.f32.s32 %v389_v10  ;;  %v3815_v14 = vadd.f32 %v358_v11, %v274_v9  ;;  %v3817_v15 = vpop.permute.xlu0 %1080  ;;  %v2946_v22 = vand.u32 2147483647, %v389_v10  ;;  %v2951_v27 = vand.u32 2147483648, %v389_v10 }
  0xbc   : > { %1967 = vperm.xlu1 %3513, %v2889_v12   ;;  %v306_v16 = vpop.permute.xlu1 %305 }
  0xbd   : > { %v2949_v17 = vcvt.s32.f32 %v2948_v13  ;;  %v3820_v19 = vmul.f32 0.63661975, %v3815_v14  ;;  %2025 = vperm.xlu0 %3514, %v2883_v59   ;;  %v360_v23 = vmul.f32 %v3798_v63, %v306_v16  ;;  %vm2947_vm0 = vcmp.lt.f32.partialorder %v2946_v22, 8388608.0 }
  0xbf   : > { %v2950_v24 = vand.u32 2147483647, %v2949_v17  ;;  %v3827_v29 = vpop.permute.xlu0 %1090  ;;  %v2956_v31 = vcvt.f32.s32 %v3820_v19  ;;  %v3830_v33 = vadd.f32 %v360_v23, %v276_v21  ;;  %v2954_v46 = vand.u32 2147483647, %v3820_v19 }
  0xc0   : > { %1977 = vperm.xlu1 %3513, %v3823_v20   ;;  %v314_v35 = vpop.permute.xlu1 %313  ;;  %v2959_v59 = vand.u32 2147483648, %v3820_v19  ;;  %v3856_v21 = vmul.f32 %v3805_v1, %v3782_v55 }
  0xc1   : > { %v2952_v38 = vor.u32 %v2951_v27, %v2950_v24  ;;  %v362_v39 = vmul.f32 %v3798_v63, %v314_v35  ;;  %2033 = vperm.xlu0 %3514, %v2885_v62   ;;  %v2957_v40 = vcvt.s32.f32 %v2956_v31  ;;  %v392_v41 = vmul.f32 0.63661975, %v3830_v33 }
  0xc2   : > { %vm2955_vm1 = vcmp.lt.f32.partialorder %v2954_v46, 8388608.0 }
  0xc3   : > { %v2953_v44 = vsel %vm2947_vm0, %v2952_v38, %v389_v10  ;;  %v3837_v47 = vadd.f32 %v362_v39, %v278_v37  ;;  %v2958_v56 = vand.u32 2147483647, %v2957_v40  ;;  %v3840_v2 = vpop.permute.xlu0 %1100  ;;  %v2972_v49 = vcvt.f32.s32 %v392_v41 }
  0xc4   : > { %v421_v53 = vmul.f32 1.5703125, %v2953_v44  ;;  %3515 = vset.pattern.permute.xlu1 %v3586_v18  ;;  %v453_v3 = vmul.f32 0.0004838268, %v2953_v44  ;;  %v2970_v16 = vand.u32 2147483647, %v392_v41  ;;  %v280_v18 = vmul.f32 %v3805_v1, %v3776_v52  ;;  %v322_v24 = vpop.permute.xlu1 %321 }
  0xc5   : > { %2001 = vperm.xlu1 %3515, %v3714_v25   ;;  %2041 = vperm.xlu0 %3514, %v2887_v5   ;;  %v2960_v4 = vor.u32 %v2959_v59, %v2958_v56  ;;  %v3845_v8 = vmul.f32 0.63661975, %v3837_v47  ;;  %v2973_v9 = vcvt.s32.f32 %v2972_v49  ;;  %v364_v44 = vmul.f32 %v3798_v63, %v322_v24 }
  0xc6   : > { %v437_v62 = vsub.f32 %v373_v6, %v421_v53  ;;  %v2975_v6 = vand.u32 2147483648, %v392_v41  ;;  %vm2971_vm2 = vcmp.lt.f32.partialorder %v2970_v16, 8388608.0  ;;  %v3878_v53 = vand.u32 3, %v2956_v31 }
  0xc7   : > { %v2961_v11 = vsel %vm2955_vm1, %v2960_v4, %v3820_v19  ;;  %v2988_v17 = vcvt.f32.s32 %v3845_v8  ;;  %v2974_v5 = vand.u32 2147483647, %v2973_v9  ;;  %v3862_v19 = vand.u32 3, %v2948_v13  ;;  %v3865_v52 = vpop.permute.xlu0 %1110 }
  0xc8   : > { %v3847_v10 = vsub.f32 %v437_v62, %v453_v3  ;;  %v422_v25 = vmul.f32 1.5703125, %v2961_v11  ;;  %v2986_v23 = vand.u32 2147483647, %v3845_v8  ;;  %v454_v35 = vmul.f32 0.0004838268, %v2961_v11  ;;  %v330_v9 = vpop.permute.xlu1 %329 }
  0xc9   : > { %2005 = vperm.xlu1 %3515, %v3772_v50   ;;  %2049 = vperm.xlu0 %3514, %v2889_v12   ;;  %v2976_v50 = vor.u32 %v2975_v6, %v2974_v5  ;;  %v2989_v12 = vcvt.s32.f32 %v2988_v17  ;;  %v2991_v13 = vand.u32 2147483648, %v3845_v8  ;;  %v3884_v62 = vand.u32 3, %v2972_v49 }
  0xca   : > { %v3860_v22 = vmul.f32 %v3847_v10, %v3847_v10  ;;  %v438_v27 = vsub.f32 %v3815_v14, %v422_v25  ;;  %vm2987_vm3 = vcmp.lt.f32.partialorder %v2986_v23, 8388608.0  ;;  %v3894_v49 = vadd.f32 %v364_v44, %v280_v18 }
  0xcb   : > { %v2977_v39 = vsel %vm2971_vm2, %v2976_v50, %v392_v41  ;;  %v2990_v40 = vand.u32 2147483647, %v2989_v12  ;;  %v3889_v11 = vpop.permute.xlu0 %1120  ;;  %vm805_vm4 = vcmp.eq.s32.totalorder %v3862_v19, 1  ;;  %vm821_vm5 = vcmp.eq.s32.totalorder %v3862_v19, 3 }
  0xcc   : > { %v501_v55 = vmul.f32 0.0027183115, %v3860_v22  ;;  %v645_v37 = vmul.f32 0.024390448, %v3860_v22  ;;  %v3873_v38 = vsub.f32 %v438_v27, %v454_v35  ;;  %v424_v56 = vmul.f32 1.5703125, %v2977_v39  ;;  %vm837_vm12 = vmor %vm805_vm4, %vm821_vm5 }
  0xcd   : > { %2013 = vperm.xlu1 %3515, %v3718_v26   ;;  %2057 = vperm.xlu0 %3514, %v3823_v20   ;;  %v2992_v41 = vor.u32 %v2991_v13, %v2990_v40  ;;  %v456_v20 = vmul.f32 0.0004838268, %v2977_v39  ;;  %v366_v50 = vmul.f32 %v3798_v63, %v330_v9  ;;  %vm885_vm6 = vcmp.eq.s32.totalorder %v3862_v19, 2 }
  0xce   : > { %v517_v14 = vadd.f32 -0.19839334, %v501_v55  ;;  %v661_v46 = vadd.f32 -1.3886764, %v645_v37  ;;  %v3882_v59 = vmul.f32 %v3873_v38, %v3873_v38  ;;  %v440_v26 = vsub.f32 %v3830_v33, %v424_v56  ;;  %vm901_vm14 = vmor %vm885_vm6, %vm821_vm5 }
  0xcf   : > { %v2993_v25 = vsel %vm2987_vm3, %v2992_v41, %v3845_v8  ;;  %v3914_v39 = vand.u32 3, %v2988_v17  ;;  %v3917_v40 = vmul.f32 0.63661975, %v3894_v49  ;;  %vm806_vm7 = vcmp.eq.s32.totalorder %v3878_v53, 1  ;;  %vm949_vm15 = vmor %vm805_vm4, %vm885_vm6 }
  0xd0   : > { %v533_v3 = vmul.f32 %v517_v14, %v3860_v22  ;;  %v677_v4 = vmul.f32 %v661_v46, %v3860_v22  ;;  %v502_v31 = vmul.f32 0.0027183115, %v3882_v59  ;;  %v646_v16 = vmul.f32 0.024390448, %v3882_v59 }
  0xd1   : > { %2021 = vperm.xlu1 %3515, %v3724_v28   ;;  %v3899_v33 = vsub.f32 %v440_v26, %v456_v20  ;;  %v426_v23 = vmul.f32 1.5703125, %v2993_v25  ;;  %v458_v35 = vmul.f32 0.0004838268, %v2993_v25  ;;  %vm822_vm8 = vcmp.eq.s32.totalorder %v3878_v53, 3 }
  0xd2   : > { %v549_v5 = vadd.f32 8.333329, %v533_v3  ;;  %v693_v6 = vadd.f32 41.666622, %v677_v4  ;;  %v518_v24 = vadd.f32 -0.19839334, %v502_v31  ;;  %v3929_v17 = vadd.f32 %v366_v50, %v3856_v21  ;;  %vm838_vm0 = vmor %vm806_vm7, %vm822_vm8 }
  0xd3   : > { %v662_v27 = vadd.f32 -1.3886764, %v646_v16  ;;  %v3907_v28 = vmul.f32 %v3899_v33, %v3899_v33  ;;  %v442_v55 = vsub.f32 %v3837_v47, %v426_v23  ;;  %v3923_v47 = vpop.permute.xlu0 %1907  ;;  %vm886_vm9 = vcmp.eq.s32.totalorder %v3878_v53, 2 }
  0xd4   : > { %v565_v12 = vmul.f32 %v549_v5, %v3860_v22  ;;  %v709_v18 = vmul.f32 %v693_v6, %v3860_v22  ;;  %v534_v37 = vmul.f32 %v518_v24, %v3882_v59  ;;  %v3004_v21 = vcvt.f32.s32 %v3917_v40  ;;  %vm902_vm1 = vmor %vm886_vm9, %vm822_vm8 }
  0xd5   : > { %v678_v13 = vmul.f32 %v662_v27, %v3882_v59  ;;  %2029 = vperm.xlu1 %3515, %v3729_v30   ;;  %v504_v46 = vmul.f32 0.0027183115, %v3907_v28  ;;  %v3921_v56 = vsub.f32 %v442_v55, %v458_v35  ;;  %v648_v8 = vmul.f32 0.024390448, %v3907_v28  ;;  %vm950_vm2 = vmor %vm806_vm7, %vm886_vm9 }
  0xd6   : > { %v581_v44 = vadd.f32 -166.66667, %v565_v12  ;;  %v725_v14 = vadd.f32 -500.0, %v709_v18  ;;  %v550_v41 = vadd.f32 8.333329, %v534_v37  ;;  %vm808_vm10 = vcmp.eq.s32.totalorder %v3884_v62, 1 }
  0xd7   : > { %v694_v3 = vadd.f32 41.666622, %v678_v13  ;;  %v520_v26 = vadd.f32 -0.19839334, %v504_v46  ;;  %v3936_v20 = vmul.f32 %v3921_v56, %v3921_v56  ;;  %v664_v16 = vadd.f32 -1.3886764, %v648_v8  ;;  %v3955_v55 = vpop.permute.xlu0 %1922 }
  0xd8   : > { %v597_v30 = vmul.f32 %v581_v44, %v3860_v22  ;;  %v741_v4 = vmul.f32 %v725_v14, %v3860_v22  ;;  %v566_v9 = vmul.f32 %v550_v41, %v3882_v59  ;;  %v3002_v6 = vand.u32 2147483647, %v3917_v40 }
  0xd9   : > { %v710_v31 = vmul.f32 %v694_v3, %v3882_v59  ;;  %2037 = vperm.xlu1 %3515, %v3734_v32   ;;  %v536_v5 = vmul.f32 %v520_v26, %v3907_v28  ;;  %v506_v22 = vmul.f32 0.0027183115, %v3936_v20  ;;  %v680_v27 = vmul.f32 %v664_v16, %v3907_v28 }
  0xda   : > { %v613_v25 = vadd.f32 1000.0, %v597_v30  ;;  %v582_v23 = vadd.f32 -166.66667, %v566_v9  ;;  %v650_v35 = vmul.f32 0.024390448, %v3936_v20  ;;  %v757_v12 = vadd.f32 1000.0, %v741_v4 }
  0xdb   : > { %v726_v24 = vadd.f32 -500.0, %v710_v31  ;;  %v552_v32 = vadd.f32 8.333329, %v536_v5  ;;  %vm824_vm11 = vcmp.eq.s32.totalorder %v3884_v62, 3  ;;  %v522_v18 = vadd.f32 -0.19839334, %v506_v22 }
  0xdc   : > { %v629_v50 = vmul.f32 %v613_v25, %v3847_v10  ;;  %v598_v37 = vmul.f32 %v582_v23, %v3882_v59  ;;  %v696_v44 = vadd.f32 41.666622, %v680_v27  ;;  %v666_v10 = vadd.f32 -1.3886764, %v650_v35  ;;  %v3992_v27 = vpop.permute.xlu0 %1932  ;;  %vm840_vm4 = vmor %vm808_vm10, %vm824_vm11 }
  0xdd   : > { %v742_v13 = vmul.f32 %v726_v24, %v3882_v59  ;;  %2045 = vperm.xlu1 %3515, %v3739_v34   ;;  %v568_v41 = vmul.f32 %v552_v32, %v3907_v28  ;;  %vm888_vm13 = vcmp.eq.s32.totalorder %v3884_v62, 2  ;;  %v538_v3 = vmul.f32 %v522_v18, %v3936_v20  ;;  %v338_v32 = vpop.permute.xlu1 %337 }
  0xde   : > { %v853_v14 = vsel %vm837_vm12, %v757_v12, %v629_v50  ;;  %v869_v46 = vsel %vm837_vm12, %v629_v50, %v757_v12  ;;  %v614_v30 = vadd.f32 1000.0, %v598_v37  ;;  %v712_v26 = vmul.f32 %v696_v44, %v3907_v28  ;;  %vm904_vm7 = vmor %vm888_vm13, %vm824_vm11 }
  0xdf   : > { %v917_v8 = vsub.f32 0.0, %v853_v14  ;;  %v965_v59 = vsub.f32 0.0, %v869_v46  ;;  %v758_v4 = vadd.f32 1000.0, %v742_v13  ;;  %v584_v34 = vadd.f32 -166.66667, %v568_v41  ;;  %vm952_vm8 = vmor %vm808_vm10, %vm888_vm13 }
  0xe0   : > { %v554_v9 = vadd.f32 8.333329, %v538_v3  ;;  %v682_v31 = vmul.f32 %v666_v10, %v3936_v20  ;;  %v630_v5 = vmul.f32 %v614_v30, %v3873_v38  ;;  %v3005_v22 = vcvt.s32.f32 %v3004_v21 }
  0xe1   : > { %v933_v16 = vsel %vm901_vm14, %v917_v8, %v853_v14  ;;  %v981_v25 = vsel %vm949_vm15, %v965_v59, %v869_v46  ;;  %2053 = vperm.xlu1 %3515, %v3744_v36   ;;  %v600_v19 = vmul.f32 %v584_v34, %v3907_v28  ;;  %v728_v23 = vadd.f32 -500.0, %v712_v26  ;;  %v4016_v34 = vpop.permute.xlu0 %1942 }
  0xe2   : > { %1000 = vst [vmem:[%s3982_s5 + $0x10] sm:$0xff] %v933_v16  ;;  %1016 = vst [vmem:[%s3982_s5 + $0x18] sm:$0xff] %v981_v25  ;;  %v570_v38 = vmul.f32 %v554_v9, %v3936_v20  ;;  %v698_v24 = vadd.f32 41.666622, %v682_v31  ;;  %v854_v36 = vsel %vm838_vm0, %v758_v4, %v630_v5  ;;  %v870_v35 = vsel %vm838_vm0, %v630_v5, %v758_v4  ;;  %v346_v25 = vpop.permute.xlu1 %345 }
  0xe3   : > { %v3006_v50 = vand.u32 2147483647, %v3005_v22  ;;  %v3007_v12 = vand.u32 2147483648, %v3917_v40  ;;  %v918_v18 = vsub.f32 0.0, %v854_v36  ;;  %v966_v37 = vsub.f32 0.0, %v870_v35 }
  0xe4   : > { %v616_v13 = vadd.f32 1000.0, %v600_v19  ;;  %v744_v44 = vmul.f32 %v728_v23, %v3907_v28  ;;  %v586_v10 = vadd.f32 -166.66667, %v570_v38  ;;  %v714_v14 = vmul.f32 %v698_v24, %v3936_v20 }
  0xe5   : > { %vm3003_vm3 = vcmp.lt.f32.partialorder %v3002_v6, 8388608.0  ;;  %v3008_v46 = vor.u32 %v3007_v12, %v3006_v50  ;;  %v934_v41 = vsel %vm902_vm1, %v918_v18, %v854_v36  ;;  %v982_v3 = vsel %vm950_vm2, %v966_v37, %v870_v35 }
  0xe6   : > { %v632_v8 = vmul.f32 %v616_v13, %v3899_v33  ;;  %v760_v59 = vadd.f32 1000.0, %v744_v44  ;;  %1001 = vst [vmem:[%s3982_s5 + $0x20] sm:$0xff] %v934_v41  ;;  %1017 = vst [vmem:[%s3982_s5 + $0x28] sm:$0xff] %v982_v3  ;;  %v602_v53 = vmul.f32 %v586_v10, %v3936_v20  ;;  %v730_v28 = vadd.f32 -500.0, %v714_v14  ;;  %v4051_v13 = vpop.permute.xlu0 %1952  ;;  %v4062_v10 = vpop.permute.xlu1 %1050 }
  0xe7   : > { %vm810_vm5 = vcmp.eq.s32.totalorder %v3914_v39, 1  ;;  %v3009_v6 = vsel %vm3003_vm3, %v3008_v46, %v3917_v40  ;;  %vm826_vm6 = vcmp.eq.s32.totalorder %v3914_v39, 3  ;;  %vm890_vm9 = vcmp.eq.s32.totalorder %v3914_v39, 2 }
  0xe8   : > { %v856_v30 = vsel %vm840_vm4, %v760_v59, %v632_v8  ;;  %v872_v4 = vsel %vm840_vm4, %v632_v8, %v760_v59  ;;  %v428_v33 = vmul.f32 1.5703125, %v3009_v6  ;;  %v618_v31 = vadd.f32 1000.0, %v602_v53  ;;  %vm842_vm10 = vmor %vm810_vm5, %vm826_vm6 }
  0xe9   : > { %v920_v26 = vsub.f32 0.0, %v856_v30  ;;  %v968_v9 = vsub.f32 0.0, %v872_v4  ;;  %v746_v16 = vmul.f32 %v730_v28, %v3936_v20  ;;  %v460_v22 = vmul.f32 0.0004838268, %v3009_v6  ;;  %vm906_vm11 = vmor %vm890_vm9, %vm826_vm6 }
  0xea   : > { %v444_v5 = vsub.f32 %v3894_v49, %v428_v33  ;;  %v4030_v19 = vmul.f32 0.63661975, %v3929_v17  ;;  %v634_v24 = vmul.f32 %v618_v31, %v3921_v56  ;;  %v284_v20 = vmul.f32 %v3805_v1, %v3787_v58  ;;  %vm954_vm12 = vmor %vm810_vm5, %vm890_vm9  ;;  %v4074_v31 = vpop.permute.xlu0 %1962 }
  0xeb   : > { %v936_v23 = vsel %vm904_vm7, %v920_v26, %v856_v30  ;;  %v984_v38 = vsel %vm952_vm8, %v968_v9, %v872_v4  ;;  %v762_v36 = vadd.f32 1000.0, %v746_v16  ;;  %v368_v56 = vmul.f32 %v3798_v63, %v338_v32 }
  0xec   : > { %1003 = vst [vmem:[%s3982_s5 + $0x40] sm:$0xff] %v936_v23  ;;  %1019 = vst [vmem:[%s3982_s5 + $0x48] sm:$0xff] %v984_v38  ;;  %v4039_v62 = vsub.f32 %v444_v5, %v460_v22  ;;  %v3020_v49 = vcvt.f32.s32 %v4030_v19  ;;  %v3018_v58 = vand.u32 2147483647, %v4030_v19  ;;  %v3023_v59 = vand.u32 2147483648, %v4030_v19  ;;  %v4079_v22 = vpop.permute.xlu1 %1060 }
  0xed   : > { %v858_v35 = vsel %vm842_vm10, %v762_v36, %v634_v24  ;;  %v874_v50 = vsel %vm842_vm10, %v634_v24, %v762_v36  ;;  %v4060_v44 = vadd.f32 %v368_v56, %v284_v20  ;;  %v370_v6 = vmul.f32 %v3798_v63, %v346_v25 }
  0xee   : > { %v922_v12 = vsub.f32 0.0, %v858_v35  ;;  %v970_v18 = vsub.f32 0.0, %v874_v50  ;;  %v492_v37 = vmul.f32 %v4039_v62, %v4039_v62  ;;  %v3021_v32 = vcvt.s32.f32 %v3020_v49 }
  0xef   : > { %v4068_v28 = vmul.f32 0.63661975, %v4060_v44  ;;  %v286_v30 = vmul.f32 %v3805_v1, %v3792_v61  ;;  %vm3019_vm13 = vcmp.lt.f32.partialorder %v3018_v58, 8388608.0  ;;  %v796_v61 = vand.u32 3, %v3004_v21  ;;  %v4093_v21 = vpop.permute.xlu0 %1972 }
  0xf0   : > { %v938_v14 = vsel %vm906_vm11, %v922_v12, %v858_v35  ;;  %v986_v46 = vsel %vm954_vm12, %v970_v18, %v874_v50  ;;  %v508_v41 = vmul.f32 0.0027183115, %v492_v37  ;;  %v652_v3 = vmul.f32 0.024390448, %v492_v37 }
  0xf1   : > { %1005 = vst [vmem:[%s3982_s5 + $0x60] sm:$0xff] %v938_v14  ;;  %1021 = vst [vmem:[%s3982_s5 + $0x68] sm:$0xff] %v986_v46  ;;  %v3022_v8 = vand.u32 2147483647, %v3021_v32  ;;  %v3036_v9 = vcvt.f32.s32 %v4068_v28  ;;  %v4077_v5 = vadd.f32 %v370_v6, %v286_v30  ;;  %v3034_v24 = vand.u32 2147483647, %v4068_v28 }
  0xf2   : > { %v524_v39 = vadd.f32 -0.19839334, %v508_v41  ;;  %v668_v53 = vadd.f32 -1.3886764, %v652_v3  ;;  %v3039_v58 = vand.u32 2147483648, %v4068_v28  ;;  %v4097_v46 = vmul.f32 %v3805_v1, %v3761_v42 }
  0xf3   : > { %v3024_v4 = vor.u32 %v3023_v59, %v3022_v8  ;;  %v3037_v36 = vcvt.s32.f32 %v3036_v9  ;;  %v4087_v20 = vmul.f32 0.63661975, %v4077_v5  ;;  %vm812_vm14 = vcmp.eq.s32.totalorder %v796_v61, 1  ;;  %v4100_v8 = vpop.permute.xlu1 %1065 }
  0xf4   : > { %v540_v33 = vmul.f32 %v524_v39, %v492_v37  ;;  %v684_v26 = vmul.f32 %v668_v53, %v492_v37  ;;  %vm3035_vm15 = vcmp.lt.f32.partialorder %v3034_v24, 8388608.0  ;;  %vm828_vm0 = vcmp.eq.s32.totalorder %v796_v61, 3 }
  0xf5   : > { %v3025_v16 = vsel %vm3019_vm13, %v3024_v4, %v4030_v19  ;;  %v3038_v18 = vand.u32 2147483647, %v3037_v36  ;;  %v3052_v3 = vcvt.f32.s32 %v4087_v20  ;;  %v3050_v6 = vand.u32 2147483647, %v4087_v20  ;;  %vm844_vm2 = vmor %vm812_vm14, %vm828_vm0 }
  0xf6   : > { %v556_v23 = vadd.f32 8.333329, %v540_v33  ;;  %v700_v38 = vadd.f32 41.666622, %v684_v26  ;;  %v430_v25 = vmul.f32 1.5703125, %v3025_v16  ;;  %vm892_vm1 = vcmp.eq.s32.totalorder %v796_v61, 2 }
  0xf7   : > { %v462_v12 = vmul.f32 0.0004838268, %v3025_v16  ;;  %v3040_v41 = vor.u32 %v3039_v58, %v3038_v18  ;;  %v3053_v42 = vcvt.s32.f32 %v3052_v3  ;;  %vm3051_vm3 = vcmp.lt.f32.partialorder %v3050_v6, 8388608.0  ;;  %vm908_vm4 = vmor %vm892_vm1, %vm828_vm0 }
  0xf8   : > { %v572_v35 = vmul.f32 %v556_v23, %v492_v37  ;;  %v716_v50 = vmul.f32 %v700_v38, %v492_v37  ;;  %v446_v56 = vsub.f32 %v3929_v17, %v430_v25  ;;  %v3055_v23 = vand.u32 2147483648, %v4087_v20  ;;  %vm956_vm5 = vmor %vm812_vm14, %vm892_vm1 }
  0xf9   : > { %v3041_v53 = vsel %vm3035_vm15, %v3040_v41, %v4068_v28  ;;  %v3054_v16 = vand.u32 2147483647, %v3053_v42  ;;  %v4136_v42 = vmul.f32 %v3805_v1, %v3765_v45 }
  0xfa   : > { %v588_v32 = vadd.f32 -166.66667, %v572_v35  ;;  %v732_v14 = vadd.f32 -500.0, %v716_v50  ;;  %v4091_v40 = vsub.f32 %v446_v56, %v462_v12  ;;  %v432_v26 = vmul.f32 1.5703125, %v3041_v53  ;;  %v290_v35 = vpop.permute.xlu0 %289 }
  0xfb   : > { %v464_v56 = vmul.f32 0.0004838268, %v3041_v53  ;;  %v3056_v19 = vor.u32 %v3055_v23, %v3054_v16 }
  0xfc   : > { %v604_v17 = vmul.f32 %v588_v32, %v492_v37  ;;  %v748_v59 = vmul.f32 %v732_v14, %v492_v37  ;;  %v4104_v39 = vmul.f32 %v4091_v40, %v4091_v40  ;;  %v4114_v37 = vand.u32 3, %v3020_v49  ;;  %v4121_v49 = vpop.permute.xlu1 %1075 }
  0xfd   : > { %v448_v50 = vsub.f32 %v4060_v44, %v432_v26  ;;  %v3057_v44 = vsel %vm3051_vm3, %v3056_v19, %v4087_v20 }
  0xfe   : > { %v620_v30 = vadd.f32 1000.0, %v604_v17  ;;  %v510_v4 = vmul.f32 0.0027183115, %v4104_v39  ;;  %v654_v33 = vmul.f32 0.024390448, %v4104_v39  ;;  %v764_v25 = vadd.f32 1000.0, %v748_v59  ;;  %v302_v23 = vpop.permute.xlu0 %301 }
  0xff   : > { %v4127_v41 = vsub.f32 %v448_v50, %v464_v56  ;;  %v275_v17 = vmul.f32 %v3805_v1, %v3763_v43  ;;  %v434_v6 = vmul.f32 1.5703125, %v3057_v44  ;;  %v466_v16 = vmul.f32 0.0004838268, %v3057_v44 }
 0x100   : > { %v636_v38 = vmul.f32 %v620_v30, %v4039_v62  ;;  %v526_v24 = vadd.f32 -0.19839334, %v510_v4  ;;  %v670_v36 = vadd.f32 -1.3886764, %v654_v33  ;;  %vm814_vm6 = vcmp.eq.s32.totalorder %v4114_v37, 1 }
 0x101   : > { %v4140_v33 = vmul.f32 %v4127_v41, %v4127_v41  ;;  %v450_v26 = vsub.f32 %v4077_v5, %v434_v6  ;;  %vm830_vm7 = vcmp.eq.s32.totalorder %v4114_v37, 3  ;;  %v356_v56 = vmul.f32 %v3798_v63, %v290_v35 }
 0x102   : > { %v860_v12 = vsel %vm844_vm2, %v764_v25, %v636_v38  ;;  %v876_v18 = vsel %vm844_vm2, %v636_v38, %v764_v25  ;;  %v542_v58 = vmul.f32 %v526_v24, %v4104_v39  ;;  %v686_v62 = vmul.f32 %v670_v36, %v4104_v39  ;;  %v4151_v25 = vpop.permute.xlu1 %1085  ;;  %vm846_vm10 = vmor %vm814_vm6, %vm830_vm7 }
 0x103   : > { %v924_v32 = vsub.f32 0.0, %v860_v12  ;;  %v972_v14 = vsub.f32 0.0, %v876_v18  ;;  %v512_v45 = vmul.f32 0.0027183115, %v4140_v33  ;;  %v656_v38 = vmul.f32 0.024390448, %v4140_v33 }
 0x104   : > { %v558_v59 = vadd.f32 8.333329, %v542_v58  ;;  %v702_v53 = vadd.f32 41.666622, %v686_v62  ;;  %v4153_v50 = vsub.f32 %v450_v26, %v466_v16  ;;  %vm894_vm8 = vcmp.eq.s32.totalorder %v4114_v37, 2 }
 0x105   : > { %v940_v30 = vsel %vm908_vm4, %v924_v32, %v860_v12  ;;  %v988_v4 = vsel %vm956_vm5, %v972_v14, %v876_v18  ;;  %v528_v19 = vadd.f32 -0.19839334, %v512_v45  ;;  %v672_v5 = vadd.f32 -1.3886764, %v656_v38  ;;  %vm910_vm11 = vmor %vm894_vm8, %vm830_vm7 }
 0x106   : > { %1007 = vst [vmem:[%s3982_s5 + $0x80] sm:$0xff] %v940_v30  ;;  %1023 = vst [vmem:[%s3982_s5 + $0x88] sm:$0xff] %v988_v4  ;;  %v574_v43 = vmul.f32 %v558_v59, %v4104_v39  ;;  %v718_v61 = vmul.f32 %v702_v53, %v4104_v39  ;;  %v4158_v12 = vand.u32 3, %v3036_v9  ;;  %v359_v18 = vmul.f32 %v3798_v63, %v302_v23  ;;  %v4186_v4 = vpop.permute.xlu1 %1095 }
 0x107   : > { %v4165_v32 = vmul.f32 %v4153_v50, %v4153_v50  ;;  %v4168_v14 = vadd.f32 %v356_v56, %v4097_v46  ;;  %v544_v35 = vmul.f32 %v528_v19, %v4140_v33  ;;  %v688_v28 = vmul.f32 %v672_v5, %v4140_v33  ;;  %vm958_vm12 = vmor %vm814_vm6, %vm894_vm8 }
 0x108   : > { %v590_v24 = vadd.f32 -166.66667, %v574_v43  ;;  %v734_v36 = vadd.f32 -500.0, %v718_v61  ;;  %v4173_v9 = vadd.f32 %v359_v18, %v275_v17  ;;  %v4179_v53 = vand.u32 3, %v3052_v3 }
 0x109   : > { %v514_v59 = vmul.f32 0.0027183115, %v4165_v32  ;;  %v4183_v46 = vmul.f32 %v3805_v1, %v3768_v48  ;;  %v560_v6 = vadd.f32 8.333329, %v544_v35  ;;  %v704_v30 = vadd.f32 41.666622, %v688_v28 }
 0x10a   : > { %v606_v58 = vmul.f32 %v590_v24, %v4104_v39  ;;  %v750_v62 = vmul.f32 %v734_v36, %v4104_v39  ;;  %v658_v39 = vmul.f32 0.024390448, %v4165_v32  ;;  %vm816_vm9 = vcmp.eq.s32.totalorder %v4158_v12, 1 }
 0x10b   : > { %v4189_v17 = vmul.f32 0.63661975, %v4168_v14  ;;  %v530_v26 = vadd.f32 -0.19839334, %v514_v59  ;;  %v576_v48 = vmul.f32 %v560_v6, %v4140_v33  ;;  %v720_v3 = vmul.f32 %v704_v30, %v4140_v33  ;;  %v4217_v6 = vpop.permute.xlu1 %1105 }
 0x10c   : > { %v622_v44 = vadd.f32 1000.0, %v606_v58  ;;  %v766_v61 = vadd.f32 1000.0, %v750_v62  ;;  %v674_v20 = vadd.f32 -1.3886764, %v658_v39  ;;  %v4200_v23 = vmul.f32 0.63661975, %v4173_v9 }
 0x10d   : > { %v2940_v16 = vcvt.f32.s32 %v4189_v17  ;;  %v592_v19 = vadd.f32 -166.66667, %v576_v48  ;;  %v736_v5 = vadd.f32 -500.0, %v720_v3  ;;  %v2938_v62 = vand.u32 2147483647, %v4189_v17 }
 0x10e   : > { %v638_v43 = vmul.f32 %v622_v44, %v4091_v40  ;;  %v546_v40 = vmul.f32 %v530_v26, %v4165_v32  ;;  %v690_v24 = vmul.f32 %v674_v20, %v4165_v32  ;;  %vm832_vm13 = vcmp.eq.s32.totalorder %v4158_v12, 3  ;;  %v310_v20 = vpop.permute.xlu0 %309 }
 0x10f   : > { %v2941_v35 = vcvt.s32.f32 %v2940_v16  ;;  %v608_v59 = vmul.f32 %v592_v19, %v4140_v33  ;;  %v752_v39 = vmul.f32 %v736_v5, %v4140_v33  ;;  %vm896_vm14 = vcmp.eq.s32.totalorder %v4158_v12, 2  ;;  %vm848_vm2 = vmor %vm816_vm9, %vm832_vm13 }
 0x110   : > { %v862_v45 = vsel %vm846_vm10, %v766_v61, %v638_v43  ;;  %v878_v38 = vsel %vm846_vm10, %v638_v43, %v766_v61  ;;  %v562_v18 = vadd.f32 8.333329, %v546_v40  ;;  %v706_v58 = vadd.f32 41.666622, %v690_v24  ;;  %vm912_vm4 = vmor %vm896_vm14, %vm832_vm13 }
 0x111   : > { %v926_v36 = vsub.f32 0.0, %v862_v45  ;;  %v974_v56 = vsub.f32 0.0, %v878_v38  ;;  %v2942_v43 = vand.u32 2147483647, %v2941_v35  ;;  %v2943_v61 = vand.u32 2147483648, %v4189_v17  ;;  %vm960_vm5 = vmor %vm816_vm9, %vm896_vm14 }
 0x112   : > { %v578_v37 = vmul.f32 %v562_v18, %v4165_v32  ;;  %v722_v30 = vmul.f32 %v706_v58, %v4165_v32  ;;  %v624_v26 = vadd.f32 1000.0, %v608_v59  ;;  %vm818_vm15 = vcmp.eq.s32.totalorder %v4179_v53, 1  ;;  %v4239_v58 = vpop.permute.xlu1 %1115 }
 0x113   : > { %v942_v28 = vsel %vm910_vm11, %v926_v36, %v862_v45  ;;  %v990_v44 = vsel %vm958_vm12, %v974_v56, %v878_v38  ;;  %vm834_vm0 = vcmp.eq.s32.totalorder %v4179_v53, 3  ;;  %v2944_v3 = vor.u32 %v2943_v61, %v2942_v43 }
 0x114   : > { %1009 = vst [vmem:[%s3982_s5 + $0xa0] sm:$0xff] %v942_v28  ;;  %1025 = vst [vmem:[%s3982_s5 + $0xa8] sm:$0xff] %v990_v44  ;;  %v594_v33 = vadd.f32 -166.66667, %v578_v37  ;;  %v738_v48 = vadd.f32 -500.0, %v722_v30  ;;  %v640_v45 = vmul.f32 %v624_v26, %v4127_v41  ;;  %v768_v38 = vadd.f32 1000.0, %v752_v39 }
 0x115   : > { %vm2939_vm1 = vcmp.lt.f32.partialorder %v2938_v62, 8388608.0  ;;  %v2964_v40 = vcvt.f32.s32 %v4200_v23  ;;  %v361_v19 = vmul.f32 %v3798_v63, %v310_v20  ;;  %vm898_vm3 = vcmp.eq.s32.totalorder %v4179_v53, 2  ;;  %vm850_vm6 = vmor %vm818_vm15, %vm834_vm0 }
 0x116   : > { %v610_v24 = vmul.f32 %v594_v33, %v4165_v32  ;;  %v754_v36 = vmul.f32 %v738_v48, %v4165_v32  ;;  %v2945_v56 = vsel %vm2939_vm1, %v2944_v3, %v4189_v17  ;;  %v864_v5 = vsel %vm848_vm2, %v768_v38, %v640_v45  ;;  %vm914_vm7 = vmor %vm898_vm3, %vm834_vm0 }
 0x117   : > { %v880_v18 = vsel %vm848_vm2, %v640_v45, %v768_v38  ;;  %v420_v41 = vmul.f32 1.5703125, %v2945_v56  ;;  %v928_v62 = vsub.f32 0.0, %v864_v5  ;;  %v2962_v28 = vand.u32 2147483647, %v4200_v23  ;;  %vm962_vm8 = vmor %vm818_vm15, %vm898_vm3 }
 0x118   : > { %v976_v32 = vsub.f32 0.0, %v880_v18  ;;  %v626_v35 = vadd.f32 1000.0, %v610_v24  ;;  %v770_v44 = vadd.f32 1000.0, %v754_v36  ;;  %v452_v39 = vmul.f32 0.0004838268, %v2945_v56  ;;  %v4285_v24 = vpop.permute.xlu1 %1125 }
 0x119   : > { %v436_v59 = vsub.f32 %v4168_v14, %v420_v41  ;;  %v2965_v37 = vcvt.s32.f32 %v2964_v40  ;;  %v944_v30 = vsel %vm912_vm4, %v928_v62, %v864_v5  ;;  %v4255_v26 = vadd.f32 %v361_v19, %v4136_v42  ;;  %v318_v5 = vpop.permute.xlu0 %317 }
 0x11a   : > { %v992_v43 = vsel %vm960_vm5, %v976_v32, %v880_v18  ;;  %v642_v61 = vmul.f32 %v626_v35, %v4153_v50  ;;  %v4259_v20 = vmul.f32 %v3805_v1, %v3774_v51  ;;  %1011 = vst [vmem:[%s3982_s5 + $0xc0] sm:$0xff] %v944_v30  ;;  %v2967_v33 = vand.u32 2147483648, %v4200_v23 }
 0x11b   : > { %1027 = vst [vmem:[%s3982_s5 + $0xc8] sm:$0xff] %v992_v43  ;;  %v4267_v12 = vsub.f32 %v436_v59, %v452_v39  ;;  %v2966_v14 = vand.u32 2147483647, %v2965_v37  ;;  %v4272_v42 = vmul.f32 %v3805_v1, %v3780_v54  ;;  %v4275_v51 = vmul.f32 0.63661975, %v4255_v26 }
 0x11c   : > { %v866_v50 = vsel %vm850_vm6, %v770_v44, %v642_v61  ;;  %v882_v48 = vsel %vm850_vm6, %v642_v61, %v770_v44  ;;  %v4289_v36 = vmul.f32 %v3805_v1, %v3785_v57  ;;  %v4293_v56 = vmul.f32 %v3805_v1, %v3790_v60 }
 0x11d   : > { %v930_v3 = vsub.f32 0.0, %v866_v50  ;;  %v978_v45 = vsub.f32 0.0, %v882_v48  ;;  %v4283_v38 = vmul.f32 %v4267_v12, %v4267_v12  ;;  %v2968_v54 = vor.u32 %v2967_v33, %v2966_v14 }
 0x11e   : > { %vm2963_vm9 = vcmp.lt.f32.partialorder %v2962_v28, 8388608.0  ;;  %v2980_v19 = vcvt.f32.s32 %v4275_v51  ;;  %v4306_v60 = vand.u32 3, %v2940_v16  ;;  %v2978_v53 = vand.u32 2147483647, %v4275_v51 }
 0x11f   : > { %v946_v18 = vsel %vm914_vm7, %v930_v3, %v866_v50  ;;  %v994_v41 = vsel %vm962_vm8, %v978_v45, %v882_v48  ;;  %v500_v62 = vmul.f32 0.0027183115, %v4283_v38  ;;  %v644_v57 = vmul.f32 0.024390448, %v4283_v38  ;;  %v1150_v50 = vpop.permute.xlu1 %1149 }
 0x120   : > { %1013 = vst [vmem:[%s3982_s5 + $0xe0] sm:$0xff] %v946_v18  ;;  %1029 = vst [vmem:[%s3982_s5 + $0xe8] sm:$0xff] %v994_v41  ;;  %v2969_v32 = vsel %vm2963_vm9, %v2968_v54, %v4200_v23  ;;  %v2981_v35 = vcvt.s32.f32 %v2980_v19  ;;  %v363_v39 = vmul.f32 %v3798_v63, %v318_v5  ;;  %v1129_v37 = vmul.f32 %v3805_v1, %v3800_v0 }
 0x121   : > { %v516_v28 = vadd.f32 -0.19839334, %v500_v62  ;;  %v660_v44 = vadd.f32 -1.3886764, %v644_v57  ;;  %v423_v59 = vmul.f32 1.5703125, %v2969_v32  ;;  %v4317_v17 = vmul.f32 %v3805_v1, %v3810_v7 }
 0x122   : > { %v2982_v16 = vand.u32 2147483647, %v2981_v35  ;;  %v2983_v30 = vand.u32 2147483648, %v4275_v51  ;;  %v455_v33 = vmul.f32 0.0004838268, %v2969_v32  ;;  %v4325_v63 = vmul.f32 %v3805_v1, %v3817_v15 }
 0x123   : > { %v532_v43 = vmul.f32 %v516_v28, %v4283_v38  ;;  %v676_v61 = vmul.f32 %v660_v44, %v4283_v38  ;;  %v439_v14 = vsub.f32 %v4173_v9, %v423_v59  ;;  %v4329_v0 = vmul.f32 %v3805_v1, %v4079_v22  ;;  %v4345_v1 = vld [vmem:[%s6379_s1 + $0x1] ss:$0 sm:$0xff]  ;;  %v326_v59 = vpop.permute.xlu0 %325 }
 0x124   : > { %v2984_v7 = vor.u32 %v2983_v30, %v2982_v16  ;;  %v4332_v48 = vadd.f32 %v363_v39, %v4183_v46  ;;  %vm804_vm10 = vcmp.eq.s32.totalorder %v4306_v60, 1  ;;  %vm2979_vm11 = vcmp.lt.f32.partialorder %v2978_v53, 8388608.0 }
 0x125   : > { %v548_v3 = vadd.f32 8.333329, %v532_v43  ;;  %v692_v45 = vadd.f32 41.666622, %v676_v61  ;;  %v4335_v54 = vsub.f32 %v439_v14, %v455_v33  ;;  %vm820_vm12 = vcmp.eq.s32.totalorder %v4306_v60, 3 }
 0x126   : > { %v2985_v15 = vsel %vm2979_vm11, %v2984_v7, %v4275_v51  ;;  %v4340_v9 = vmul.f32 0.63661975, %v4332_v48  ;;  %v1209_v22 = vmul.f32 %v4345_v1, %v1150_v50  ;;  %vm884_vm13 = vcmp.eq.s32.totalorder %v4306_v60, 2  ;;  %vm836_vm1 = vmor %vm804_vm10, %vm820_vm12 }
 0x127   : > { %v564_v46 = vmul.f32 %v548_v3, %v4283_v38  ;;  %v708_v5 = vmul.f32 %v692_v45, %v4283_v38  ;;  %v4352_v18 = vmul.f32 %v4335_v54, %v4335_v54  ;;  %v425_v41 = vmul.f32 1.5703125, %v2985_v15  ;;  %vm900_vm3 = vmor %vm884_vm13, %vm820_vm12 }
 0x128   : > { %v457_v62 = vmul.f32 0.0004838268, %v2985_v15  ;;  %v2994_v57 = vand.u32 2147483647, %v4340_v9  ;;  %v2996_v32 = vcvt.f32.s32 %v4340_v9  ;;  %v4362_v16 = vand.u32 3, %v2964_v40  ;;  %vm948_vm4 = vmor %vm804_vm10, %vm884_vm13 }
 0x129   : > { %v580_v53 = vadd.f32 -166.66667, %v564_v46  ;;  %v724_v35 = vadd.f32 -500.0, %v708_v5  ;;  %v503_v28 = vmul.f32 0.0027183115, %v4352_v18  ;;  %v441_v44 = vsub.f32 %v4255_v26, %v425_v41 }
 0x12a   : > { %v647_v39 = vmul.f32 0.024390448, %v4352_v18  ;;  %v2997_v30 = vcvt.s32.f32 %v2996_v32  ;;  %v4366_v43 = vadd.f32 %v1209_v22, %v1129_v37  ;;  %v2999_v3 = vand.u32 2147483648, %v4340_v9 }
 0x12b   : > { %v596_v61 = vmul.f32 %v580_v53, %v4283_v38  ;;  %v740_v14 = vmul.f32 %v724_v35, %v4283_v38  ;;  %v519_v33 = vadd.f32 -0.19839334, %v503_v28  ;;  %v4370_v50 = vsub.f32 %v441_v44, %v457_v62 }
 0x12c   : > { %v663_v26 = vadd.f32 -1.3886764, %v647_v39  ;;  %v2998_v7 = vand.u32 2147483647, %v2997_v30  ;;  %v365_v23 = vmul.f32 %v4345_v1, %v326_v59  ;;  %vm2995_vm14 = vcmp.lt.f32.partialorder %v2994_v57, 8388608.0 }
 0x12d   : > { %v612_v40 = vadd.f32 1000.0, %v596_v61  ;;  %v535_v45 = vmul.f32 %v519_v33, %v4352_v18  ;;  %v4377_v37 = vmul.f32 %v4370_v50, %v4370_v50  ;;  %v756_v15 = vadd.f32 1000.0, %v740_v14 }
 0x12e   : > { %v679_v38 = vmul.f32 %v663_v26, %v4352_v18  ;;  %v3000_v22 = vor.u32 %v2999_v3, %v2998_v7  ;;  %v4381_v46 = vmul.f32 0.63661975, %v4366_v43  ;;  %vm807_vm15 = vcmp.eq.s32.totalorder %v4362_v16, 1 }
 0x12f   : > { %v628_v5 = vmul.f32 %v612_v40, %v4267_v12  ;;  %v551_v41 = vadd.f32 8.333329, %v535_v45  ;;  %vm823_vm0 = vcmp.eq.s32.totalorder %v4362_v16, 3  ;;  %v505_v62 = vmul.f32 0.0027183115, %v4377_v37 }
 0x130   : > { %v649_v53 = vmul.f32 0.024390448, %v4377_v37  ;;  %v695_v57 = vadd.f32 41.666622, %v679_v38  ;;  %v4394_v35 = vand.u32 3, %v2980_v19  ;;  %v3001_v12 = vsel %vm2995_vm14, %v3000_v22, %v4340_v9  ;;  %vm839_vm8 = vmor %vm807_vm15, %vm823_vm0 }
 0x131   : > { %v3124_v28 = vcvt.f32.s32 %v4381_v46  ;;  %v852_v44 = vsel %vm836_vm1, %v756_v15, %v628_v5  ;;  %v868_v59 = vsel %vm836_vm1, %v628_v5, %v756_v15  ;;  %v567_v39 = vmul.f32 %v551_v41, %v4352_v18 }
 0x132   : > { %vm887_vm2 = vcmp.eq.s32.totalorder %v4362_v16, 2  ;;  %v521_v30 = vadd.f32 -0.19839334, %v505_v62  ;;  %v916_v51 = vsub.f32 0.0, %v852_v44  ;;  %v964_v19 = vsub.f32 0.0, %v868_v59 }
 0x133   : > { %v711_v61 = vmul.f32 %v695_v57, %v4352_v18  ;;  %v665_v14 = vadd.f32 -1.3886764, %v649_v53  ;;  %v583_v33 = vadd.f32 -166.66667, %v567_v39  ;;  %v427_v7 = vmul.f32 1.5703125, %v3001_v12  ;;  %vm903_vm10 = vmor %vm887_vm2, %vm823_vm0 }
 0x134   : > { %v537_v26 = vmul.f32 %v521_v30, %v4377_v37  ;;  %v4411_v3 = vadd.f32 %v365_v23, %v4259_v20  ;;  %v932_v40 = vsel %vm900_vm3, %v916_v51, %v852_v44  ;;  %v980_v45 = vsel %vm948_vm4, %v964_v19, %v868_v59  ;;  %vm951_vm11 = vmor %vm807_vm15, %vm887_vm2 }
 0x135   : > { %v727_v15 = vadd.f32 -500.0, %v711_v61  ;;  %v681_v38 = vmul.f32 %v665_v14, %v4377_v37  ;;  %999 = vst [vmem:[%s3982_s5] sm:$0xff] %v932_v40  ;;  %1015 = vst [vmem:[%s3982_s5 + $0x8] sm:$0xff] %v980_v45  ;;  %v599_v22 = vmul.f32 %v583_v33, %v4352_v18  ;;  %vm809_vm5 = vcmp.eq.s32.totalorder %v4394_v35, 1 }
 0x136   : > { %v553_v5 = vadd.f32 8.333329, %v537_v26  ;;  %v443_v60 = vsub.f32 %v4332_v48, %v427_v7  ;;  %v459_v41 = vmul.f32 0.0004838268, %v3001_v12  ;;  %v3122_v20 = vand.u32 2147483647, %v4381_v46 }
 0x137   : > { %v743_v62 = vmul.f32 %v727_v15, %v4352_v18  ;;  %v697_v53 = vadd.f32 41.666622, %v681_v38  ;;  %v3125_v23 = vcvt.s32.f32 %v3124_v28  ;;  %v615_v57 = vadd.f32 1000.0, %v599_v22 }
 0x138   : > { %v569_v44 = vmul.f32 %v553_v5, %v4377_v37  ;;  %vm825_vm6 = vcmp.eq.s32.totalorder %v4394_v35, 3  ;;  %v4425_v59 = vsub.f32 %v443_v60, %v459_v41  ;;  %vm889_vm7 = vcmp.eq.s32.totalorder %v4394_v35, 2 }
 0x139   : > { %v713_v39 = vmul.f32 %v697_v53, %v4377_v37  ;;  %v3126_v48 = vand.u32 2147483647, %v3125_v23  ;;  %v3127_v18 = vand.u32 2147483648, %v4381_v46  ;;  %v631_v12 = vmul.f32 %v615_v57, %v4335_v54  ;;  %v1154_v54 = vpop.permute.xlu1 %1153  ;;  %vm841_vm12 = vmor %vm809_vm5, %vm825_vm6 }
 0x13a   : > { %v759_v30 = vadd.f32 1000.0, %v743_v62  ;;  %v585_v51 = vadd.f32 -166.66667, %v569_v44  ;;  %v4433_v19 = vmul.f32 %v4425_v59, %v4425_v59  ;;  %vm4439_vm9 = vcmp.lt.f32.partialorder %v3122_v20, 8388608.0  ;;  %vm905_vm13 = vmor %vm889_vm7, %vm825_vm6 }
 0x13b   : > { %v729_v61 = vadd.f32 -500.0, %v713_v39  ;;  %v3128_v33 = vor.u32 %v3127_v18, %v3126_v48  ;;  %v4444_v26 = vmul.f32 0.63661975, %v4411_v3  ;;  %v1210_v20 = vmul.f32 %v4345_v1, %v1154_v54  ;;  %vm953_vm14 = vmor %vm809_vm5, %vm889_vm7 }
 0x13c   : > { %v855_v7 = vsel %vm839_vm8, %v759_v30, %v631_v12  ;;  %v871_v40 = vsel %vm839_vm8, %v631_v12, %v759_v30  ;;  %v601_v45 = vmul.f32 %v585_v51, %v4377_v37  ;;  %v507_v15 = vmul.f32 0.0027183115, %v4433_v19 }
 0x13d   : > { %v919_v38 = vsub.f32 0.0, %v855_v7  ;;  %v967_v22 = vsub.f32 0.0, %v871_v40  ;;  %v745_v5 = vmul.f32 %v729_v61, %v4377_v37  ;;  %v651_v60 = vmul.f32 0.024390448, %v4433_v19 }
 0x13e   : > { %v617_v41 = vadd.f32 1000.0, %v601_v45  ;;  %v523_v62 = vadd.f32 -0.19839334, %v507_v15  ;;  %v3129_v53 = vsel %vm4439_vm9, %v3128_v33, %v4381_v46  ;;  %v4464_v37 = vand.u32 3, %v2996_v32 }
 0x13f   : > { %v935_v23 = vsel %vm903_vm10, %v919_v38, %v855_v7  ;;  %v983_v57 = vsel %vm951_vm11, %v967_v22, %v871_v40  ;;  %v667_v44 = vadd.f32 -1.3886764, %v651_v60  ;;  %v761_v39 = vadd.f32 1000.0, %v745_v5 }
 0x140   : > { %1002 = vst [vmem:[%s3982_s5 + $0x30] sm:$0xff] %v935_v23  ;;  %1018 = vst [vmem:[%s3982_s5 + $0x38] sm:$0xff] %v983_v57  ;;  %v633_v16 = vmul.f32 %v617_v41, %v4370_v50  ;;  %v539_v48 = vmul.f32 %v523_v62, %v4433_v19  ;;  %v1273_v18 = vmul.f32 1.5703125, %v3129_v53  ;;  %v1305_v30 = vmul.f32 0.0004838268, %v3129_v53 }
 0x141   : > { %v683_v12 = vmul.f32 %v667_v44, %v4433_v19  ;;  %v3010_v9 = vand.u32 2147483647, %v4444_v26  ;;  %v3012_v32 = vcvt.f32.s32 %v4444_v26  ;;  %v3015_v15 = vand.u32 2147483648, %v4444_v26 }
 0x142   : > { %v857_v51 = vsel %vm841_vm12, %v761_v39, %v633_v16  ;;  %v873_v61 = vsel %vm841_vm12, %v633_v16, %v761_v39  ;;  %v555_v14 = vadd.f32 8.333329, %v539_v48  ;;  %v1289_v50 = vsub.f32 %v4366_v43, %v1273_v18  ;;  %v334_v16 = vpop.permute.xlu0 %333 }
 0x143   : > { %v921_v33 = vsub.f32 0.0, %v857_v51  ;;  %v969_v54 = vsub.f32 0.0, %v873_v61  ;;  %v699_v7 = vadd.f32 41.666622, %v683_v12  ;;  %v3013_v40 = vcvt.s32.f32 %v3012_v32 }
 0x144   : > { %v571_v45 = vmul.f32 %v555_v14, %v4433_v19  ;;  %v4489_v43 = vsub.f32 %v1289_v50, %v1305_v30  ;;  %v4493_v38 = vadd.f32 %v1210_v20, %v4329_v0  ;;  %vm811_vm15 = vcmp.eq.s32.totalorder %v4464_v37, 1 }
 0x145   : > { %v937_v22 = vsel %vm905_vm13, %v921_v33, %v857_v51  ;;  %v985_v5 = vsel %vm953_vm14, %v969_v54, %v873_v61  ;;  %v715_v60 = vmul.f32 %v699_v7, %v4433_v19  ;;  %v3014_v41 = vand.u32 2147483647, %v3013_v40  ;;  %v4527_v40 = vld [vmem:[%s6379_s1] ss:$0 sm:$0xff] }
 0x146   : > { %1004 = vst [vmem:[%s3982_s5 + $0x50] sm:$0xff] %v937_v22  ;;  %1020 = vst [vmem:[%s3982_s5 + $0x58] sm:$0xff] %v985_v5  ;;  %v587_v62 = vadd.f32 -166.66667, %v571_v45  ;;  %vm827_vm0 = vcmp.eq.s32.totalorder %v4464_v37, 3  ;;  %v4502_v35 = vmul.f32 %v4489_v43, %v4489_v43  ;;  %vm891_vm1 = vcmp.eq.s32.totalorder %v4464_v37, 2 }
 0x147   : > { %v731_v53 = vadd.f32 -500.0, %v715_v60  ;;  %v3016_v0 = vor.u32 %v3015_v15, %v3014_v41  ;;  %v4506_v20 = vmul.f32 0.63661975, %v4493_v38  ;;  %vm3011_vm2 = vcmp.lt.f32.partialorder %v3010_v9, 8388608.0  ;;  %vm843_vm3 = vmor %vm811_vm15, %vm827_vm0 }
 0x148   : > { %v603_v23 = vmul.f32 %v587_v62, %v4433_v19  ;;  %v1353_v57 = vmul.f32 0.0027183115, %v4502_v35  ;;  %v1497_v44 = vmul.f32 0.024390448, %v4502_v35  ;;  %v4514_v48 = vand.u32 3, %v3124_v28  ;;  %vm907_vm5 = vmor %vm891_vm1, %vm827_vm0 }
 0x149   : > { %v747_v39 = vmul.f32 %v731_v53, %v4433_v19  ;;  %v3017_v18 = vsel %vm3011_vm2, %v3016_v0, %v4444_v26  ;;  %v3132_v12 = vcvt.f32.s32 %v4506_v20  ;;  %v3130_v33 = vand.u32 2147483647, %v4506_v20  ;;  %vm955_vm6 = vmor %vm811_vm15, %vm891_vm1 }
 0x14a   : > { %v619_v30 = vadd.f32 1000.0, %v603_v23  ;;  %v1369_v51 = vadd.f32 -0.19839334, %v1353_v57  ;;  %v1513_v61 = vadd.f32 -1.3886764, %v1497_v44  ;;  %v429_v14 = vmul.f32 1.5703125, %v3017_v18 }
 0x14b   : > { %v763_v50 = vadd.f32 1000.0, %v747_v39  ;;  %v3133_v54 = vcvt.s32.f32 %v3132_v12  ;;  %v367_v9 = vmul.f32 %v4345_v1, %v334_v16  ;;  %v4531_v45 = vmul.f32 %v4527_v40, %v3827_v29  ;;  %v1162_v16 = vpop.permute.xlu1 %1161 }
 0x14c   : > { %v635_v19 = vmul.f32 %v619_v30, %v4425_v59  ;;  %v1385_v46 = vmul.f32 %v1369_v51, %v4502_v35  ;;  %v1529_v28 = vmul.f32 %v1513_v61, %v4502_v35  ;;  %v445_v7 = vsub.f32 %v4411_v3, %v429_v14 }
 0x14d   : > { %v461_v59 = vmul.f32 0.0004838268, %v3017_v18  ;;  %v3134_v15 = vand.u32 2147483647, %v3133_v54  ;;  %v3135_v22 = vand.u32 2147483648, %v4506_v20  ;;  %vm1657_vm4 = vcmp.eq.s32.totalorder %v4514_v48, 1 }
 0x14e   : > { %v859_v5 = vsel %vm843_vm3, %v763_v50, %v635_v19  ;;  %v875_v3 = vsel %vm843_vm3, %v635_v19, %v763_v50  ;;  %v1401_v60 = vadd.f32 8.333329, %v1385_v46  ;;  %v1545_v41 = vadd.f32 41.666622, %v1529_v28 }
 0x14f   : > { %v923_v29 = vsub.f32 0.0, %v859_v5  ;;  %v971_v62 = vsub.f32 0.0, %v875_v3  ;;  %v4543_v53 = vsub.f32 %v445_v7, %v461_v59  ;;  %v3136_v0 = vor.u32 %v3135_v22, %v3134_v15 }
 0x150   : > { %v1417_v23 = vmul.f32 %v1401_v60, %v4502_v35  ;;  %v1561_v57 = vmul.f32 %v1545_v41, %v4502_v35  ;;  %vm3131_vm7 = vcmp.lt.f32.partialorder %v3130_v33, 8388608.0  ;;  %v4552_v44 = vadd.f32 %v367_v9, %v4272_v42 }
 0x151   : > { %v939_v39 = vsel %vm907_vm5, %v923_v29, %v859_v5  ;;  %v987_v18 = vsel %vm955_vm6, %v971_v62, %v875_v3  ;;  %v4556_v30 = vmul.f32 %v4543_v53, %v4543_v53  ;;  %v3137_v51 = vsel %vm3131_vm7, %v3136_v0, %v4506_v20 }
 0x152   : > { %1006 = vst [vmem:[%s3982_s5 + $0x70] sm:$0xff] %v939_v39  ;;  %1022 = vst [vmem:[%s3982_s5 + $0x78] sm:$0xff] %v987_v18  ;;  %v1433_v37 = vadd.f32 -166.66667, %v1417_v23  ;;  %v1577_v61 = vadd.f32 -500.0, %v1561_v57  ;;  %vm1673_vm8 = vcmp.eq.s32.totalorder %v4514_v48, 3  ;;  %v1212_v54 = vmul.f32 %v4345_v1, %v1162_v16 }
 0x153   : > { %v1274_v14 = vmul.f32 1.5703125, %v3137_v51  ;;  %v509_v50 = vmul.f32 0.0027183115, %v4556_v30  ;;  %v653_v42 = vmul.f32 0.024390448, %v4556_v30  ;;  %v4573_v59 = vand.u32 3, %v3012_v32  ;;  %vm1689_vm10 = vmor %vm1657_vm4, %vm1673_vm8 }
 0x154   : > { %v1306_v33 = vmul.f32 0.0004838268, %v3137_v51  ;;  %v1449_v9 = vmul.f32 %v1433_v37, %v4502_v35  ;;  %v1593_v19 = vmul.f32 %v1577_v61, %v4502_v35  ;;  %v4569_v46 = vmul.f32 0.63661975, %v4552_v44 }
 0x155   : > { %v1290_v20 = vsub.f32 %v4493_v38, %v1274_v14  ;;  %v525_v28 = vadd.f32 -0.19839334, %v509_v50  ;;  %v669_v7 = vadd.f32 -1.3886764, %v653_v42  ;;  %v4576_v15 = vadd.f32 %v1212_v54, %v4317_v17 }
 0x156   : > { %v1465_v22 = vadd.f32 1000.0, %v1449_v9  ;;  %vm1737_vm9 = vcmp.eq.s32.totalorder %v4514_v48, 2  ;;  %v4581_v35 = vand.u32 3, %v3132_v12  ;;  %v1609_v38 = vadd.f32 1000.0, %v1593_v19 }
 0x157   : > { %v4579_v5 = vsub.f32 %v1290_v20, %v1306_v33  ;;  %v541_v3 = vmul.f32 %v525_v28, %v4556_v30  ;;  %v685_v60 = vmul.f32 %v669_v7, %v4556_v30  ;;  %v3028_v41 = vcvt.f32.s32 %v4569_v46  ;;  %vm1753_vm12 = vmor %vm1737_vm9, %vm1673_vm8 }
 0x158   : > { %v1481_v26 = vmul.f32 %v1465_v22, %v4489_v43  ;;  %v3026_v32 = vand.u32 2147483647, %v4569_v46  ;;  %v3031_v29 = vand.u32 2147483648, %v4569_v46  ;;  %vm813_vm11 = vcmp.eq.s32.totalorder %v4573_v59, 1  ;;  %vm1801_vm13 = vmor %vm1657_vm4, %vm1737_vm9 }
 0x159   : > { %v4589_v17 = vmul.f32 %v4579_v5, %v4579_v5  ;;  %v557_v12 = vadd.f32 8.333329, %v541_v3  ;;  %v701_v62 = vadd.f32 41.666622, %v685_v60  ;;  %v3029_v43 = vcvt.s32.f32 %v3028_v41 }
 0x15a   : > { %v4601_v0 = vmul.f32 0.63661975, %v4576_v15  ;;  %v1705_v23 = vsel %vm1689_vm10, %v1609_v38, %v1481_v26  ;;  %v1721_v57 = vsel %vm1689_vm10, %v1481_v26, %v1609_v38  ;;  %v4613_v14 = vmul.f32 %v4527_v40, %v3840_v2  ;;  %v342_v38 = vpop.permute.xlu0 %341 }
 0x15b   : > { %v1354_v16 = vmul.f32 0.0027183115, %v4589_v17  ;;  %v1498_v39 = vmul.f32 0.024390448, %v4589_v17  ;;  %v1769_v18 = vsub.f32 0.0, %v1705_v23  ;;  %v1817_v51 = vsub.f32 0.0, %v1721_v57 }
 0x15c   : > { %v573_v37 = vmul.f32 %v557_v12, %v4556_v30  ;;  %v717_v61 = vmul.f32 %v701_v62, %v4556_v30  ;;  %v3030_v33 = vand.u32 2147483647, %v3029_v43  ;;  %v3148_v22 = vcvt.f32.s32 %v4601_v0 }
 0x15d   : > { %v1370_v50 = vadd.f32 -0.19839334, %v1354_v16  ;;  %v1514_v42 = vadd.f32 -1.3886764, %v1498_v39  ;;  %v1785_v54 = vsel %vm1753_vm12, %v1769_v18, %v1705_v23  ;;  %v1833_v9 = vsel %vm1801_vm13, %v1817_v51, %v1721_v57 }
 0x15e   : > { %v589_v19 = vadd.f32 -166.66667, %v573_v37  ;;  %v733_v20 = vadd.f32 -500.0, %v717_v61  ;;  %2845 = vst [vmem:[%s3982_s5 + $0x110] sm:$0xff] %v1785_v54  ;;  %2861 = vst [vmem:[%s3982_s5 + $0x118] sm:$0xff] %v1833_v9  ;;  %v3032_v2 = vor.u32 %v3031_v29, %v3030_v33  ;;  %vm829_vm14 = vcmp.eq.s32.totalorder %v4573_v59, 3 }
 0x15f   : > { %v1386_v28 = vmul.f32 %v1370_v50, %v4589_v17  ;;  %v1530_v7 = vmul.f32 %v1514_v42, %v4589_v17  ;;  %vm3027_vm15 = vcmp.lt.f32.partialorder %v3026_v32, 8388608.0  ;;  %vm893_vm0 = vcmp.eq.s32.totalorder %v4573_v59, 2  ;;  %vm845_vm2 = vmor %vm813_vm11, %vm829_vm14 }
 0x160   : > { %v605_v48 = vmul.f32 %v589_v19, %v4556_v30  ;;  %v749_v3 = vmul.f32 %v733_v20, %v4556_v30  ;;  %v3033_v12 = vsel %vm3027_vm15, %v3032_v2, %v4569_v46  ;;  %vm1658_vm1 = vcmp.eq.s32.totalorder %v4581_v35, 1  ;;  %vm909_vm3 = vmor %vm893_vm0, %vm829_vm14 }
 0x161   : > { %v1402_v60 = vadd.f32 8.333329, %v1386_v28  ;;  %v1546_v26 = vadd.f32 41.666622, %v1530_v7  ;;  %v431_v29 = vmul.f32 1.5703125, %v3033_v12  ;;  %v369_v43 = vmul.f32 %v4345_v1, %v342_v38  ;;  %vm957_vm4 = vmor %vm813_vm11, %vm893_vm0 }
 0x162   : > { %v621_v62 = vadd.f32 1000.0, %v605_v48  ;;  %v3146_v30 = vand.u32 2147483647, %v4601_v0  ;;  %v3149_v32 = vcvt.s32.f32 %v3148_v22  ;;  %v765_v39 = vadd.f32 1000.0, %v749_v3 }
 0x163   : > { %v1418_v23 = vmul.f32 %v1402_v60, %v4589_v17  ;;  %v1562_v57 = vmul.f32 %v1546_v26, %v4589_v17  ;;  %v447_v18 = vsub.f32 %v4552_v44, %v431_v29  ;;  %v463_v51 = vmul.f32 0.0004838268, %v3033_v12  ;;  %v1170_v26 = vpop.permute.xlu1 %1169 }
 0x164   : > { %v637_v16 = vmul.f32 %v621_v62, %v4543_v53  ;;  %v3150_v50 = vand.u32 2147483647, %v3149_v32  ;;  %v3151_v42 = vand.u32 2147483648, %v4601_v0  ;;  %v4646_v53 = vadd.f32 %v369_v43, %v4289_v36 }
 0x165   : > { %v1434_v37 = vadd.f32 -166.66667, %v1418_v23  ;;  %v1578_v61 = vadd.f32 -500.0, %v1562_v57  ;;  %v4643_v9 = vsub.f32 %v447_v18, %v463_v51  ;;  %vm1674_vm5 = vcmp.eq.s32.totalorder %v4581_v35, 3 }
 0x166   : > { %v861_v33 = vsel %vm845_vm2, %v765_v39, %v637_v16  ;;  %v877_v54 = vsel %vm845_vm2, %v637_v16, %v765_v39  ;;  %vm1738_vm6 = vcmp.eq.s32.totalorder %v4581_v35, 2  ;;  %v3152_v7 = vor.u32 %v3151_v42, %v3150_v50  ;;  %vm1690_vm8 = vmor %vm1658_vm1, %vm1674_vm5 }
 0x167   : > { %v925_v44 = vsub.f32 0.0, %v861_v33  ;;  %v973_v19 = vsub.f32 0.0, %v877_v54  ;;  %v1450_v20 = vmul.f32 %v1434_v37, %v4589_v17  ;;  %v1594_v28 = vmul.f32 %v1578_v61, %v4589_v17  ;;  %vm1754_vm9 = vmor %vm1738_vm6, %vm1674_vm5 }
 0x168   : > { %v4662_v36 = vmul.f32 %v4643_v9, %v4643_v9  ;;  %vm3147_vm7 = vcmp.lt.f32.partialorder %v3146_v30, 8388608.0  ;;  %v4670_v60 = vmul.f32 0.63661975, %v4646_v53  ;;  %v4675_v29 = vand.u32 3, %v3028_v41  ;;  %vm1802_vm10 = vmor %vm1658_vm1, %vm1738_vm6 }
 0x169   : > { %v941_v2 = vsel %vm909_vm3, %v925_v44, %v861_v33  ;;  %v989_v38 = vsel %vm957_vm4, %v973_v19, %v877_v54  ;;  %v1466_v48 = vadd.f32 1000.0, %v1450_v20  ;;  %v3153_v3 = vsel %vm3147_vm7, %v3152_v7, %v4601_v0 }
 0x16a   : > { %1008 = vst [vmem:[%s3982_s5 + $0x90] sm:$0xff] %v941_v2  ;;  %1024 = vst [vmem:[%s3982_s5 + $0x98] sm:$0xff] %v989_v38  ;;  %v511_v17 = vmul.f32 0.0027183115, %v4662_v36  ;;  %v655_v59 = vmul.f32 0.024390448, %v4662_v36  ;;  %v3044_v32 = vcvt.f32.s32 %v4670_v60  ;;  %v1214_v18 = vmul.f32 %v4345_v1, %v1170_v26 }
 0x16b   : > { %v1482_v12 = vmul.f32 %v1466_v48, %v4579_v5  ;;  %v1610_v62 = vadd.f32 1000.0, %v1594_v28  ;;  %v1276_v43 = vmul.f32 1.5703125, %v3153_v3  ;;  %v1308_v30 = vmul.f32 0.0004838268, %v3153_v3 }
 0x16c   : > { %v527_v23 = vadd.f32 -0.19839334, %v511_v17  ;;  %v671_v57 = vadd.f32 -1.3886764, %v655_v59  ;;  %v4692_v61 = vmul.f32 %v4527_v40, %v3865_v52  ;;  %v3042_v50 = vand.u32 2147483647, %v4670_v60  ;;  %v350_v59 = vpop.permute.xlu0 %349 }
 0x16d   : > { %v1706_v16 = vsel %vm1690_vm8, %v1610_v62, %v1482_v12  ;;  %v1722_v39 = vsel %vm1690_vm8, %v1482_v12, %v1610_v62  ;;  %v1292_v5 = vsub.f32 %v4576_v15, %v1276_v43  ;;  %v3045_v42 = vcvt.s32.f32 %v3044_v32 }
 0x16e   : > { %v1770_v46 = vsub.f32 0.0, %v1706_v16  ;;  %v1818_v41 = vsub.f32 0.0, %v1722_v39  ;;  %v543_v51 = vmul.f32 %v527_v23, %v4662_v36  ;;  %v687_v37 = vmul.f32 %v671_v57, %v4662_v36 }
 0x16f   : > { %v4698_v15 = vsub.f32 %v1292_v5, %v1308_v30  ;;  %v4705_v52 = vmul.f32 %v4527_v40, %v3889_v11  ;;  %v3046_v20 = vand.u32 2147483647, %v3045_v42  ;;  %v3047_v28 = vand.u32 2147483648, %v4670_v60  ;;  %v1178_v5 = vpop.permute.xlu1 %1177 }
 0x170   : > { %v1786_v33 = vsel %vm1754_vm9, %v1770_v46, %v1706_v16  ;;  %v1834_v54 = vsel %vm1802_vm10, %v1818_v41, %v1722_v39  ;;  %v559_v44 = vadd.f32 8.333329, %v543_v51  ;;  %v703_v19 = vadd.f32 41.666622, %v687_v37 }
 0x171   : > { %2846 = vst [vmem:[%s3982_s5 + $0x120] sm:$0xff] %v1786_v33  ;;  %2862 = vst [vmem:[%s3982_s5 + $0x128] sm:$0xff] %v1834_v54  ;;  %v4711_v35 = vmul.f32 %v4698_v15, %v4698_v15  ;;  %vm815_vm11 = vcmp.eq.s32.totalorder %v4675_v29, 1  ;;  %v4718_v38 = vadd.f32 %v1214_v18, %v4325_v63  ;;  %vm831_vm12 = vcmp.eq.s32.totalorder %v4675_v29, 3 }
 0x172   : > { %v575_v7 = vmul.f32 %v559_v44, %v4662_v36  ;;  %v719_v2 = vmul.f32 %v703_v19, %v4662_v36  ;;  %v3048_v17 = vor.u32 %v3047_v28, %v3046_v20  ;;  %vm3043_vm13 = vcmp.lt.f32.partialorder %v3042_v50, 8388608.0  ;;  %vm847_vm0 = vmor %vm815_vm11, %vm831_vm12 }
 0x173   : > { %v1356_v11 = vmul.f32 0.0027183115, %v4711_v35  ;;  %v1500_v48 = vmul.f32 0.024390448, %v4711_v35  ;;  %v4724_v12 = vmul.f32 0.63661975, %v4718_v38  ;;  %v371_v39 = vmul.f32 %v4345_v1, %v350_v59 }
 0x174   : > { %v591_v3 = vadd.f32 -166.66667, %v575_v7  ;;  %v735_v26 = vadd.f32 -500.0, %v719_v2  ;;  %v4728_v63 = vand.u32 3, %v3148_v22  ;;  %v3049_v23 = vsel %vm3043_vm13, %v3048_v17, %v4670_v60 }
 0x175   : > { %v1372_v62 = vadd.f32 -0.19839334, %v1356_v11  ;;  %v1516_v43 = vadd.f32 -1.3886764, %v1500_v48  ;;  %v433_v16 = vmul.f32 1.5703125, %v3049_v23  ;;  %vm895_vm14 = vcmp.eq.s32.totalorder %v4675_v29, 2 }
 0x176   : > { %v607_v57 = vmul.f32 %v591_v3, %v4662_v36  ;;  %v751_v30 = vmul.f32 %v735_v26, %v4662_v36  ;;  %v3164_v0 = vcvt.f32.s32 %v4724_v12  ;;  %v465_v51 = vmul.f32 0.0004838268, %v3049_v23  ;;  %vm911_vm2 = vmor %vm895_vm14, %vm831_vm12 }
 0x177   : > { %v1388_v18 = vmul.f32 %v1372_v62, %v4711_v35  ;;  %v1532_v46 = vmul.f32 %v1516_v43, %v4711_v35  ;;  %v449_v41 = vsub.f32 %v4646_v53, %v433_v16  ;;  %v3162_v37 = vand.u32 2147483647, %v4724_v12  ;;  %vm959_vm3 = vmor %vm815_vm11, %vm895_vm14 }
 0x178   : > { %v623_v22 = vadd.f32 1000.0, %v607_v57  ;;  %vm1660_vm15 = vcmp.eq.s32.totalorder %v4728_v63, 1  ;;  %v3165_v42 = vcvt.s32.f32 %v3164_v0  ;;  %v1216_v33 = vmul.f32 %v4345_v1, %v1178_v5 }
 0x179   : > { %v1404_v50 = vadd.f32 8.333329, %v1388_v18  ;;  %v1548_v36 = vadd.f32 41.666622, %v1532_v46  ;;  %v767_v44 = vadd.f32 1000.0, %v751_v30  ;;  %v4745_v19 = vsub.f32 %v449_v41, %v465_v51 }
 0x17a   : > { %v639_v54 = vmul.f32 %v623_v22, %v4643_v9  ;;  %v4748_v20 = vadd.f32 %v371_v39, %v4293_v56  ;;  %v3166_v7 = vand.u32 2147483647, %v3165_v42  ;;  %v3167_v2 = vand.u32 2147483648, %v4724_v12 }
 0x17b   : > { %v1420_v53 = vmul.f32 %v1404_v50, %v4711_v35  ;;  %v1564_v28 = vmul.f32 %v1548_v36, %v4711_v35  ;;  %v4759_v48 = vmul.f32 %v4745_v19, %v4745_v19  ;;  %vm4761_vm1 = vcmp.lt.f32.partialorder %v3162_v37, 8388608.0 }
 0x17c   : > { %v863_v11 = vsel %vm847_vm0, %v767_v44, %v639_v54  ;;  %v879_v9 = vsel %vm847_vm0, %v639_v54, %v767_v44  ;;  %v3168_v23 = vor.u32 %v3167_v2, %v3166_v7  ;;  %v4776_v57 = vmul.f32 0.63661975, %v4748_v20 }
 0x17d   : > { %v927_v17 = vsub.f32 0.0, %v863_v11  ;;  %v975_v59 = vsub.f32 0.0, %v879_v9  ;;  %v1436_v3 = vadd.f32 -166.66667, %v1420_v53  ;;  %v1580_v26 = vadd.f32 -500.0, %v1564_v28 }
 0x17e   : > { %v513_v62 = vmul.f32 0.0027183115, %v4759_v48  ;;  %v657_v43 = vmul.f32 0.024390448, %v4759_v48  ;;  %vm1676_vm4 = vcmp.eq.s32.totalorder %v4728_v63, 3  ;;  %v3169_v46 = vsel %vm4761_vm1, %v3168_v23, %v4724_v12  ;;  %v1146_v12 = vpop.permute.xlu0 %1145 }
 0x17f   : > { %v943_v30 = vsel %vm911_vm2, %v927_v17, %v863_v11  ;;  %v991_v16 = vsel %vm959_vm3, %v975_v59, %v879_v9  ;;  %v1452_v39 = vmul.f32 %v1436_v3, %v4711_v35  ;;  %v1596_v5 = vmul.f32 %v1580_v26, %v4711_v35  ;;  %vm1692_vm6 = vmor %vm1660_vm15, %vm1676_vm4 }
 0x180   : > { %1010 = vst [vmem:[%s3982_s5 + $0xb0] sm:$0xff] %v943_v30  ;;  %1026 = vst [vmem:[%s3982_s5 + $0xb8] sm:$0xff] %v991_v16  ;;  %v529_v29 = vadd.f32 -0.19839334, %v513_v62  ;;  %v673_v18 = vadd.f32 -1.3886764, %v657_v43  ;;  %v4788_v51 = vadd.f32 %v1216_v33, %v4531_v45  ;;  %v3060_v36 = vcvt.f32.s32 %v4776_v57 }
 0x181   : > { %v1468_v22 = vadd.f32 1000.0, %v1452_v39  ;;  %vm1740_vm5 = vcmp.eq.s32.totalorder %v4728_v63, 2  ;;  %v1278_v41 = vmul.f32 1.5703125, %v3169_v46  ;;  %v4794_v50 = vand.u32 3, %v3044_v32 }
 0x182   : > { %v545_v37 = vmul.f32 %v529_v29, %v4759_v48  ;;  %v689_v35 = vmul.f32 %v673_v18, %v4759_v48  ;;  %v1612_v54 = vadd.f32 1000.0, %v1596_v5  ;;  %v1310_v53 = vmul.f32 0.0004838268, %v3169_v46  ;;  %vm1756_vm7 = vmor %vm1740_vm5, %vm1676_vm4 }
 0x183   : > { %v1484_v42 = vmul.f32 %v1468_v22, %v4698_v15  ;;  %v1294_v44 = vsub.f32 %v4718_v38, %v1278_v41  ;;  %v3058_v28 = vand.u32 2147483647, %v4776_v57  ;;  %v3061_v60 = vcvt.s32.f32 %v3060_v36  ;;  %vm1804_vm8 = vmor %vm1660_vm15, %vm1740_vm5 }
 0x184   : > { %v561_v45 = vadd.f32 8.333329, %v545_v37  ;;  %v705_v33 = vadd.f32 41.666622, %v689_v35  ;;  %v4809_v15 = vmul.f32 0.63661975, %v4788_v51 }
 0x185   : > { %v1708_v32 = vsel %vm1692_vm6, %v1612_v54, %v1484_v42  ;;  %v1724_v7 = vsel %vm1692_vm6, %v1484_v42, %v1612_v54  ;;  %v4806_v2 = vsub.f32 %v1294_v44, %v1310_v53  ;;  %vm817_vm9 = vcmp.eq.s32.totalorder %v4794_v50, 1 }
 0x186   : > { %v1772_v38 = vsub.f32 0.0, %v1708_v32  ;;  %v1820_v11 = vsub.f32 0.0, %v1724_v7  ;;  %v577_v9 = vmul.f32 %v561_v45, %v4759_v48  ;;  %v721_v56 = vmul.f32 %v705_v33, %v4759_v48 }
 0x187   : > { %v4824_v17 = vmul.f32 %v4806_v2, %v4806_v2  ;;  %v3062_v59 = vand.u32 2147483647, %v3061_v60  ;;  %v3063_v3 = vand.u32 2147483648, %v4776_v57  ;;  %vm833_vm10 = vcmp.eq.s32.totalorder %v4794_v50, 3 }
 0x188   : > { %v1788_v26 = vsel %vm1756_vm7, %v1772_v38, %v1708_v32  ;;  %v1836_v62 = vsel %vm1804_vm8, %v1820_v11, %v1724_v7  ;;  %v593_v43 = vadd.f32 -166.66667, %v577_v9  ;;  %v737_v23 = vadd.f32 -500.0, %v721_v56  ;;  %vm849_vm13 = vmor %vm817_vm9, %vm833_vm10 }
 0x189   : > { %2848 = vst [vmem:[%s3982_s5 + $0x140] sm:$0xff] %v1788_v26  ;;  %2864 = vst [vmem:[%s3982_s5 + $0x148] sm:$0xff] %v1836_v62  ;;  %v1358_v63 = vmul.f32 0.0027183115, %v4824_v17  ;;  %v1502_v30 = vmul.f32 0.024390448, %v4824_v17  ;;  %v3064_v16 = vor.u32 %v3063_v3, %v3062_v59  ;;  %v3180_v29 = vcvt.f32.s32 %v4809_v15 }
 0x18a   : > { %v609_v39 = vmul.f32 %v593_v43, %v4759_v48  ;;  %v753_v5 = vmul.f32 %v737_v23, %v4759_v48  ;;  %vm3059_vm11 = vcmp.lt.f32.partialorder %v3058_v28, 8388608.0  ;;  %v4837_v22 = vand.u32 3, %v3164_v0 }
 0x18b   : > { %v1374_v18 = vadd.f32 -0.19839334, %v1358_v63  ;;  %v1518_v46 = vadd.f32 -1.3886764, %v1502_v30  ;;  %v3065_v41 = vsel %vm3059_vm11, %v3064_v16, %v4776_v57  ;;  %vm897_vm12 = vcmp.eq.s32.totalorder %v4794_v50, 2 }
 0x18c   : > { %v625_v37 = vadd.f32 1000.0, %v609_v39  ;;  %v435_v35 = vmul.f32 1.5703125, %v3065_v41  ;;  %v3178_v42 = vand.u32 2147483647, %v4809_v15  ;;  %v3181_v44 = vcvt.s32.f32 %v3180_v29  ;;  %vm913_vm0 = vmor %vm897_vm12, %vm833_vm10 }
 0x18d   : > { %v1390_v54 = vmul.f32 %v1374_v18, %v4824_v17  ;;  %v1534_v48 = vmul.f32 %v1518_v46, %v4824_v17  ;;  %v3183_v53 = vand.u32 2147483648, %v4809_v15  ;;  %v769_v45 = vadd.f32 1000.0, %v753_v5  ;;  %vm961_vm1 = vmor %vm817_vm9, %vm897_vm12 }
 0x18e   : > { %v641_v0 = vmul.f32 %v625_v37, %v4745_v19  ;;  %v451_v33 = vsub.f32 %v4748_v20, %v435_v35  ;;  %v467_v28 = vmul.f32 0.0004838268, %v3065_v41  ;;  %v1128_v60 = vmul.f32 %v4527_v40, %v4062_v10  ;;  %v1186_v19 = vpop.permute.xlu1 %1185 }
 0x18f   : > { %v1406_v32 = vadd.f32 8.333329, %v1390_v54  ;;  %v1550_v7 = vadd.f32 41.666622, %v1534_v48  ;;  %vm1662_vm14 = vcmp.eq.s32.totalorder %v4837_v22, 1  ;;  %vm1678_vm15 = vcmp.eq.s32.totalorder %v4837_v22, 3 }
 0x190   : > { %v3182_v38 = vand.u32 2147483647, %v3181_v44  ;;  %v865_v11 = vsel %vm849_vm13, %v769_v45, %v641_v0  ;;  %v881_v9 = vsel %vm849_vm13, %v641_v0, %v769_v45  ;;  %v4857_v20 = vsub.f32 %v451_v33, %v467_v28  ;;  %vm1694_vm4 = vmor %vm1662_vm14, %vm1678_vm15 }
 0x191   : > { %v1208_v10 = vmul.f32 %v4345_v1, %v1146_v12  ;;  %v929_v56 = vsub.f32 0.0, %v865_v11  ;;  %v977_v59 = vsub.f32 0.0, %v881_v9  ;;  %v1422_v3 = vmul.f32 %v1406_v32, %v4824_v17 }
 0x192   : > { %v1566_v26 = vmul.f32 %v1550_v7, %v4824_v17  ;;  %v4872_v62 = vmul.f32 %v4857_v20, %v4857_v20  ;;  %vm3179_vm2 = vcmp.lt.f32.partialorder %v3178_v42, 8388608.0  ;;  %v3184_v43 = vor.u32 %v3183_v53, %v3182_v38 }
 0x193   : > { %v1218_v23 = vmul.f32 %v4345_v1, %v1186_v19  ;;  %v945_v63 = vsel %vm913_vm0, %v929_v56, %v865_v11  ;;  %v993_v30 = vsel %vm961_vm1, %v977_v59, %v881_v9  ;;  %v1438_v16 = vadd.f32 -166.66667, %v1422_v3 }
 0x194   : > { %v1582_v39 = vadd.f32 -500.0, %v1566_v26  ;;  %1012 = vst [vmem:[%s3982_s5 + $0xd0] sm:$0xff] %v945_v63  ;;  %1028 = vst [vmem:[%s3982_s5 + $0xd8] sm:$0xff] %v993_v30  ;;  %v515_v5 = vmul.f32 0.0027183115, %v4872_v62  ;;  %v3185_v50 = vsel %vm3179_vm2, %v3184_v43, %v4809_v15  ;;  %v4880_v46 = vadd.f32 %v1208_v10, %v1128_v60 }
 0x195   : > { %v659_v18 = vmul.f32 0.024390448, %v4872_v62  ;;  %v1454_v41 = vmul.f32 %v1438_v16, %v4824_v17  ;;  %v4886_v1 = vand.u32 3, %v3060_v36  ;;  %v1280_v35 = vmul.f32 1.5703125, %v3185_v50 }
 0x196   : > { %v1598_v37 = vmul.f32 %v1582_v39, %v4824_v17  ;;  %v4890_v42 = vmul.f32 %v4527_v40, %v4100_v8  ;;  %v531_v54 = vadd.f32 -0.19839334, %v515_v5  ;;  %v4893_v44 = vmul.f32 0.63661975, %v4880_v46 }
 0x197   : > { %v675_v48 = vadd.f32 -1.3886764, %v659_v18  ;;  %v1470_v53 = vadd.f32 1000.0, %v1454_v41  ;;  %v1296_v12 = vsub.f32 %v4788_v51, %v1280_v35  ;;  %v1312_v0 = vmul.f32 0.0004838268, %v3185_v50  ;;  %v1158_v50 = vpop.permute.xlu0 %1157 }
 0x198   : > { %v4897_v17 = vadd.f32 %v1218_v23, %v4613_v14  ;;  %vm1742_vm3 = vcmp.eq.s32.totalorder %v4837_v22, 2  ;;  %v547_v57 = vmul.f32 %v531_v54, %v4872_v62  ;;  %v3116_v8 = vcvt.f32.s32 %v4893_v44 }
 0x199   : > { %v691_v36 = vmul.f32 %v675_v48, %v4872_v62  ;;  %v1486_v45 = vmul.f32 %v1470_v53, %v4806_v2  ;;  %v1614_v33 = vadd.f32 1000.0, %v1598_v37  ;;  %v4904_v28 = vsub.f32 %v1296_v12, %v1312_v0  ;;  %vm1758_vm6 = vmor %vm1742_vm3, %vm1678_vm15 }
 0x19a   : > { %v3114_v60 = vand.u32 2147483647, %v4893_v44  ;;  %v563_v14 = vadd.f32 8.333329, %v547_v57  ;;  %vm819_vm5 = vcmp.eq.s32.totalorder %v4886_v1, 1  ;;  %v3117_v32 = vcvt.s32.f32 %v3116_v8  ;;  %vm1806_vm7 = vmor %vm1662_vm14, %vm1742_vm3 }
 0x19b   : > { %v707_v51 = vadd.f32 41.666622, %v691_v36  ;;  %v3119_v7 = vand.u32 2147483648, %v4893_v44  ;;  %v1710_v2 = vsel %vm1694_vm4, %v1614_v33, %v1486_v45  ;;  %v1726_v38 = vsel %vm1694_vm4, %v1486_v45, %v1614_v33 }
 0x19c   : > { %v4917_v19 = vmul.f32 %v4904_v28, %v4904_v28  ;;  %v4920_v11 = vmul.f32 0.63661975, %v4897_v17  ;;  %v1774_v9 = vsub.f32 0.0, %v1710_v2  ;;  %v1822_v10 = vsub.f32 0.0, %v1726_v38 }
 0x19d   : > { %v579_v56 = vmul.f32 %v563_v14, %v4872_v62  ;;  %v723_v59 = vmul.f32 %v707_v51, %v4872_v62  ;;  %v4930_v3 = vmul.f32 %v4527_v40, %v4121_v49  ;;  %v3118_v23 = vand.u32 2147483647, %v3117_v32 }
 0x19e   : > { %v1360_v26 = vmul.f32 0.0027183115, %v4917_v19  ;;  %v1504_v43 = vmul.f32 0.024390448, %v4917_v19  ;;  %v1790_v63 = vsel %vm1758_vm6, %v1774_v9, %v1710_v2  ;;  %v1838_v30 = vsel %vm1806_vm7, %v1822_v10, %v1726_v38 }
 0x19f   : > { %v595_v16 = vadd.f32 -166.66667, %v579_v56  ;;  %v739_v39 = vadd.f32 -500.0, %v723_v59  ;;  %2850 = vst [vmem:[%s3982_s5 + $0x160] sm:$0xff] %v1790_v63  ;;  %2866 = vst [vmem:[%s3982_s5 + $0x168] sm:$0xff] %v1838_v30  ;;  %v3120_v49 = vor.u32 %v3119_v7, %v3118_v23  ;;  %v3196_v40 = vcvt.f32.s32 %v4920_v11 }
 0x1a0   : > { %v1376_v5 = vadd.f32 -0.19839334, %v1360_v26  ;;  %v1520_v18 = vadd.f32 -1.3886764, %v1504_v43  ;;  %vm835_vm8 = vcmp.eq.s32.totalorder %v4886_v1, 3  ;;  %vm3115_vm9 = vcmp.lt.f32.partialorder %v3114_v60, 8388608.0 }
 0x1a1   : > { %v611_v22 = vmul.f32 %v595_v16, %v4872_v62  ;;  %v755_v41 = vmul.f32 %v739_v39, %v4872_v62  ;;  %vm899_vm10 = vcmp.eq.s32.totalorder %v4886_v1, 2  ;;  %v3121_v54 = vsel %vm3115_vm9, %v3120_v49, %v4893_v44  ;;  %v4955_v62 = vld [vmem:[%s6379_s1 + $0x1] ss:$0 sm:$0xff]  ;;  %vm851_vm11 = vmor %vm819_vm5, %vm835_vm8 }
 0x1a2   : > { %v1392_v37 = vmul.f32 %v1376_v5, %v4917_v19  ;;  %v1536_v35 = vmul.f32 %v1520_v18, %v4917_v19  ;;  %v4950_v53 = vand.u32 3, %v3180_v29  ;;  %v1272_v12 = vmul.f32 1.5703125, %v3121_v54  ;;  %vm915_vm12 = vmor %vm899_vm10, %vm835_vm8 }
 0x1a3   : > { %v627_v48 = vadd.f32 1000.0, %v611_v22  ;;  %v1211_v0 = vmul.f32 %v4955_v62, %v1158_v50  ;;  %v3194_v45 = vand.u32 2147483647, %v4920_v11  ;;  %v3197_v33 = vcvt.s32.f32 %v3196_v40  ;;  %vm963_vm13 = vmor %vm819_vm5, %vm899_vm10 }
 0x1a4   : > { %v1408_v57 = vadd.f32 8.333329, %v1392_v37  ;;  %v1552_v36 = vadd.f32 41.666622, %v1536_v35  ;;  %v771_v15 = vadd.f32 1000.0, %v755_v41  ;;  %v1288_v29 = vsub.f32 %v4880_v46, %v1272_v12  ;;  %v1194_v35 = vpop.permute.xlu1 %1193 }
 0x1a5   : > { %v643_v60 = vmul.f32 %v627_v48, %v4857_v20  ;;  %v1304_v14 = vmul.f32 0.0004838268, %v3121_v54  ;;  %v3198_v7 = vand.u32 2147483647, %v3197_v33  ;;  %v3199_v2 = vand.u32 2147483648, %v4920_v11 }
 0x1a6   : > { %v1424_v51 = vmul.f32 %v1408_v57, %v4917_v19  ;;  %v1568_v32 = vmul.f32 %v1552_v36, %v4917_v19  ;;  %v4973_v20 = vadd.f32 %v1211_v0, %v4890_v42  ;;  %vm1664_vm14 = vcmp.eq.s32.totalorder %v4950_v53, 1 }
 0x1a7   : > { %v867_v38 = vsel %vm851_vm11, %v771_v15, %v643_v60  ;;  %v883_v9 = vsel %vm851_vm11, %v643_v60, %v771_v15  ;;  %v4970_v10 = vsub.f32 %v1288_v29, %v1304_v14  ;;  %vm3195_vm15 = vcmp.lt.f32.partialorder %v3194_v45, 8388608.0 }
 0x1a8   : > { %v931_v46 = vsub.f32 0.0, %v867_v38  ;;  %v979_v56 = vsub.f32 0.0, %v883_v9  ;;  %v1440_v59 = vadd.f32 -166.66667, %v1424_v51  ;;  %v1584_v26 = vadd.f32 -500.0, %v1568_v32 }
 0x1a9   : > { %v4986_v42 = vmul.f32 %v4970_v10, %v4970_v10  ;;  %v3200_v43 = vor.u32 %v3199_v2, %v3198_v7  ;;  %v4996_v18 = vmul.f32 0.63661975, %v4973_v20  ;;  %vm1680_vm0 = vcmp.eq.s32.totalorder %v4950_v53, 3  ;;  %v1166_v2 = vpop.permute.xlu0 %1165 }
 0x1aa   : > { %v947_v23 = vsel %vm915_vm12, %v931_v46, %v867_v38  ;;  %v995_v63 = vsel %vm963_vm13, %v979_v56, %v883_v9  ;;  %v1456_v30 = vmul.f32 %v1440_v59, %v4917_v19  ;;  %v1600_v16 = vmul.f32 %v1584_v26, %v4917_v19  ;;  %vm1696_vm2 = vmor %vm1664_vm14, %vm1680_vm0 }
 0x1ab   : > { %1014 = vst [vmem:[%s3982_s5 + $0xf0] sm:$0xff] %v947_v23  ;;  %1030 = vst [vmem:[%s3982_s5 + $0xf8] sm:$0xff] %v995_v63  ;;  %v1352_v39 = vmul.f32 0.0027183115, %v4986_v42  ;;  %v1496_v1 = vmul.f32 0.024390448, %v4986_v42  ;;  %v3201_v5 = vsel %vm3195_vm15, %v3200_v43, %v4920_v11  ;;  %v3140_v37 = vcvt.f32.s32 %v4996_v18 }
 0x1ac   : > { %v1472_v49 = vadd.f32 1000.0, %v1456_v30  ;;  %vm1744_vm1 = vcmp.eq.s32.totalorder %v4950_v53, 2  ;;  %v1282_v50 = vmul.f32 1.5703125, %v3201_v5  ;;  %v5002_v19 = vand.u32 3, %v3116_v8 }
 0x1ad   : > { %v1368_v22 = vadd.f32 -0.19839334, %v1352_v39  ;;  %v1512_v41 = vadd.f32 -1.3886764, %v1496_v1  ;;  %v1616_v48 = vadd.f32 1000.0, %v1600_v16  ;;  %v3141_v36 = vcvt.s32.f32 %v3140_v37  ;;  %vm1760_vm3 = vmor %vm1744_vm1, %vm1680_vm0 }
 0x1ae   : > { %v1488_v54 = vmul.f32 %v1472_v49, %v4904_v28  ;;  %v1298_v12 = vsub.f32 %v4897_v17, %v1282_v50  ;;  %v1314_v0 = vmul.f32 0.0004838268, %v3201_v5  ;;  %v3138_v8 = vand.u32 2147483647, %v4996_v18  ;;  %vm1808_vm4 = vmor %vm1664_vm14, %vm1744_vm1 }
 0x1af   : > { %v1384_v57 = vmul.f32 %v1368_v22, %v4986_v42  ;;  %v1528_v44 = vmul.f32 %v1512_v41, %v4986_v42  ;;  %v1220_v17 = vmul.f32 %v4955_v62, %v1194_v35  ;;  %vm1656_vm5 = vcmp.eq.s32.totalorder %v5002_v19, 1  ;;  %v1202_v41 = vpop.permute.xlu1 %1201 }
 0x1b0   : > { %v1712_v45 = vsel %vm1696_vm2, %v1616_v48, %v1488_v54  ;;  %v1728_v28 = vsel %vm1696_vm2, %v1488_v54, %v1616_v48  ;;  %v5016_v33 = vsub.f32 %v1298_v12, %v1314_v0  ;;  %v3142_v32 = vand.u32 2147483647, %v3141_v36 }
 0x1b1   : > { %v1776_v60 = vsub.f32 0.0, %v1712_v45  ;;  %v1824_v15 = vsub.f32 0.0, %v1728_v28  ;;  %v1400_v29 = vadd.f32 8.333329, %v1384_v57  ;;  %v1544_v14 = vadd.f32 41.666622, %v1528_v44 }
 0x1b2   : > { %v5030_v51 = vmul.f32 %v5016_v33, %v5016_v33  ;;  %v3143_v7 = vand.u32 2147483648, %v4996_v18  ;;  %vm3139_vm6 = vcmp.lt.f32.partialorder %v3138_v8, 8388608.0  ;;  %v5040_v63 = vadd.f32 %v1220_v17, %v4692_v61 }
 0x1b3   : > { %v1792_v38 = vsel %vm1760_vm3, %v1776_v60, %v1712_v45  ;;  %v1840_v9 = vsel %vm1808_vm4, %v1824_v15, %v1728_v28  ;;  %v1416_v46 = vmul.f32 %v1400_v29, %v4986_v42  ;;  %v1560_v56 = vmul.f32 %v1544_v14, %v4986_v42 }
 0x1b4   : > { %2852 = vst [vmem:[%s3982_s5 + $0x180] sm:$0xff] %v1792_v38  ;;  %2868 = vst [vmem:[%s3982_s5 + $0x188] sm:$0xff] %v1840_v9  ;;  %v1362_v53 = vmul.f32 0.0027183115, %v5030_v51  ;;  %v1506_v59 = vmul.f32 0.024390448, %v5030_v51  ;;  %v3144_v26 = vor.u32 %v3143_v7, %v3142_v32  ;;  %v1213_v30 = vmul.f32 %v4955_v62, %v1166_v2 }
 0x1b5   : > { %v1432_v43 = vadd.f32 -166.66667, %v1416_v46  ;;  %v1576_v23 = vadd.f32 -500.0, %v1560_v56  ;;  %v5045_v1 = vand.u32 3, %v3196_v40  ;;  %vm1672_vm7 = vcmp.eq.s32.totalorder %v5002_v19, 3 }
 0x1b6   : > { %v1378_v16 = vadd.f32 -0.19839334, %v1362_v53  ;;  %v1522_v39 = vadd.f32 -1.3886764, %v1506_v59  ;;  %v3145_v5 = vsel %vm3139_vm6, %v3144_v26, %v4996_v18  ;;  %v5054_v54 = vmul.f32 0.63661975, %v5040_v63  ;;  %vm1688_vm11 = vmor %vm1656_vm5, %vm1672_vm7 }
 0x1b7   : > { %v1448_v49 = vmul.f32 %v1432_v43, %v4986_v42  ;;  %v1592_v50 = vmul.f32 %v1576_v23, %v4986_v42  ;;  %v1275_v22 = vmul.f32 1.5703125, %v3145_v5  ;;  %v5057_v11 = vadd.f32 %v1213_v30, %v4930_v3 }
 0x1b8   : > { %v1394_v61 = vmul.f32 %v1378_v16, %v5030_v51  ;;  %v1538_v35 = vmul.f32 %v1522_v39, %v5030_v51  ;;  %vm1736_vm8 = vcmp.eq.s32.totalorder %v5002_v19, 2  ;;  %v1307_v42 = vmul.f32 0.0004838268, %v3145_v5 }
 0x1b9   : > { %v1464_v40 = vadd.f32 1000.0, %v1448_v49  ;;  %v1291_v48 = vsub.f32 %v4973_v20, %v1275_v22  ;;  %vm1666_vm9 = vcmp.eq.s32.totalorder %v5045_v1, 1  ;;  %vm1682_vm10 = vcmp.eq.s32.totalorder %v5045_v1, 3  ;;  %vm1752_vm12 = vmor %vm1736_vm8, %vm1672_vm7 }
 0x1ba   : > { %v1410_v12 = vadd.f32 8.333329, %v1394_v61  ;;  %v1554_v0 = vadd.f32 41.666622, %v1538_v35  ;;  %v3212_v57 = vcvt.f32.s32 %v5054_v54  ;;  %v1222_v44 = vmul.f32 %v4955_v62, %v1202_v41  ;;  %vm1800_vm13 = vmor %vm1656_vm5, %vm1736_vm8 }
 0x1bb   : > { %v1480_v8 = vmul.f32 %v1464_v40, %v4970_v10  ;;  %v1608_v3 = vadd.f32 1000.0, %v1592_v50  ;;  %v5066_v36 = vsub.f32 %v1291_v48, %v1307_v42  ;;  %v5069_v45 = vmul.f32 0.63661975, %v5057_v11  ;;  %vm1698_vm0 = vmor %vm1666_vm9, %vm1682_vm10 }
 0x1bc   : > { %v1426_v20 = vmul.f32 %v1410_v12, %v5030_v51  ;;  %v1570_v28 = vmul.f32 %v1554_v0, %v5030_v51  ;;  %v3210_v17 = vand.u32 2147483647, %v5054_v54  ;;  %v3213_v10 = vcvt.s32.f32 %v3212_v57 }
 0x1bd   : > { %v1704_v60 = vsel %vm1688_vm11, %v1608_v3, %v1480_v8  ;;  %v1720_v15 = vsel %vm1688_vm11, %v1480_v8, %v1608_v3  ;;  %v5082_v29 = vmul.f32 %v5066_v36, %v5066_v36  ;;  %v3215_v14 = vand.u32 2147483648, %v5054_v54 }
 0x1be   : > { %v1768_v32 = vsub.f32 0.0, %v1704_v60  ;;  %v1816_v7 = vsub.f32 0.0, %v1720_v15  ;;  %v1442_v2 = vadd.f32 -166.66667, %v1426_v20  ;;  %v1586_v38 = vadd.f32 -500.0, %v1570_v28 }
 0x1bf   : > { %v1355_v9 = vmul.f32 0.0027183115, %v5082_v29  ;;  %v1499_v46 = vmul.f32 0.024390448, %v5082_v29  ;;  %v3214_v56 = vand.u32 2147483647, %v3213_v10  ;;  %v3156_v53 = vcvt.f32.s32 %v5069_v45 }
 0x1c0   : > { %v1784_v59 = vsel %vm1752_vm12, %v1768_v32, %v1704_v60  ;;  %v1832_v26 = vsel %vm1800_vm13, %v1816_v7, %v1720_v15  ;;  %v1458_v43 = vmul.f32 %v1442_v2, %v5030_v51  ;;  %v1602_v23 = vmul.f32 %v1586_v38, %v5030_v51  ;;  %v5139_v7 = vld [vmem:[%s6379_s1] ss:$0 sm:$0xff] }
 0x1c1   : > { %2844 = vst [vmem:[%s3982_s5 + $0x100] sm:$0xff] %v1784_v59  ;;  %2860 = vst [vmem:[%s3982_s5 + $0x108] sm:$0xff] %v1832_v26  ;;  %vm1746_vm14 = vcmp.eq.s32.totalorder %v5045_v1, 2  ;;  %v1371_v30 = vadd.f32 -0.19839334, %v1355_v9  ;;  %v3216_v16 = vor.u32 %v3215_v14, %v3214_v56  ;;  %vm3211_vm15 = vcmp.lt.f32.partialorder %v3210_v17, 8388608.0 }
 0x1c2   : > { %v1515_v19 = vadd.f32 -1.3886764, %v1499_v46  ;;  %v1474_v39 = vadd.f32 1000.0, %v1458_v43  ;;  %v1618_v5 = vadd.f32 1000.0, %v1602_v23  ;;  %v5102_v49 = vadd.f32 %v1222_v44, %v4705_v52  ;;  %vm1762_vm1 = vmor %vm1746_vm14, %vm1682_vm10 }
 0x1c3   : > { %v1387_v50 = vmul.f32 %v1371_v30, %v5082_v29  ;;  %v3217_v41 = vsel %vm3211_vm15, %v3216_v16, %v5054_v54  ;;  %v3154_v51 = vand.u32 2147483647, %v5069_v45  ;;  %v3157_v48 = vcvt.s32.f32 %v3156_v53  ;;  %vm1810_vm2 = vmor %vm1666_vm9, %vm1746_vm14 }
 0x1c4   : > { %v1531_v22 = vmul.f32 %v1515_v19, %v5082_v29  ;;  %v1490_v61 = vmul.f32 %v1474_v39, %v5016_v33  ;;  %v1284_v35 = vmul.f32 1.5703125, %v3217_v41  ;;  %v1316_v40 = vmul.f32 0.0004838268, %v3217_v41 }
 0x1c5   : > { %v1403_v52 = vadd.f32 8.333329, %v1387_v50  ;;  %v5117_v12 = vand.u32 3, %v3140_v37  ;;  %v3159_v0 = vand.u32 2147483648, %v5069_v45  ;;  %v3158_v3 = vand.u32 2147483647, %v3157_v48 }
 0x1c6   : > { %v1547_v42 = vadd.f32 41.666622, %v1531_v22  ;;  %v1714_v44 = vsel %vm1698_vm0, %v1618_v5, %v1490_v61  ;;  %v1730_v33 = vsel %vm1698_vm0, %v1490_v61, %v1618_v5  ;;  %v1300_v8 = vsub.f32 %v5040_v63, %v1284_v35 }
 0x1c7   : > { %v1778_v20 = vsub.f32 0.0, %v1714_v44  ;;  %v1826_v28 = vsub.f32 0.0, %v1730_v33  ;;  %v1419_v18 = vmul.f32 %v1403_v52, %v5082_v29  ;;  %vm3155_vm3 = vcmp.lt.f32.partialorder %v3154_v51, 8388608.0 }
 0x1c8   : > { %v1563_v37 = vmul.f32 %v1547_v42, %v5082_v29  ;;  %v5131_v63 = vsub.f32 %v1300_v8, %v1316_v40  ;;  %v3160_v17 = vor.u32 %v3159_v0, %v3158_v3  ;;  %v5134_v10 = vmul.f32 0.63661975, %v5102_v49 }
 0x1c9   : > { %v1794_v60 = vsel %vm1762_vm1, %v1778_v20, %v1714_v44  ;;  %v1842_v15 = vsel %vm1810_vm2, %v1826_v28, %v1730_v33  ;;  %v1435_v14 = vadd.f32 -166.66667, %v1419_v18  ;;  %v5143_v1 = vmul.f32 %v5139_v7, %v4151_v25 }
 0x1ca   : > { %v1579_v32 = vadd.f32 -500.0, %v1563_v37  ;;  %v5147_v2 = vmul.f32 %v5139_v7, %v4186_v4  ;;  %2854 = vst [vmem:[%s3982_s5 + $0x1a0] sm:$0xff] %v1794_v60  ;;  %2870 = vst [vmem:[%s3982_s5 + $0x1a8] sm:$0xff] %v1842_v15  ;;  %v5153_v38 = vmul.f32 %v5131_v63, %v5131_v63  ;;  %v3161_v9 = vsel %vm3155_vm3, %v3160_v17, %v5069_v45 }
 0x1cb   : > { %v1451_v46 = vmul.f32 %v1435_v14, %v5082_v29  ;;  %vm1659_vm4 = vcmp.eq.s32.totalorder %v5117_v12, 1  ;;  %v1277_v25 = vmul.f32 1.5703125, %v3161_v9  ;;  %vm1675_vm5 = vcmp.eq.s32.totalorder %v5117_v12, 3 }
 0x1cc   : > { %v1595_v56 = vmul.f32 %v1579_v32, %v5082_v29  ;;  %v1364_v4 = vmul.f32 0.0027183115, %v5153_v38  ;;  %v1508_v59 = vmul.f32 0.024390448, %v5153_v38  ;;  %v3228_v26 = vcvt.f32.s32 %v5134_v10  ;;  %vm1691_vm7 = vmor %vm1659_vm4, %vm1675_vm5 }
 0x1cd   : > { %v1467_v43 = vadd.f32 1000.0, %v1451_v46  ;;  %v1293_v23 = vsub.f32 %v5057_v11, %v1277_v25  ;;  %v1309_v30 = vmul.f32 0.0004838268, %v3161_v9  ;;  %v3226_v19 = vand.u32 2147483647, %v5134_v10  ;;  %v1174_v11 = vpop.permute.xlu0 %1173 }
 0x1ce   : > { %v1380_v16 = vadd.f32 -0.19839334, %v1364_v4  ;;  %v1524_v39 = vadd.f32 -1.3886764, %v1508_v59  ;;  %v5167_v29 = vand.u32 3, %v3212_v57  ;;  %v3229_v5 = vcvt.s32.f32 %v3228_v26 }
 0x1cf   : > { %v1483_v50 = vmul.f32 %v1467_v43, %v5066_v36  ;;  %v1611_v22 = vadd.f32 1000.0, %v1595_v56  ;;  %vm1739_vm6 = vcmp.eq.s32.totalorder %v5117_v12, 2  ;;  %v5173_v41 = vsub.f32 %v1293_v23, %v1309_v30 }
 0x1d0   : > { %v1396_v54 = vmul.f32 %v1380_v16, %v5153_v38  ;;  %v1540_v57 = vmul.f32 %v1524_v39, %v5153_v38  ;;  %v3230_v51 = vand.u32 2147483647, %v3229_v5  ;;  %v3231_v61 = vand.u32 2147483648, %v5134_v10  ;;  %vm1755_vm9 = vmor %vm1739_vm6, %vm1675_vm5 }
 0x1d1   : > { %v1707_v35 = vsel %vm1691_vm7, %v1611_v22, %v1483_v50  ;;  %v1723_v36 = vsel %vm1691_vm7, %v1483_v50, %v1611_v22  ;;  %v5184_v40 = vmul.f32 %v5173_v41, %v5173_v41  ;;  %vm5186_vm8 = vcmp.lt.f32.partialorder %v3226_v19, 8388608.0  ;;  %vm1803_vm12 = vmor %vm1659_vm4, %vm1739_vm6  ;;  %v1182_v32 = vpop.permute.xlu0 %1181 }
 0x1d2   : > { %v1771_v52 = vsub.f32 0.0, %v1707_v35  ;;  %v1819_v42 = vsub.f32 0.0, %v1723_v36  ;;  %v1412_v0 = vadd.f32 8.333329, %v1396_v54  ;;  %v1556_v44 = vadd.f32 41.666622, %v1540_v57 }
 0x1d3   : > { %vm1668_vm10 = vcmp.eq.s32.totalorder %v5167_v29, 1  ;;  %vm1684_vm11 = vcmp.eq.s32.totalorder %v5167_v29, 3  ;;  %v1357_v33 = vmul.f32 0.0027183115, %v5184_v40  ;;  %v1501_v8 = vmul.f32 0.024390448, %v5184_v40 }
 0x1d4   : > { %v3232_v3 = vor.u32 %v3231_v61, %v3230_v51  ;;  %v1215_v20 = vmul.f32 %v4955_v62, %v1174_v11  ;;  %v1787_v28 = vsel %vm1755_vm9, %v1771_v52, %v1707_v35  ;;  %v1835_v18 = vsel %vm1803_vm12, %v1819_v42, %v1723_v36  ;;  %vm1700_vm0 = vmor %vm1668_vm10, %vm1684_vm11 }
 0x1d5   : > { %v1428_v37 = vmul.f32 %v1412_v0, %v5153_v38  ;;  %v1572_v17 = vmul.f32 %v1556_v44, %v5153_v38  ;;  %2847 = vst [vmem:[%s3982_s5 + $0x130] sm:$0xff] %v1787_v28  ;;  %2863 = vst [vmem:[%s3982_s5 + $0x138] sm:$0xff] %v1835_v18  ;;  %v1373_v60 = vadd.f32 -0.19839334, %v1357_v33  ;;  %v1517_v15 = vadd.f32 -1.3886764, %v1501_v8 }
 0x1d6   : > { %v5209_v12 = vand.u32 3, %v3156_v53  ;;  %v3233_v14 = vsel %vm5186_vm8, %v3232_v3, %v5134_v10  ;;  %vm1748_vm13 = vcmp.eq.s32.totalorder %v5167_v29, 2  ;;  %v5218_v43 = vadd.f32 %v1215_v20, %v5143_v1 }
 0x1d7   : > { %v1444_v9 = vadd.f32 -166.66667, %v1428_v37  ;;  %v1588_v46 = vadd.f32 -500.0, %v1572_v17  ;;  %v1286_v56 = vmul.f32 1.5703125, %v3233_v14  ;;  %v1389_v25 = vmul.f32 %v1373_v60, %v5184_v40  ;;  %vm1764_vm1 = vmor %vm1748_vm13, %vm1684_vm11 }
 0x1d8   : > { %v1533_v4 = vmul.f32 %v1517_v15, %v5184_v40  ;;  %v1318_v59 = vmul.f32 0.0004838268, %v3233_v14  ;;  %v1217_v30 = vmul.f32 %v4955_v62, %v1182_v32  ;;  %vm1661_vm14 = vcmp.eq.s32.totalorder %v5209_v12, 1  ;;  %vm1812_vm2 = vmor %vm1668_vm10, %vm1748_vm13  ;;  %v1190_v14 = vpop.permute.xlu0 %1189 }
 0x1d9   : > { %v1460_v45 = vmul.f32 %v1444_v9, %v5153_v38  ;;  %v1604_v53 = vmul.f32 %v1588_v46, %v5153_v38  ;;  %v1302_v23 = vsub.f32 %v5102_v49, %v1286_v56  ;;  %v1405_v19 = vadd.f32 8.333329, %v1389_v25 }
 0x1da   : > { %v1549_v16 = vadd.f32 41.666622, %v1533_v4  ;;  %v5226_v39 = vmul.f32 0.63661975, %v5218_v43  ;;  %vm1677_vm15 = vcmp.eq.s32.totalorder %v5209_v12, 3  ;;  %v5232_v50 = vadd.f32 %v1217_v30, %v5147_v2 }
 0x1db   : > { %v1476_v5 = vadd.f32 1000.0, %v1460_v45  ;;  %v5229_v1 = vsub.f32 %v1302_v23, %v1318_v59  ;;  %v1620_v38 = vadd.f32 1000.0, %v1604_v53  ;;  %v1421_v49 = vmul.f32 %v1405_v19, %v5184_v40  ;;  %vm1693_vm5 = vmor %vm1661_vm14, %vm1677_vm15 }
 0x1dc   : > { %v1565_v22 = vmul.f32 %v1549_v16, %v5184_v40  ;;  %v3172_v11 = vcvt.f32.s32 %v5226_v39  ;;  %v3170_v51 = vand.u32 2147483647, %v5226_v39  ;;  %v3175_v61 = vand.u32 2147483648, %v5226_v39 }
 0x1dd   : > { %v1492_v54 = vmul.f32 %v1476_v5, %v5131_v63  ;;  %v5240_v57 = vmul.f32 %v5229_v1, %v5229_v1  ;;  %v1437_v2 = vadd.f32 -166.66667, %v1421_v49  ;;  %v5251_v63 = vmul.f32 0.63661975, %v5232_v50 }
 0x1de   : > { %v1581_v35 = vadd.f32 -500.0, %v1565_v22  ;;  %v3173_v36 = vcvt.s32.f32 %v3172_v11  ;;  %v1139_v32 = vmul.f32 %v5139_v7, %v4217_v6  ;;  %vm1741_vm3 = vcmp.eq.s32.totalorder %v5209_v12, 2  ;;  %v1198_v22 = vpop.permute.xlu0 %1197 }
 0x1df   : > { %v1716_v48 = vsel %vm1700_vm0, %v1620_v38, %v1492_v54  ;;  %v1732_v52 = vsel %vm1700_vm0, %v1492_v54, %v1620_v38  ;;  %v1366_v42 = vmul.f32 0.0027183115, %v5240_v57  ;;  %v1510_v0 = vmul.f32 0.024390448, %v5240_v57  ;;  %vm1757_vm6 = vmor %vm1741_vm3, %vm1677_vm15 }
 0x1e0   : > { %v1780_v44 = vsub.f32 0.0, %v1716_v48  ;;  %v1828_v33 = vsub.f32 0.0, %v1732_v52  ;;  %v1453_v8 = vmul.f32 %v1437_v2, %v5184_v40  ;;  %v1597_v3 = vmul.f32 %v1581_v35, %v5184_v40  ;;  %vm1805_vm7 = vmor %vm1661_vm14, %vm1741_vm3 }
 0x1e1   : > { %v1382_v20 = vadd.f32 -0.19839334, %v1366_v42  ;;  %v1526_v28 = vadd.f32 -1.3886764, %v1510_v0  ;;  %v3174_v18 = vand.u32 2147483647, %v3173_v36  ;;  %v3188_v15 = vcvt.f32.s32 %v5251_v63 }
 0x1e2   : > { %v1796_v37 = vsel %vm1764_vm1, %v1780_v44, %v1716_v48  ;;  %v1844_v17 = vsel %vm1812_vm2, %v1828_v33, %v1732_v52  ;;  %v1469_v60 = vadd.f32 1000.0, %v1453_v8  ;;  %v1613_v56 = vadd.f32 1000.0, %v1597_v3 }
 0x1e3   : > { %2856 = vst [vmem:[%s3982_s5 + $0x1c0] sm:$0xff] %v1796_v37  ;;  %2872 = vst [vmem:[%s3982_s5 + $0x1c8] sm:$0xff] %v1844_v17  ;;  %v1398_v40 = vmul.f32 %v1382_v20, %v5240_v57  ;;  %v1542_v9 = vmul.f32 %v1526_v28, %v5240_v57  ;;  %v3176_v29 = vor.u32 %v3175_v61, %v3174_v18  ;;  %vm3171_vm4 = vcmp.lt.f32.partialorder %v3170_v51, 8388608.0  ;;  %v1903_v20 = vpop.permute.xlu1 %1902 }
 0x1e4   : > { %v1485_v46 = vmul.f32 %v1469_v60, %v5173_v41  ;;  %v5280_v4 = vand.u32 3, %v3228_v26  ;;  %v3189_v23 = vcvt.s32.f32 %v3188_v15  ;;  %v1141_v16 = vmul.f32 %v5139_v7, %v4239_v58 }
 0x1e5   : > { %v1414_v25 = vadd.f32 8.333329, %v1398_v40  ;;  %v1558_v6 = vadd.f32 41.666622, %v1542_v9  ;;  %v3177_v59 = vsel %vm3171_vm4, %v3176_v29, %v5226_v39  ;;  %v3186_v49 = vand.u32 2147483647, %v5251_v63 }
 0x1e6   : > { %v1709_v45 = vsel %vm1693_vm5, %v1613_v56, %v1485_v46  ;;  %v1725_v53 = vsel %vm1693_vm5, %v1485_v46, %v1613_v56  ;;  %v1279_v41 = vmul.f32 1.5703125, %v3177_v59  ;;  %v1311_v38 = vmul.f32 0.0004838268, %v3177_v59 }
 0x1e7   : > { %v1773_v30 = vsub.f32 0.0, %v1709_v45  ;;  %v1821_v19 = vsub.f32 0.0, %v1725_v53  ;;  %v1430_v10 = vmul.f32 %v1414_v25, %v5240_v57  ;;  %v1574_v26 = vmul.f32 %v1558_v6, %v5240_v57 }
 0x1e8   : > { %v1295_v5 = vsub.f32 %v5218_v43, %v1279_v41  ;;  %v3190_v58 = vand.u32 2147483647, %v3189_v23  ;;  %v3191_v36 = vand.u32 2147483648, %v5251_v63  ;;  %v1219_v12 = vmul.f32 %v4955_v62, %v1190_v14 }
 0x1e9   : > { %v1789_v54 = vsel %vm1757_vm6, %v1773_v30, %v1709_v45  ;;  %v1837_v51 = vsel %vm1805_vm7, %v1821_v19, %v1725_v53  ;;  %v1446_v61 = vadd.f32 -166.66667, %v1430_v10  ;;  %v1590_v2 = vadd.f32 -500.0, %v1574_v26  ;;  %v1913_v10 = vpop.permute.xlu1 %1912 }
 0x1ea   : > { %2849 = vst [vmem:[%s3982_s5 + $0x150] sm:$0xff] %v1789_v54  ;;  %2865 = vst [vmem:[%s3982_s5 + $0x158] sm:$0xff] %v1837_v51  ;;  %v5301_v35 = vsub.f32 %v1295_v5, %v1311_v38  ;;  %vm1670_vm8 = vcmp.eq.s32.totalorder %v5280_v4, 1  ;;  %v1221_v52 = vmul.f32 %v4955_v62, %v1198_v22  ;;  %vm1686_vm9 = vcmp.eq.s32.totalorder %v5280_v4, 3  ;;  %v1206_v22 = vpop.permute.xlu0 %1205 }
 0x1eb   : > { %v1462_v48 = vmul.f32 %v1446_v61, %v5240_v57  ;;  %v1606_v43 = vmul.f32 %v1590_v2, %v5240_v57  ;;  %vm1750_vm10 = vcmp.eq.s32.totalorder %v5280_v4, 2  ;;  %v3192_v0 = vor.u32 %v3191_v36, %v3190_v58  ;;  %vm1702_vm12 = vmor %vm1670_vm8, %vm1686_vm9 }
 0x1ec   : > { %v5313_v42 = vmul.f32 %v5301_v35, %v5301_v35  ;;  %v5317_v33 = vand.u32 3, %v3172_v11  ;;  %vm3187_vm11 = vcmp.lt.f32.partialorder %v3186_v49, 8388608.0  ;;  %v5319_v57 = vadd.f32 %v1219_v12, %v1139_v32  ;;  %vm1766_vm13 = vmor %vm1750_vm10, %vm1686_vm9 }
 0x1ed   : > { %v1478_v44 = vadd.f32 1000.0, %v1462_v48  ;;  %v3193_v28 = vsel %vm3187_vm11, %v3192_v0, %v5251_v63  ;;  %v5324_v18 = vadd.f32 %v1221_v52, %v1141_v16  ;;  %v1622_v17 = vadd.f32 1000.0, %v1606_v43  ;;  %vm1814_vm14 = vmor %vm1670_vm8, %vm1750_vm10 }
 0x1ee   : > { %v1359_v8 = vmul.f32 0.0027183115, %v5313_v42  ;;  %v1503_v3 = vmul.f32 0.024390448, %v5313_v42  ;;  %v1281_v60 = vmul.f32 1.5703125, %v3193_v28  ;;  %v5332_v11 = vmul.f32 %v5139_v7, %v3923_v47 }
 0x1ef   : > { %v1494_v37 = vmul.f32 %v1478_v44, %v5229_v1  ;;  %v5328_v39 = vmul.f32 0.63661975, %v5319_v57  ;;  %v1313_v40 = vmul.f32 0.0004838268, %v3193_v28  ;;  %v5340_v46 = vmul.f32 0.63661975, %v5324_v18 }
 0x1f0   : > { %v1375_v14 = vadd.f32 -0.19839334, %v1359_v8  ;;  %v1519_v32 = vadd.f32 -1.3886764, %v1503_v3  ;;  %v1297_v1 = vsub.f32 %v5232_v50, %v1281_v60  ;;  %v1143_v59 = vmul.f32 %v5139_v7, %v4285_v24 }
 0x1f1   : > { %v1718_v9 = vsel %vm1702_vm12, %v1622_v17, %v1494_v37  ;;  %v1734_v29 = vsel %vm1702_vm12, %v1494_v37, %v1622_v17  ;;  %v5355_v50 = vmul.f32 %v5139_v7, %v1903_v20  ;;  %v3204_v53 = vcvt.f32.s32 %v5328_v39 }
 0x1f2   : > { %v1782_v47 = vsub.f32 0.0, %v1718_v9  ;;  %v1830_v56 = vsub.f32 0.0, %v1734_v29  ;;  %v1391_v25 = vmul.f32 %v1375_v14, %v5313_v42  ;;  %v1535_v6 = vmul.f32 %v1519_v32, %v5313_v42 }
 0x1f3   : > { %v5357_v45 = vsub.f32 %v1297_v1, %v1313_v40  ;;  %vm1663_vm15 = vcmp.eq.s32.totalorder %v5317_v33, 1  ;;  %v3202_v4 = vand.u32 2147483647, %v5328_v39  ;;  %v3205_v26 = vcvt.s32.f32 %v3204_v53 }
 0x1f4   : > { %v1798_v41 = vsel %vm1766_vm13, %v1782_v47, %v1718_v9  ;;  %v1846_v23 = vsel %vm1814_vm14, %v1830_v56, %v1734_v29  ;;  %v1407_v30 = vadd.f32 8.333329, %v1391_v25  ;;  %v1551_v19 = vadd.f32 41.666622, %v1535_v6 }
 0x1f5   : > { %2858 = vst [vmem:[%s3982_s5 + $0x1e0] sm:$0xff] %v1798_v41  ;;  %2874 = vst [vmem:[%s3982_s5 + $0x1e8] sm:$0xff] %v1846_v23  ;;  %v1345_v24 = vmul.f32 %v5357_v45, %v5357_v45  ;;  %v3207_v38 = vand.u32 2147483648, %v5328_v39  ;;  %v3220_v49 = vcvt.f32.s32 %v5340_v46  ;;  %v5373_v61 = vmul.f32 %v5139_v7, %v1913_v10 }
 0x1f6   : > { %v1423_v16 = vmul.f32 %v1407_v30, %v5313_v42  ;;  %v1567_v5 = vmul.f32 %v1551_v19, %v5313_v42  ;;  %v3206_v2 = vand.u32 2147483647, %v3205_v26  ;;  %vm1679_vm0 = vcmp.eq.s32.totalorder %v5317_v33, 3 }
 0x1f7   : > { %v1361_v54 = vmul.f32 0.0027183115, %v1345_v24  ;;  %v1505_v51 = vmul.f32 0.024390448, %v1345_v24  ;;  %vm1743_vm1 = vcmp.eq.s32.totalorder %v5317_v33, 2  ;;  %v1223_v52 = vmul.f32 %v4955_v62, %v1206_v22  ;;  %vm1695_vm3 = vmor %vm1663_vm15, %vm1679_vm0 }
 0x1f8   : > { %v1439_v58 = vadd.f32 -166.66667, %v1423_v16  ;;  %v1583_v36 = vadd.f32 -500.0, %v1567_v5  ;;  %v3208_v43 = vor.u32 %v3207_v38, %v3206_v2  ;;  %vm3203_vm2 = vcmp.lt.f32.partialorder %v3202_v4, 8388608.0  ;;  %vm1759_vm5 = vmor %vm1743_vm1, %vm1679_vm0 }
 0x1f9   : > { %v1377_v12 = vadd.f32 -0.19839334, %v1361_v54  ;;  %v1521_v48 = vadd.f32 -1.3886764, %v1505_v51  ;;  %v3221_v8 = vcvt.s32.f32 %v3220_v49  ;;  %v3218_v37 = vand.u32 2147483647, %v5340_v46  ;;  %vm1807_vm6 = vmor %vm1663_vm15, %vm1743_vm1 }
 0x1fa   : > { %v1455_v0 = vmul.f32 %v1439_v58, %v5313_v42  ;;  %v1599_v44 = vmul.f32 %v1583_v36, %v5313_v42  ;;  %v3209_v28 = vsel %vm3203_vm2, %v3208_v43, %v5328_v39  ;;  %v5386_v60 = vand.u32 3, %v3188_v15 }
 0x1fb   : > { %v1393_v3 = vmul.f32 %v1377_v12, %v1345_v24  ;;  %v1537_v20 = vmul.f32 %v1521_v48, %v1345_v24  ;;  %v1283_v14 = vmul.f32 1.5703125, %v3209_v28  ;;  %v3223_v32 = vand.u32 2147483648, %v5340_v46 }
 0x1fc   : > { %v1471_v17 = vadd.f32 1000.0, %v1455_v0  ;;  %v3222_v9 = vand.u32 2147483647, %v3221_v8  ;;  %v5389_v29 = vadd.f32 %v1223_v52, %v1143_v59  ;;  %v1615_v47 = vadd.f32 1000.0, %v1599_v44  ;;  %v1998_v0 = vpop.permute.xlu0 %1997 }
 0x1fd   : > { %v1409_v40 = vadd.f32 8.333329, %v1393_v3  ;;  %v1553_v42 = vadd.f32 41.666622, %v1537_v20  ;;  %v1299_v56 = vsub.f32 %v5319_v57, %v1283_v14  ;;  %v1315_v25 = vmul.f32 0.0004838268, %v3209_v28  ;;  %v1918_v3 = vpop.permute.xlu1 %1917 }
 0x1fe   : > { %v1487_v1 = vmul.f32 %v1471_v17, %v5301_v35  ;;  %vm3219_vm4 = vcmp.lt.f32.partialorder %v3218_v37, 8388608.0  ;;  %v3224_v6 = vor.u32 %v3223_v32, %v3222_v9  ;;  %v5400_v35 = vmul.f32 0.63661975, %v5389_v29 }
 0x1ff   : > { %v1425_v63 = vmul.f32 %v1409_v40, %v1345_v24  ;;  %v1569_v15 = vmul.f32 %v1553_v42, %v1345_v24  ;;  %v5397_v30 = vsub.f32 %v1299_v56, %v1315_v25  ;;  %vm1665_vm7 = vcmp.eq.s32.totalorder %v5386_v60, 1 }
 0x200   : > { %v1711_v41 = vsel %vm1695_vm3, %v1615_v47, %v1487_v1  ;;  %v1727_v23 = vsel %vm1695_vm3, %v1487_v1, %v1615_v47  ;;  %v3225_v26 = vsel %vm3219_vm4, %v3224_v6, %v5340_v46  ;;  %v3234_v16 = vand.u32 2147483647, %v5400_v35 }
 0x201   : > { %v1775_v57 = vsub.f32 0.0, %v1711_v41  ;;  %v1823_v59 = vsub.f32 0.0, %v1727_v23  ;;  %v1441_v19 = vadd.f32 -166.66667, %v1425_v63  ;;  %v1585_v10 = vadd.f32 -500.0, %v1569_v15 }
 0x202   : > { %v5412_v4 = vmul.f32 %v5397_v30, %v5397_v30  ;;  %v3236_v5 = vcvt.f32.s32 %v5400_v35  ;;  %v1285_v58 = vmul.f32 1.5703125, %v3225_v26  ;;  %vm1681_vm8 = vcmp.eq.s32.totalorder %v5386_v60, 3 }
 0x203   : > { %v1791_v38 = vsel %vm1759_vm5, %v1775_v57, %v1711_v41  ;;  %v1839_v22 = vsel %vm1807_vm6, %v1823_v59, %v1727_v23  ;;  %v1457_v54 = vmul.f32 %v1441_v19, %v1345_v24  ;;  %v1601_v51 = vmul.f32 %v1585_v10, %v1345_v24  ;;  %vm1697_vm10 = vmor %vm1665_vm7, %vm1681_vm8 }
 0x204   : > { %2851 = vst [vmem:[%s3982_s5 + $0x170] sm:$0xff] %v1791_v38  ;;  %2867 = vst [vmem:[%s3982_s5 + $0x178] sm:$0xff] %v1839_v22  ;;  %v1363_v33 = vmul.f32 0.0027183115, %v5412_v4  ;;  %v1507_v2 = vmul.f32 0.024390448, %v5412_v4  ;;  %v3237_v12 = vcvt.s32.f32 %v3236_v5  ;;  %v1301_v24 = vsub.f32 %v5324_v18, %v1285_v58  ;;  %v2010_v58 = vpop.permute.xlu0 %2009 }
 0x205   : > { %v1473_v36 = vadd.f32 1000.0, %v1457_v54  ;;  %vm1745_vm9 = vcmp.eq.s32.totalorder %v5386_v60, 2  ;;  %v1317_v52 = vmul.f32 0.0004838268, %v3225_v26  ;;  %v1617_v8 = vadd.f32 1000.0, %v1601_v51  ;;  %v1928_v60 = vpop.permute.xlu1 %1927 }
 0x206   : > { %v1379_v48 = vadd.f32 -0.19839334, %v1363_v33  ;;  %v1523_v43 = vadd.f32 -1.3886764, %v1507_v2  ;;  %v3238_v20 = vand.u32 2147483647, %v3237_v12  ;;  %v2060_v40 = vmul.f32 %v4955_v62, %v1998_v0  ;;  %vm1761_vm12 = vmor %vm1745_vm9, %vm1681_vm8 }
 0x207   : > { %v1489_v44 = vmul.f32 %v1473_v36, %v5357_v45  ;;  %v3239_v28 = vand.u32 2147483648, %v5400_v35  ;;  %v5435_v14 = vsub.f32 %v1301_v24, %v1317_v52  ;;  %vm3235_vm11 = vcmp.lt.f32.partialorder %v3234_v16, 8388608.0  ;;  %vm1809_vm13 = vmor %vm1665_vm7, %vm1745_vm9  ;;  %v5492_v52 = vld [vmem:[%s6379_s1 + $0x1] ss:$0 sm:$0xff] }
 0x208   : > { %v1395_v37 = vmul.f32 %v1379_v48, %v5412_v4  ;;  %v1539_v17 = vmul.f32 %v1523_v43, %v5412_v4  ;;  %v1651_v56 = vand.u32 3, %v3204_v53  ;;  %v5449_v62 = vmul.f32 %v5139_v7, %v1918_v3 }
 0x209   : > { %v1713_v18 = vsel %vm1697_vm10, %v1617_v8, %v1489_v44  ;;  %v1729_v32 = vsel %vm1697_vm10, %v1489_v44, %v1617_v8  ;;  %v3240_v45 = vor.u32 %v3239_v28, %v3238_v20  ;;  %v5453_v25 = vmul.f32 %v5435_v14, %v5435_v14 }
 0x20a   : > { %v1777_v42 = vsub.f32 0.0, %v1713_v18  ;;  %v1825_v9 = vsub.f32 0.0, %v1729_v32  ;;  %v1411_v1 = vadd.f32 8.333329, %v1395_v37  ;;  %v1555_v47 = vadd.f32 41.666622, %v1539_v17 }
 0x20b   : > { %v3241_v63 = vsel %vm3235_vm11, %v3240_v45, %v5400_v35  ;;  %v1365_v39 = vmul.f32 0.0027183115, %v5453_v25  ;;  %v1509_v53 = vmul.f32 0.024390448, %v5453_v25  ;;  %v5463_v59 = vadd.f32 %v2060_v40, %v5355_v50 }
 0x20c   : > { %v1793_v15 = vsel %vm1761_vm12, %v1777_v42, %v1713_v18  ;;  %v1841_v6 = vsel %vm1809_vm13, %v1825_v9, %v1729_v32  ;;  %v1427_v41 = vmul.f32 %v1411_v1, %v5412_v4  ;;  %v1571_v23 = vmul.f32 %v1555_v47, %v5412_v4 }
 0x20d   : > { %2853 = vst [vmem:[%s3982_s5 + $0x190] sm:$0xff] %v1793_v15  ;;  %2869 = vst [vmem:[%s3982_s5 + $0x198] sm:$0xff] %v1841_v6  ;;  %v1287_v57 = vmul.f32 1.5703125, %v3241_v63  ;;  %v5467_v26 = vand.u32 3, %v3220_v49  ;;  %v1319_v16 = vmul.f32 0.0004838268, %v3241_v63  ;;  %v5476_v50 = vmul.f32 %v5139_v7, %v1928_v60 }
 0x20e   : > { %v1443_v19 = vadd.f32 -166.66667, %v1427_v41  ;;  %v1587_v10 = vadd.f32 -500.0, %v1571_v23  ;;  %v1381_v38 = vadd.f32 -0.19839334, %v1365_v39  ;;  %vm1667_vm14 = vcmp.eq.s32.totalorder %v1651_v56, 1 }
 0x20f   : > { %v1525_v22 = vadd.f32 -1.3886764, %v1509_v53  ;;  %v1303_v54 = vsub.f32 %v5389_v29, %v1287_v57  ;;  %v5471_v51 = vmul.f32 0.63661975, %v5463_v59  ;;  %vm1683_vm15 = vcmp.eq.s32.totalorder %v1651_v56, 3  ;;  %v1938_v57 = vpop.permute.xlu1 %1937 }
 0x210   : > { %v1459_v33 = vmul.f32 %v1443_v19, %v5412_v4  ;;  %v1603_v2 = vmul.f32 %v1587_v10, %v5412_v4  ;;  %v1397_v46 = vmul.f32 %v1381_v38, %v5453_v25  ;;  %vm1747_vm0 = vcmp.eq.s32.totalorder %v1651_v56, 2  ;;  %vm1699_vm2 = vmor %vm1667_vm14, %vm1683_vm15  ;;  %v2018_v38 = vpop.permute.xlu0 %2017 }
 0x211   : > { %v1541_v49 = vmul.f32 %v1525_v22, %v5453_v25  ;;  %v5480_v36 = vsub.f32 %v1303_v54, %v1319_v16  ;;  %v3290_v12 = vand.u32 2147483647, %v5471_v51  ;;  %v3292_v48 = vcvt.f32.s32 %v5471_v51  ;;  %vm1763_vm4 = vmor %vm1747_vm0, %vm1683_vm15 }
 0x212   : > { %v1475_v29 = vadd.f32 1000.0, %v1459_v33  ;;  %v1413_v43 = vadd.f32 8.333329, %v1397_v46  ;;  %vm1669_vm1 = vcmp.eq.s32.totalorder %v5467_v26, 1  ;;  %v2063_v0 = vmul.f32 %v5492_v52, %v2010_v58  ;;  %vm1811_vm5 = vmor %vm1667_vm14, %vm1747_vm0 }
 0x213   : > { %v1557_v4 = vadd.f32 41.666622, %v1541_v49  ;;  %v5487_v24 = vmul.f32 %v5480_v36, %v5480_v36  ;;  %v1619_v8 = vadd.f32 1000.0, %v1603_v2  ;;  %v3293_v3 = vcvt.s32.f32 %v3292_v48 }
 0x214   : > { %v1491_v44 = vmul.f32 %v1475_v29, %v5397_v30  ;;  %v3295_v20 = vand.u32 2147483648, %v5471_v51  ;;  %v1429_v28 = vmul.f32 %v1413_v43, %v5453_v25  ;;  %vm5505_vm3 = vcmp.lt.f32.partialorder %v3290_v12, 8388608.0 }
 0x215   : > { %v1573_v37 = vmul.f32 %v1557_v4, %v5453_v25  ;;  %v1367_v17 = vmul.f32 0.0027183115, %v5487_v24  ;;  %v1511_v18 = vmul.f32 0.024390448, %v5487_v24  ;;  %v3294_v40 = vand.u32 2147483647, %v3293_v3 }
 0x216   : > { %v1715_v32 = vsel %vm1699_vm2, %v1619_v8, %v1491_v44  ;;  %v1731_v45 = vsel %vm1699_vm2, %v1491_v44, %v1619_v8  ;;  %v1445_v1 = vadd.f32 -166.66667, %v1429_v28  ;;  %v5514_v41 = vadd.f32 %v2063_v0, %v5449_v62  ;;  %v1948_v28 = vpop.permute.xlu1 %1947 }
 0x217   : > { %v1779_v42 = vsub.f32 0.0, %v1715_v32  ;;  %v1827_v9 = vsub.f32 0.0, %v1731_v45  ;;  %v1589_v47 = vadd.f32 -500.0, %v1573_v37  ;;  %v1383_v63 = vadd.f32 -0.19839334, %v1367_v17 }
 0x218   : > { %v1527_v15 = vadd.f32 -1.3886764, %v1511_v18  ;;  %v3296_v6 = vor.u32 %v3295_v20, %v3294_v40  ;;  %v1461_v53 = vmul.f32 %v1445_v1, %v5453_v25  ;;  %v5524_v10 = vand.u32 3, %v3236_v5 }
 0x219   : > { %v1795_v23 = vsel %vm1763_vm4, %v1779_v42, %v1715_v32  ;;  %v1843_v39 = vsel %vm1811_vm5, %v1827_v9, %v1731_v45  ;;  %v1605_v60 = vmul.f32 %v1589_v47, %v5453_v25  ;;  %v1399_v19 = vmul.f32 %v1383_v63, %v5487_v24  ;;  %v2026_v32 = vpop.permute.xlu0 %2025 }
 0x21a   : > { %2855 = vst [vmem:[%s3982_s5 + $0x1b0] sm:$0xff] %v1795_v23  ;;  %2871 = vst [vmem:[%s3982_s5 + $0x1b8] sm:$0xff] %v1843_v39  ;;  %v1543_v56 = vmul.f32 %v1527_v15, %v5487_v24  ;;  %v3297_v62 = vsel %vm5505_vm3, %v3296_v6, %v5471_v51  ;;  %v1477_v16 = vadd.f32 1000.0, %v1461_v53  ;;  %vm1685_vm6 = vcmp.eq.s32.totalorder %v5467_v26, 3 }
 0x21b   : > { %vm1749_vm7 = vcmp.eq.s32.totalorder %v5467_v26, 2  ;;  %v2124_v25 = vmul.f32 1.5703125, %v3297_v62  ;;  %v1415_v22 = vadd.f32 8.333329, %v1399_v19  ;;  %v1987_v33 = vmul.f32 %v5139_v7, %v1938_v57  ;;  %vm1701_vm8 = vmor %vm1669_vm1, %vm1685_vm6 }
 0x21c   : > { %v1559_v54 = vadd.f32 41.666622, %v1543_v56  ;;  %v5533_v2 = vmul.f32 0.63661975, %v5514_v41  ;;  %v1493_v35 = vmul.f32 %v1477_v16, %v5435_v14  ;;  %v1621_v5 = vadd.f32 1000.0, %v1605_v60  ;;  %vm1765_vm10 = vmor %vm1749_vm7, %vm1685_vm6 }
 0x21d   : > { %v2140_v58 = vsub.f32 %v5463_v59, %v2124_v25  ;;  %v2156_v46 = vmul.f32 0.0004838268, %v3297_v62  ;;  %v1431_v49 = vmul.f32 %v1415_v22, %v5487_v24  ;;  %vm1671_vm9 = vcmp.eq.s32.totalorder %v5524_v10, 1  ;;  %vm1813_vm11 = vmor %vm1669_vm1, %vm1749_vm7  ;;  %v1958_v62 = vpop.permute.xlu1 %1957 }
 0x21e   : > { %v1575_v29 = vmul.f32 %v1559_v54, %v5487_v24  ;;  %v3316_v12 = vcvt.f32.s32 %v5533_v2  ;;  %v1717_v43 = vsel %vm1701_vm8, %v1621_v5, %v1493_v35  ;;  %v1733_v4 = vsel %vm1701_vm8, %v1493_v35, %v1621_v5 }
 0x21f   : > { %v5545_v14 = vsub.f32 %v2140_v58, %v2156_v46  ;;  %v2065_v59 = vmul.f32 %v5492_v52, %v2018_v38  ;;  %v1781_v0 = vsub.f32 0.0, %v1717_v43  ;;  %v1829_v44 = vsub.f32 0.0, %v1733_v4 }
 0x220   : > { %v1447_v8 = vadd.f32 -166.66667, %v1431_v49  ;;  %v1591_v3 = vadd.f32 -500.0, %v1575_v29  ;;  %v3314_v37 = vand.u32 2147483647, %v5533_v2  ;;  %v3317_v17 = vcvt.s32.f32 %v3316_v12  ;;  %v2034_v49 = vpop.permute.xlu0 %2033 }
 0x221   : > { %v5558_v20 = vmul.f32 %v5545_v14, %v5545_v14  ;;  %v3319_v18 = vand.u32 2147483648, %v5533_v2  ;;  %v1797_v45 = vsel %vm1765_vm10, %v1781_v0, %v1717_v43  ;;  %v1845_v30 = vsel %vm1813_vm11, %v1829_v44, %v1733_v4 }
 0x222   : > { %v1463_v40 = vmul.f32 %v1447_v8, %v5487_v24  ;;  %v1607_v26 = vmul.f32 %v1591_v3, %v5487_v24  ;;  %2857 = vst [vmem:[%s3982_s5 + $0x1d0] sm:$0xff] %v1797_v45  ;;  %2873 = vst [vmem:[%s3982_s5 + $0x1d8] sm:$0xff] %v1845_v30  ;;  %v3318_v1 = vand.u32 2147483647, %v3317_v17  ;;  %v5571_v47 = vadd.f32 %v2065_v59, %v5476_v50 }
 0x223   : > { %v2204_v42 = vmul.f32 0.0027183115, %v5558_v20  ;;  %v2348_v9 = vmul.f32 0.024390448, %v5558_v20  ;;  %vm1687_vm12 = vcmp.eq.s32.totalorder %v5524_v10, 3  ;;  %vm1751_vm13 = vcmp.eq.s32.totalorder %v5524_v10, 2 }
 0x224   : > { %v1479_v63 = vadd.f32 1000.0, %v1463_v40  ;;  %v2067_v15 = vmul.f32 %v5492_v52, %v2026_v32  ;;  %v1989_v24 = vmul.f32 %v5139_v7, %v1948_v28  ;;  %v3320_v39 = vor.u32 %v3319_v18, %v3318_v1  ;;  %vm1703_vm15 = vmor %vm1671_vm9, %vm1687_vm12  ;;  %v5627_v18 = vpop.permute.xlu1 %1967 }
 0x225   : > { %v2220_v6 = vadd.f32 -0.19839334, %v2204_v42  ;;  %v2364_v23 = vadd.f32 -1.3886764, %v2348_v9  ;;  %v1623_v60 = vadd.f32 1000.0, %v1607_v26  ;;  %vm3315_vm14 = vcmp.lt.f32.partialorder %v3314_v37, 8388608.0  ;;  %vm1767_vm0 = vmor %vm1751_vm13, %vm1687_vm12 }
 0x226   : > { %v1495_v53 = vmul.f32 %v1479_v63, %v5480_v36  ;;  %v5579_v57 = vmul.f32 0.63661975, %v5571_v47  ;;  %v5589_v56 = vand.u32 3, %v3292_v48  ;;  %v3321_v36 = vsel %vm3315_vm14, %v3320_v39, %v5533_v2  ;;  %vm1815_vm1 = vmor %vm1671_vm9, %vm1751_vm13 }
 0x227   : > { %v2236_v50 = vmul.f32 %v2220_v6, %v5558_v20  ;;  %v2380_v19 = vmul.f32 %v2364_v23, %v5558_v20  ;;  %v2127_v38 = vmul.f32 1.5703125, %v3321_v36  ;;  %v5592_v22 = vadd.f32 %v2067_v15, %v1987_v33 }
 0x228   : > { %v1719_v16 = vsel %vm1703_vm15, %v1623_v60, %v1495_v53  ;;  %v1735_v25 = vsel %vm1703_vm15, %v1495_v53, %v1623_v60  ;;  %v2159_v33 = vmul.f32 0.0004838268, %v3321_v36  ;;  %v5604_v58 = vmul.f32 %v5139_v7, %v1958_v62  ;;  %v5653_v62 = vpop.permute.xlu1 %1977 }
 0x229   : > { %v1783_v54 = vsub.f32 0.0, %v1719_v16  ;;  %v1831_v35 = vsub.f32 0.0, %v1735_v25  ;;  %v2252_v51 = vadd.f32 8.333329, %v2236_v50  ;;  %v2396_v48 = vadd.f32 41.666622, %v2380_v19 }
 0x22a   : > { %v2143_v5 = vsub.f32 %v5514_v41, %v2127_v38  ;;  %v3332_v46 = vcvt.f32.s32 %v5579_v57  ;;  %vm2508_vm2 = vcmp.eq.s32.totalorder %v5589_v56, 1  ;;  %v3330_v41 = vand.u32 2147483647, %v5579_v57 }
 0x22b   : > { %v1799_v29 = vsel %vm1767_vm0, %v1783_v54, %v1719_v16  ;;  %v1847_v43 = vsel %vm1815_vm1, %v1831_v35, %v1735_v25  ;;  %v2268_v4 = vmul.f32 %v2252_v51, %v5558_v20  ;;  %v2412_v59 = vmul.f32 %v2396_v48, %v5558_v20 }
 0x22c   : > { %2859 = vst [vmem:[%s3982_s5 + $0x1f0] sm:$0xff] %v1799_v29  ;;  %2875 = vst [vmem:[%s3982_s5 + $0x1f8] sm:$0xff] %v1847_v43  ;;  %v5612_v10 = vsub.f32 %v2143_v5, %v2159_v33  ;;  %v3333_v7 = vcvt.s32.f32 %v3332_v46  ;;  %v5618_v8 = vmul.f32 0.63661975, %v5592_v22  ;;  %v2069_v3 = vmul.f32 %v5492_v52, %v2034_v49 }
 0x22d   : > { %v2284_v0 = vadd.f32 -166.66667, %v2268_v4  ;;  %v2428_v44 = vadd.f32 -500.0, %v2412_v59  ;;  %vm2524_vm3 = vcmp.eq.s32.totalorder %v5589_v56, 3  ;;  %v3335_v17 = vand.u32 2147483648, %v5579_v57 }
 0x22e   : > { %v5624_v28 = vmul.f32 %v5612_v10, %v5612_v10  ;;  %v3334_v37 = vand.u32 2147483647, %v3333_v7  ;;  %vm2588_vm4 = vcmp.eq.s32.totalorder %v5589_v56, 2  ;;  %v5634_v30 = vand.u32 3, %v3316_v12  ;;  %vm2540_vm6 = vmor %vm2508_vm2, %vm2524_vm3 }
 0x22f   : > { %v2300_v32 = vmul.f32 %v2284_v0, %v5558_v20  ;;  %v2444_v45 = vmul.f32 %v2428_v44, %v5558_v20  ;;  %v3348_v9 = vcvt.f32.s32 %v5618_v8  ;;  %vm3331_vm5 = vcmp.lt.f32.partialorder %v3330_v41, 8388608.0  ;;  %vm2604_vm7 = vmor %vm2588_vm4, %vm2524_vm3 }
 0x230   : > { %v2207_v40 = vmul.f32 0.0027183115, %v5624_v28  ;;  %v2351_v26 = vmul.f32 0.024390448, %v5624_v28  ;;  %v3336_v42 = vor.u32 %v3335_v17, %v3334_v37  ;;  %v3346_v63 = vand.u32 2147483647, %v5618_v8  ;;  %vm2652_vm8 = vmor %vm2508_vm2, %vm2588_vm4  ;;  %v2002_v37 = vpop.permute.xlu1 %2001 }
 0x231   : > { %v2316_v1 = vadd.f32 1000.0, %v2300_v32  ;;  %v5640_v15 = vadd.f32 %v2069_v3, %v1989_v24  ;;  %v3349_v2 = vcvt.s32.f32 %v3348_v9  ;;  %v2460_v39 = vadd.f32 1000.0, %v2444_v45 }
 0x232   : > { %v2223_v20 = vadd.f32 -0.19839334, %v2207_v40  ;;  %v2367_v6 = vadd.f32 -1.3886764, %v2351_v26  ;;  %v3337_v23 = vsel %vm3331_vm5, %v3336_v42, %v5579_v57  ;;  %v3351_v60 = vand.u32 2147483648, %v5618_v8 }
 0x233   : > { %v2332_v12 = vmul.f32 %v2316_v1, %v5545_v14  ;;  %v2129_v53 = vmul.f32 1.5703125, %v3337_v23  ;;  %v2161_v19 = vmul.f32 0.0004838268, %v3337_v23  ;;  %v3350_v36 = vand.u32 2147483647, %v3349_v2 }
 0x234   : > { %v2239_v24 = vmul.f32 %v2223_v20, %v5624_v28  ;;  %v2383_v50 = vmul.f32 %v2367_v6, %v5624_v28  ;;  %v5657_v38 = vmul.f32 0.63661975, %v5640_v15  ;;  %vm2511_vm9 = vcmp.eq.s32.totalorder %v5634_v30, 1 }
 0x235   : > { %v2556_v16 = vsel %vm2540_vm6, %v2460_v39, %v2332_v12  ;;  %v2572_v25 = vsel %vm2540_vm6, %v2332_v12, %v2460_v39  ;;  %v2145_v14 = vsub.f32 %v5571_v47, %v2129_v53  ;;  %vm3347_vm10 = vcmp.lt.f32.partialorder %v3346_v63, 8388608.0 }
 0x236   : > { %v2620_v54 = vsub.f32 0.0, %v2556_v16  ;;  %v2668_v35 = vsub.f32 0.0, %v2572_v25  ;;  %v2255_v51 = vadd.f32 8.333329, %v2239_v24  ;;  %v2399_v48 = vadd.f32 41.666622, %v2383_v50 }
 0x237   : > { %v5668_v47 = vsub.f32 %v2145_v14, %v2161_v19  ;;  %v3352_v5 = vor.u32 %v3351_v60, %v3350_v36  ;;  %v5680_v56 = vand.u32 3, %v3332_v46  ;;  %v3364_v41 = vcvt.f32.s32 %v5657_v38 }
 0x238   : > { %v2636_v33 = vsel %vm2604_vm7, %v2620_v54, %v2556_v16  ;;  %v2684_v49 = vsel %vm2652_vm8, %v2668_v35, %v2572_v25  ;;  %v2271_v29 = vmul.f32 %v2255_v51, %v5624_v28  ;;  %v2415_v43 = vmul.f32 %v2399_v48, %v5624_v28 }
 0x239   : > { %2892 = vst [vmem:[%s3982_s5 + $0x200] sm:$0xff] %v2636_v33  ;;  %2908 = vst [vmem:[%s3982_s5 + $0x208] sm:$0xff] %v2684_v49  ;;  %v5676_v4 = vmul.f32 %v5668_v47, %v5668_v47  ;;  %v3353_v59 = vsel %vm3347_vm10, %v3352_v5, %v5618_v8  ;;  %v3362_v3 = vand.u32 2147483647, %v5657_v38  ;;  %v3365_v57 = vcvt.s32.f32 %v3364_v41 }
 0x23a   : > { %v2287_v7 = vadd.f32 -166.66667, %v2271_v29  ;;  %v2431_v0 = vadd.f32 -500.0, %v2415_v43  ;;  %v2131_v44 = vmul.f32 1.5703125, %v3353_v59  ;;  %v2163_v45 = vmul.f32 0.0004838268, %v3353_v59 }
 0x23b   : > { %v2209_v17 = vmul.f32 0.0027183115, %v5676_v4  ;;  %v2353_v32 = vmul.f32 0.024390448, %v5676_v4  ;;  %v3367_v42 = vand.u32 2147483648, %v5657_v38  ;;  %v2061_v6 = vmul.f32 %v5492_v52, %v2002_v37 }
 0x23c   : > { %v2303_v46 = vmul.f32 %v2287_v7, %v5624_v28  ;;  %v2447_v40 = vmul.f32 %v2431_v0, %v5624_v28  ;;  %v2147_v26 = vsub.f32 %v5592_v22, %v2131_v44  ;;  %v3366_v20 = vand.u32 2147483647, %v3365_v57 }
 0x23d   : > { %v2225_v1 = vadd.f32 -0.19839334, %v2209_v17  ;;  %v2369_v63 = vadd.f32 -1.3886764, %v2353_v32  ;;  %vm2527_vm11 = vcmp.eq.s32.totalorder %v5634_v30, 3  ;;  %vm2591_vm12 = vcmp.eq.s32.totalorder %v5634_v30, 2 }
 0x23e   : > { %v2319_v23 = vadd.f32 1000.0, %v2303_v46  ;;  %v5696_v2 = vsub.f32 %v2147_v26, %v2163_v45  ;;  %v5702_v22 = vand.u32 3, %v3348_v9  ;;  %v3368_v39 = vor.u32 %v3367_v42, %v3366_v20  ;;  %vm2543_vm14 = vmor %vm2511_vm9, %vm2527_vm11  ;;  %v2042_v9 = vpop.permute.xlu0 %2041  ;;  %v2006_v45 = vpop.permute.xlu1 %2005 }
 0x23f   : > { %v2241_v12 = vmul.f32 %v2225_v1, %v5676_v4  ;;  %v2385_v28 = vmul.f32 %v2369_v63, %v5676_v4  ;;  %v2463_v60 = vadd.f32 1000.0, %v2447_v40  ;;  %vm3363_vm13 = vcmp.lt.f32.partialorder %v3362_v3, 8388608.0  ;;  %vm2607_vm1 = vmor %vm2591_vm12, %vm2527_vm11 }
 0x240   : > { %v2335_v53 = vmul.f32 %v2319_v23, %v5612_v10  ;;  %v5707_v24 = vmul.f32 %v5696_v2, %v5696_v2  ;;  %vm2513_vm15 = vcmp.eq.s32.totalorder %v5680_v56, 1  ;;  %vm2529_vm0 = vcmp.eq.s32.totalorder %v5680_v56, 3  ;;  %vm2655_vm2 = vmor %vm2511_vm9, %vm2591_vm12 }
 0x241   : > { %v2257_v50 = vadd.f32 8.333329, %v2241_v12  ;;  %v2401_v19 = vadd.f32 41.666622, %v2385_v28  ;;  %v3369_v8 = vsel %vm3363_vm13, %v3368_v39, %v5657_v38  ;;  %v5717_v10 = vadd.f32 %v2061_v6, %v5332_v11  ;;  %vm2545_vm7 = vmor %vm2513_vm15, %vm2529_vm0 }
 0x242   : > { %v2559_v36 = vsel %vm2543_vm14, %v2463_v60, %v2335_v53  ;;  %v2575_v16 = vsel %vm2543_vm14, %v2335_v53, %v2463_v60  ;;  %v2211_v25 = vmul.f32 0.0027183115, %v5707_v24  ;;  %v2355_v14 = vmul.f32 0.024390448, %v5707_v24 }
 0x243   : > { %v2623_v54 = vsub.f32 0.0, %v2559_v36  ;;  %v2671_v35 = vsub.f32 0.0, %v2575_v16  ;;  %v2273_v51 = vmul.f32 %v2257_v50, %v5676_v4  ;;  %v2417_v11 = vmul.f32 %v2401_v19, %v5676_v4 }
 0x244   : > { %v2227_v48 = vadd.f32 -0.19839334, %v2211_v25  ;;  %v2371_v5 = vadd.f32 -1.3886764, %v2355_v14  ;;  %v2133_v33 = vmul.f32 1.5703125, %v3369_v8  ;;  %v2071_v49 = vmul.f32 %v5492_v52, %v2042_v9 }
 0x245   : > { %v2639_v29 = vsel %vm2607_vm1, %v2623_v54, %v2559_v36  ;;  %v2687_v43 = vsel %vm2655_vm2, %v2671_v35, %v2575_v16  ;;  %v2289_v59 = vadd.f32 -166.66667, %v2273_v51  ;;  %v2433_v7 = vadd.f32 -500.0, %v2417_v11 }
 0x246   : > { %2895 = vst [vmem:[%s3982_s5 + $0x230] sm:$0xff] %v2639_v29  ;;  %2911 = vst [vmem:[%s3982_s5 + $0x238] sm:$0xff] %v2687_v43  ;;  %v2243_v0 = vmul.f32 %v2227_v48, %v5707_v24  ;;  %v2387_v44 = vmul.f32 %v2371_v5, %v5707_v24  ;;  %v2149_v3 = vsub.f32 %v5640_v15, %v2133_v33  ;;  %v2165_v37 = vmul.f32 0.0004838268, %v3369_v8 }
 0x247   : > { %v2305_v30 = vmul.f32 %v2289_v59, %v5676_v4  ;;  %v2449_v17 = vmul.f32 %v2433_v7, %v5676_v4  ;;  %vm2593_vm3 = vcmp.eq.s32.totalorder %v5680_v56, 2  ;;  %v5741_v32 = vmul.f32 0.63661975, %v5717_v10 }
 0x248   : > { %v2259_v57 = vadd.f32 8.333329, %v2243_v0  ;;  %v2403_v46 = vadd.f32 41.666622, %v2387_v44  ;;  %vm2515_vm4 = vcmp.eq.s32.totalorder %v5702_v22, 1  ;;  %v5744_v40 = vsub.f32 %v2149_v3, %v2165_v37  ;;  %vm2609_vm8 = vmor %vm2593_vm3, %vm2529_vm0 }
 0x249   : > { %v2321_v26 = vadd.f32 1000.0, %v2305_v30  ;;  %vm2531_vm5 = vcmp.eq.s32.totalorder %v5702_v22, 3  ;;  %v3300_v15 = vcvt.f32.s32 %v5741_v32  ;;  %v5749_v42 = vadd.f32 %v2071_v49, %v5604_v58  ;;  %vm2657_vm9 = vmor %vm2513_vm15, %vm2593_vm3 }
 0x24a   : > { %v2275_v4 = vmul.f32 %v2259_v57, %v5707_v24  ;;  %v2419_v1 = vmul.f32 %v2403_v46, %v5707_v24  ;;  %vm2595_vm6 = vcmp.eq.s32.totalorder %v5702_v22, 2  ;;  %v5756_v63 = vmul.f32 %v5744_v40, %v5744_v40  ;;  %vm2547_vm11 = vmor %vm2515_vm4, %vm2531_vm5 }
 0x24b   : > { %v2062_v20 = vmul.f32 %v5492_v52, %v2006_v45  ;;  %v2337_v6 = vmul.f32 %v2321_v26, %v5668_v47  ;;  %v2465_v23 = vadd.f32 1000.0, %v2449_v17  ;;  %v3298_v12 = vand.u32 2147483647, %v5741_v32  ;;  %vm2611_vm12 = vmor %vm2595_vm6, %vm2531_vm5 }
 0x24c   : > { %v3301_v58 = vcvt.s32.f32 %v3300_v15  ;;  %v2291_v28 = vadd.f32 -166.66667, %v2275_v4  ;;  %v2435_v39 = vadd.f32 -500.0, %v2419_v1  ;;  %v2213_v53 = vmul.f32 0.0027183115, %v5756_v63  ;;  %vm2659_vm13 = vmor %vm2515_vm4, %vm2595_vm6 }
 0x24d   : > { %v3303_v60 = vand.u32 2147483648, %v5741_v32  ;;  %v2561_v50 = vsel %vm2545_vm7, %v2465_v23, %v2337_v6  ;;  %v2577_v19 = vsel %vm2545_vm7, %v2337_v6, %v2465_v23  ;;  %v2357_v47 = vmul.f32 0.024390448, %v5756_v63 }
 0x24e   : > { %v3302_v8 = vand.u32 2147483647, %v3301_v58  ;;  %v2625_v9 = vsub.f32 0.0, %v2561_v50  ;;  %v2673_v36 = vsub.f32 0.0, %v2577_v19  ;;  %v2307_v16 = vmul.f32 %v2291_v28, %v5707_v24 }
 0x24f   : > { %v2451_v25 = vmul.f32 %v2435_v39, %v5707_v24  ;;  %v2229_v14 = vadd.f32 -0.19839334, %v2213_v53  ;;  %v2373_v54 = vadd.f32 -1.3886764, %v2357_v47  ;;  %vm3299_vm10 = vcmp.lt.f32.partialorder %v3298_v12, 8388608.0  ;;  %v2050_v12 = vpop.permute.xlu0 %2049 }
 0x250   : > { %v3304_v35 = vor.u32 %v3303_v60, %v3302_v8  ;;  %v2641_v51 = vsel %vm2609_vm8, %v2625_v9, %v2561_v50  ;;  %v2689_v11 = vsel %vm2657_vm9, %v2673_v36, %v2577_v19  ;;  %v2323_v48 = vadd.f32 1000.0, %v2307_v16 }
 0x251   : > { %v5781_v5 = vadd.f32 %v2062_v20, %v5373_v61  ;;  %2897 = vst [vmem:[%s3982_s5 + $0x250] sm:$0xff] %v2641_v51  ;;  %2913 = vst [vmem:[%s3982_s5 + $0x258] sm:$0xff] %v2689_v11  ;;  %v2245_v33 = vmul.f32 %v2229_v14, %v5756_v63  ;;  %v2389_v24 = vmul.f32 %v2373_v54, %v5756_v63  ;;  %v5789_v56 = vand.u32 3, %v3364_v41  ;;  %v5796_v61 = vld [vmem:[%s6379_s1] ss:$0 sm:$0xff] }
 0x252   : > { %v3305_v49 = vsel %vm3299_vm10, %v3304_v35, %v5741_v32  ;;  %v2339_v29 = vmul.f32 %v2323_v48, %v5696_v2  ;;  %v2467_v43 = vadd.f32 1000.0, %v2451_v25  ;;  %v5800_v0 = vmul.f32 %v5796_v61, %v3955_v55 }
 0x253   : > { %v2125_v59 = vmul.f32 1.5703125, %v3305_v49  ;;  %v2157_v7 = vmul.f32 0.0004838268, %v3305_v49  ;;  %v2261_v38 = vadd.f32 8.333329, %v2245_v33  ;;  %v5821_v46 = vmul.f32 %v5796_v61, %v3992_v27 }
 0x254   : > { %v2405_v41 = vadd.f32 41.666622, %v2389_v24  ;;  %v5807_v2 = vmul.f32 0.63661975, %v5749_v42  ;;  %v2563_v44 = vsel %vm2547_vm11, %v2467_v43, %v2339_v29  ;;  %v2579_v3 = vsel %vm2547_vm11, %v2339_v29, %v2467_v43 }
 0x255   : > { %v2141_v37 = vsub.f32 %v5717_v10, %v2125_v59  ;;  %v5811_v30 = vmul.f32 0.63661975, %v5781_v5  ;;  %v2627_v55 = vsub.f32 0.0, %v2563_v44  ;;  %v2675_v17 = vsub.f32 0.0, %v2579_v3 }
 0x256   : > { %v2277_v45 = vmul.f32 %v2261_v38, %v5756_v63  ;;  %v2421_v57 = vmul.f32 %v2405_v41, %v5756_v63  ;;  %v1993_v10 = vmul.f32 %v5796_v61, %v5627_v18  ;;  %v3380_v4 = vcvt.f32.s32 %v5807_v2 }
 0x257   : > { %v5829_v26 = vsub.f32 %v2141_v37, %v2157_v7  ;;  %v2643_v1 = vsel %vm2611_vm12, %v2627_v55, %v2563_v44  ;;  %v2691_v20 = vsel %vm2659_vm13, %v2675_v17, %v2579_v3  ;;  %vm2517_vm14 = vcmp.eq.s32.totalorder %v5789_v56, 1  ;;  %v2014_v17 = vpop.permute.xlu1 %2013 }
 0x258   : > { %v2293_v6 = vadd.f32 -166.66667, %v2277_v45  ;;  %v2437_v23 = vadd.f32 -500.0, %v2421_v57  ;;  %2899 = vst [vmem:[%s3982_s5 + $0x270] sm:$0xff] %v2643_v1  ;;  %2915 = vst [vmem:[%s3982_s5 + $0x278] sm:$0xff] %v2691_v20  ;;  %v3381_v22 = vcvt.s32.f32 %v3380_v4  ;;  %v3383_v39 = vand.u32 2147483648, %v5807_v2 }
 0x259   : > { %v5837_v27 = vmul.f32 %v5829_v26, %v5829_v26  ;;  %v3378_v18 = vand.u32 2147483647, %v5807_v2  ;;  %v3308_v53 = vcvt.f32.s32 %v5811_v30  ;;  %v5848_v60 = vmul.f32 %v5796_v61, %v5653_v62 }
 0x25a   : > { %v2309_v58 = vmul.f32 %v2293_v6, %v5756_v63  ;;  %v2453_v28 = vmul.f32 %v2437_v23, %v5756_v63  ;;  %v3382_v47 = vand.u32 2147483647, %v3381_v22  ;;  %vm2533_vm15 = vcmp.eq.s32.totalorder %v5789_v56, 3 }
 0x25b   : > { %v2205_v50 = vmul.f32 0.0027183115, %v5837_v27  ;;  %v2349_v19 = vmul.f32 0.024390448, %v5837_v27  ;;  %vm2597_vm0 = vcmp.eq.s32.totalorder %v5789_v56, 2  ;;  %v2073_v63 = vmul.f32 %v5492_v52, %v2050_v12  ;;  %vm2549_vm2 = vmor %vm2517_vm14, %vm2533_vm15 }
 0x25c   : > { %v2325_v8 = vadd.f32 1000.0, %v2309_v58  ;;  %v5857_v16 = vand.u32 3, %v3300_v15  ;;  %v3384_v62 = vor.u32 %v3383_v39, %v3382_v47  ;;  %v2469_v14 = vadd.f32 1000.0, %v2453_v28  ;;  %vm2613_vm3 = vmor %vm2597_vm0, %vm2533_vm15 }
 0x25d   : > { %v2221_v9 = vadd.f32 -0.19839334, %v2205_v50  ;;  %v2365_v36 = vadd.f32 -1.3886764, %v2349_v19  ;;  %vm3379_vm1 = vcmp.lt.f32.partialorder %v3378_v18, 8388608.0  ;;  %v3309_v54 = vcvt.s32.f32 %v3308_v53  ;;  %vm2661_vm4 = vmor %vm2517_vm14, %vm2597_vm0 }
 0x25e   : > { %v2341_v25 = vmul.f32 %v2325_v8, %v5744_v40  ;;  %v3385_v32 = vsel %vm3379_vm1, %v3384_v62, %v5807_v2  ;;  %v3306_v15 = vand.u32 2147483647, %v5811_v30  ;;  %v5870_v33 = vadd.f32 %v2073_v63, %v1993_v10 }
 0x25f   : > { %v2237_v35 = vmul.f32 %v2221_v9, %v5837_v27  ;;  %v2381_v51 = vmul.f32 %v2365_v36, %v5837_v27  ;;  %v2135_v48 = vmul.f32 1.5703125, %v3385_v32  ;;  %v2167_v7 = vmul.f32 0.0004838268, %v3385_v32 }
 0x260   : > { %v2565_v11 = vsel %vm2549_vm2, %v2469_v14, %v2341_v25  ;;  %v2581_v40 = vsel %vm2549_vm2, %v2341_v25, %v2469_v14  ;;  %v3310_v38 = vand.u32 2147483647, %v3309_v54  ;;  %v3311_v41 = vand.u32 2147483648, %v5811_v30 }
 0x261   : > { %v2629_v24 = vsub.f32 0.0, %v2565_v11  ;;  %v2677_v49 = vsub.f32 0.0, %v2581_v40  ;;  %v2253_v29 = vadd.f32 8.333329, %v2237_v35  ;;  %v2397_v43 = vadd.f32 41.666622, %v2381_v51 }
 0x262   : > { %v2151_v59 = vsub.f32 %v5749_v42, %v2135_v48  ;;  %vm2509_vm5 = vcmp.eq.s32.totalorder %v5857_v16, 1  ;;  %v3312_v56 = vor.u32 %v3311_v41, %v3310_v38  ;;  %v5890_v42 = vmul.f32 0.63661975, %v5870_v33 }
 0x263   : > { %v2645_v44 = vsel %vm2613_vm3, %v2629_v24, %v2565_v11  ;;  %v2693_v3 = vsel %vm2661_vm4, %v2677_v49, %v2581_v40  ;;  %v2269_v37 = vmul.f32 %v2253_v29, %v5837_v27  ;;  %v2413_v55 = vmul.f32 %v2397_v43, %v5837_v27 }
 0x264   : > { %2901 = vst [vmem:[%s3982_s5 + $0x290] sm:$0xff] %v2645_v44  ;;  %2917 = vst [vmem:[%s3982_s5 + $0x298] sm:$0xff] %v2693_v3  ;;  %v5887_v45 = vsub.f32 %v2151_v59, %v2167_v7  ;;  %vm2525_vm6 = vcmp.eq.s32.totalorder %v5857_v16, 3  ;;  %vm3307_vm7 = vcmp.lt.f32.partialorder %v3306_v15, 8388608.0  ;;  %v3396_v6 = vcvt.f32.s32 %v5890_v42 }
 0x265   : > { %v2285_v57 = vadd.f32 -166.66667, %v2269_v37  ;;  %v2429_v10 = vadd.f32 -500.0, %v2413_v55  ;;  %v3313_v20 = vsel %vm3307_vm7, %v3312_v56, %v5811_v30  ;;  %v2064_v23 = vmul.f32 %v5492_v52, %v2014_v17  ;;  %vm2541_vm9 = vmor %vm2509_vm5, %vm2525_vm6 }
 0x266   : > { %v5895_v1 = vmul.f32 %v5887_v45, %v5887_v45  ;;  %v5904_v12 = vand.u32 3, %v3380_v4  ;;  %v2126_v58 = vmul.f32 1.5703125, %v3313_v20  ;;  %v3394_v50 = vand.u32 2147483647, %v5890_v42 }
 0x267   : > { %v2301_v18 = vmul.f32 %v2285_v57, %v5837_v27  ;;  %v2445_v22 = vmul.f32 %v2429_v10, %v5837_v27  ;;  %v3397_v19 = vcvt.s32.f32 %v3396_v6  ;;  %v2158_v63 = vmul.f32 0.0004838268, %v3313_v20 }
 0x268   : > { %v2215_v28 = vmul.f32 0.0027183115, %v5895_v1  ;;  %v2359_v39 = vmul.f32 0.024390448, %v5895_v1  ;;  %v2142_v8 = vsub.f32 %v5781_v5, %v2126_v58  ;;  %v3399_v27 = vand.u32 2147483648, %v5890_v42 }
 0x269   : > { %v2317_v47 = vadd.f32 1000.0, %v2301_v18  ;;  %v3398_v4 = vand.u32 2147483647, %v3397_v19  ;;  %v5914_v36 = vadd.f32 %v2064_v23, %v5800_v0  ;;  %v2461_v25 = vadd.f32 1000.0, %v2445_v22 }
 0x26a   : > { %v2231_v9 = vadd.f32 -0.19839334, %v2215_v28  ;;  %v2375_v2 = vadd.f32 -1.3886764, %v2359_v39  ;;  %vm2589_vm8 = vcmp.eq.s32.totalorder %v5857_v16, 2  ;;  %v5918_v14 = vsub.f32 %v2142_v8, %v2158_v63 }
 0x26b   : > { %v2333_v62 = vmul.f32 %v2317_v47, %v5829_v26  ;;  %vm5926_vm10 = vcmp.lt.f32.partialorder %v3394_v50, 8388608.0  ;;  %v3400_v0 = vor.u32 %v3399_v27, %v3398_v4  ;;  %v2058_v26 = vpop.permute.xlu0 %2057  ;;  %v5935_v11 = vmul.f32 0.63661975, %v5914_v36  ;;  %vm2605_vm11 = vmor %vm2589_vm8, %vm2525_vm6 }
 0x26c   : > { %v2247_v5 = vmul.f32 %v2231_v9, %v5895_v1  ;;  %v2391_v54 = vmul.f32 %v2375_v2, %v5895_v1  ;;  %v5932_v15 = vmul.f32 %v5918_v14, %v5918_v14  ;;  %vm2519_vm12 = vcmp.eq.s32.totalorder %v5904_v12, 1  ;;  %vm2653_vm14 = vmor %vm2509_vm5, %vm2589_vm8 }
 0x26d   : > { %v2557_v51 = vsel %vm2541_vm9, %v2461_v25, %v2333_v62  ;;  %v2573_v32 = vsel %vm2541_vm9, %v2333_v62, %v2461_v25  ;;  %vm2535_vm13 = vcmp.eq.s32.totalorder %v5904_v12, 3  ;;  %v3401_v59 = vsel %vm5926_vm10, %v3400_v0, %v5890_v42 }
 0x26e   : > { %v2621_v40 = vsub.f32 0.0, %v2557_v51  ;;  %v2669_v48 = vsub.f32 0.0, %v2573_v32  ;;  %v2263_v24 = vadd.f32 8.333329, %v2247_v5  ;;  %v2407_v49 = vadd.f32 41.666622, %v2391_v54  ;;  %vm2551_vm2 = vmor %vm2519_vm12, %vm2535_vm13 }
 0x26f   : > { %v2206_v29 = vmul.f32 0.0027183115, %v5932_v15  ;;  %v2350_v43 = vmul.f32 0.024390448, %v5932_v15  ;;  %v2075_v7 = vmul.f32 %v5492_v52, %v2058_v26  ;;  %vm2599_vm15 = vcmp.eq.s32.totalorder %v5904_v12, 2 }
 0x270   : > { %v2637_v38 = vsel %vm2605_vm11, %v2621_v40, %v2557_v51  ;;  %v2685_v41 = vsel %vm2653_vm14, %v2669_v48, %v2573_v32  ;;  %v2279_v44 = vmul.f32 %v2263_v24, %v5895_v1  ;;  %v2423_v3 = vmul.f32 %v2407_v49, %v5895_v1  ;;  %vm2615_vm4 = vmor %vm2599_vm15, %vm2535_vm13 }
 0x271   : > { %2893 = vst [vmem:[%s3982_s5 + $0x210] sm:$0xff] %v2637_v38  ;;  %2909 = vst [vmem:[%s3982_s5 + $0x218] sm:$0xff] %v2685_v41  ;;  %v2222_v16 = vadd.f32 -0.19839334, %v2206_v29  ;;  %v2366_v37 = vadd.f32 -1.3886764, %v2350_v43  ;;  %v3324_v52 = vcvt.f32.s32 %v5935_v11  ;;  %v5971_v30 = vadd.f32 %v2075_v7, %v5848_v60 }
 0x272   : > { %v2137_v55 = vmul.f32 1.5703125, %v3401_v59  ;;  %v2295_v17 = vadd.f32 -166.66667, %v2279_v44  ;;  %v2439_v56 = vadd.f32 -500.0, %v2423_v3  ;;  %v5960_v57 = vand.u32 3, %v3308_v53  ;;  %vm2663_vm5 = vmor %vm2519_vm12, %vm2599_vm15 }
 0x273   : > { %v2238_v10 = vmul.f32 %v2222_v16, %v5932_v15  ;;  %v2382_v20 = vmul.f32 %v2366_v37, %v5932_v15  ;;  %v2169_v18 = vmul.f32 0.0004838268, %v3401_v59  ;;  %v3325_v28 = vcvt.s32.f32 %v3324_v52 }
 0x274   : > { %v2153_v23 = vsub.f32 %v5870_v33, %v2137_v55  ;;  %v2311_v22 = vmul.f32 %v2295_v17, %v5895_v1  ;;  %v2455_v58 = vmul.f32 %v2439_v56, %v5895_v1  ;;  %v3322_v19 = vand.u32 2147483647, %v5935_v11  ;;  %v2022_v55 = vpop.permute.xlu1 %2021 }
 0x275   : > { %v2254_v53 = vadd.f32 8.333329, %v2238_v10  ;;  %v2398_v39 = vadd.f32 41.666622, %v2382_v20  ;;  %vm2510_vm0 = vcmp.eq.s32.totalorder %v5960_v57, 1  ;;  %v3327_v8 = vand.u32 2147483648, %v5935_v11 }
 0x276   : > { %v5973_v50 = vsub.f32 %v2153_v23, %v2169_v18  ;;  %v2327_v47 = vadd.f32 1000.0, %v2311_v22  ;;  %v3326_v33 = vand.u32 2147483647, %v3325_v28  ;;  %vm2526_vm1 = vcmp.eq.s32.totalorder %v5960_v57, 3 }
 0x277   : > { %v2270_v1 = vmul.f32 %v2254_v53, %v5932_v15  ;;  %v2414_v63 = vmul.f32 %v2398_v39, %v5932_v15  ;;  %v2471_v9 = vadd.f32 1000.0, %v2455_v58  ;;  %v5987_v4 = vmul.f32 0.63661975, %v5971_v30  ;;  %vm2542_vm7 = vmor %vm2510_vm0, %vm2526_vm1 }
 0x278   : > { %v5983_v60 = vmul.f32 %v5973_v50, %v5973_v50  ;;  %v2343_v27 = vmul.f32 %v2327_v47, %v5887_v45  ;;  %v3328_v2 = vor.u32 %v3327_v8, %v3326_v33  ;;  %vm3323_vm3 = vcmp.lt.f32.partialorder %v3322_v19, 8388608.0 }
 0x279   : > { %v2286_v62 = vadd.f32 -166.66667, %v2270_v1  ;;  %v2430_v25 = vadd.f32 -500.0, %v2414_v63  ;;  %v3412_v29 = vcvt.f32.s32 %v5987_v4  ;;  %vm2590_vm6 = vcmp.eq.s32.totalorder %v5960_v57, 2 }
 0x27a   : > { %v2217_v5 = vmul.f32 0.0027183115, %v5983_v60  ;;  %v2567_v54 = vsel %vm2551_vm2, %v2471_v9, %v2343_v27  ;;  %v2583_v35 = vsel %vm2551_vm2, %v2343_v27, %v2471_v9  ;;  %v2361_v0 = vmul.f32 0.024390448, %v5983_v60  ;;  %vm2606_vm8 = vmor %vm2590_vm6, %vm2526_vm1  ;;  %v2030_v27 = vpop.permute.xlu1 %2029 }
 0x27b   : > { %v3329_v45 = vsel %vm3323_vm3, %v3328_v2, %v5935_v11  ;;  %v2631_v26 = vsub.f32 0.0, %v2567_v54  ;;  %v2679_v51 = vsub.f32 0.0, %v2583_v35  ;;  %v2302_v32 = vmul.f32 %v2286_v62, %v5932_v15  ;;  %vm2654_vm9 = vmor %vm2510_vm0, %vm2590_vm6 }
 0x27c   : > { %v2446_v40 = vmul.f32 %v2430_v25, %v5932_v15  ;;  %v2233_v48 = vadd.f32 -0.19839334, %v2217_v5  ;;  %v2377_v24 = vadd.f32 -1.3886764, %v2361_v0  ;;  %v2128_v49 = vmul.f32 1.5703125, %v3329_v45 }
 0x27d   : > { %v2647_v43 = vsel %vm2615_vm4, %v2631_v26, %v2567_v54  ;;  %v2695_v59 = vsel %vm2663_vm5, %v2679_v51, %v2583_v35  ;;  %v2318_v7 = vadd.f32 1000.0, %v2302_v32  ;;  %v2160_v12 = vmul.f32 0.0004838268, %v3329_v45  ;;  %v6060_v5 = vld [vmem:[%s6379_s1 + $0x1] ss:$0 sm:$0xff] }
 0x27e   : > { %2903 = vst [vmem:[%s3982_s5 + $0x2b0] sm:$0xff] %v2647_v43  ;;  %2919 = vst [vmem:[%s3982_s5 + $0x2b8] sm:$0xff] %v2695_v59  ;;  %v2249_v38 = vmul.f32 %v2233_v48, %v5983_v60  ;;  %v2393_v15 = vmul.f32 %v2377_v24, %v5983_v60  ;;  %v2144_v41 = vsub.f32 %v5914_v36, %v2128_v49  ;;  %v2462_v3 = vadd.f32 1000.0, %v2446_v40 }
 0x27f   : > { %v2334_v44 = vmul.f32 %v2318_v7, %v5918_v14  ;;  %v3410_v16 = vand.u32 2147483647, %v5987_v4  ;;  %v3413_v37 = vcvt.s32.f32 %v3412_v29  ;;  %v6023_v36 = vand.u32 3, %v3396_v6 }
 0x280   : > { %v2265_v17 = vadd.f32 8.333329, %v2249_v38  ;;  %v2409_v56 = vadd.f32 41.666622, %v2393_v15  ;;  %v6025_v10 = vsub.f32 %v2144_v41, %v2160_v12  ;;  %v3415_v18 = vand.u32 2147483648, %v5987_v4  ;;  %v2038_v12 = vpop.permute.xlu1 %2037 }
 0x281   : > { %v2558_v14 = vsel %vm2542_vm7, %v2462_v3, %v2334_v44  ;;  %v2574_v20 = vsel %vm2542_vm7, %v2334_v44, %v2462_v3  ;;  %v3414_v23 = vand.u32 2147483647, %v3413_v37  ;;  %v1988_v28 = vmul.f32 %v5796_v61, %v4016_v34 }
 0x282   : > { %v2622_v22 = vsub.f32 0.0, %v2558_v14  ;;  %v2670_v58 = vsub.f32 0.0, %v2574_v20  ;;  %v2281_v42 = vmul.f32 %v2265_v17, %v5983_v60  ;;  %v2425_v6 = vmul.f32 %v2409_v56, %v5983_v60 }
 0x283   : > { %v6042_v53 = vmul.f32 %v6025_v10, %v6025_v10  ;;  %vm3411_vm10 = vcmp.lt.f32.partialorder %v3410_v16, 8388608.0  ;;  %v3416_v39 = vor.u32 %v3415_v18, %v3414_v23  ;;  %v6046_v1 = vmul.f32 %v5796_v61, %v4051_v13 }
 0x284   : > { %v2638_v19 = vsel %vm2606_vm8, %v2622_v22, %v2558_v14  ;;  %v2686_v47 = vsel %vm2654_vm9, %v2670_v58, %v2574_v20  ;;  %v2297_v33 = vadd.f32 -166.66667, %v2281_v42  ;;  %v2441_v8 = vadd.f32 -500.0, %v2425_v6 }
 0x285   : > { %2894 = vst [vmem:[%s3982_s5 + $0x220] sm:$0xff] %v2638_v19  ;;  %2910 = vst [vmem:[%s3982_s5 + $0x228] sm:$0xff] %v2686_v47  ;;  %v2208_v34 = vmul.f32 0.0027183115, %v6042_v53  ;;  %v2352_v57 = vmul.f32 0.024390448, %v6042_v53  ;;  %v3417_v63 = vsel %vm3411_vm10, %v3416_v39, %v5987_v4  ;;  %v2066_v54 = vmul.f32 %v6060_v5, %v2022_v55 }
 0x286   : > { %v2313_v9 = vmul.f32 %v2297_v33, %v5983_v60  ;;  %v2457_v2 = vmul.f32 %v2441_v8, %v5983_v60  ;;  %vm2521_vm11 = vcmp.eq.s32.totalorder %v6023_v36, 1  ;;  %v2139_v62 = vmul.f32 1.5703125, %v3417_v63  ;;  %v2046_v33 = vpop.permute.xlu1 %2045 }
 0x287   : > { %vm2537_vm12 = vcmp.eq.s32.totalorder %v6023_v36, 3  ;;  %v2224_v13 = vadd.f32 -0.19839334, %v2208_v34  ;;  %v2368_v25 = vadd.f32 -1.3886764, %v2352_v57  ;;  %v2068_v60 = vmul.f32 %v6060_v5, %v2030_v27 }
 0x288   : > { %v2329_v35 = vadd.f32 1000.0, %v2313_v9  ;;  %v2155_v0 = vsub.f32 %v5971_v30, %v2139_v62  ;;  %v2171_v45 = vmul.f32 0.0004838268, %v3417_v63  ;;  %vm2601_vm13 = vcmp.eq.s32.totalorder %v6023_v36, 2  ;;  %vm2553_vm14 = vmor %vm2521_vm11, %vm2537_vm12 }
 0x289   : > { %v2240_v26 = vmul.f32 %v2224_v13, %v6042_v53  ;;  %v2384_v51 = vmul.f32 %v2368_v25, %v6042_v53  ;;  %v6069_v32 = vadd.f32 %v2066_v54, %v5821_v46  ;;  %v2473_v48 = vadd.f32 1000.0, %v2457_v2  ;;  %vm2617_vm15 = vmor %vm2601_vm13, %vm2537_vm12 }
 0x28a   : > { %v2345_v40 = vmul.f32 %v2329_v35, %v5973_v50  ;;  %v6074_v24 = vand.u32 3, %v3324_v52  ;;  %v6076_v30 = vsub.f32 %v2155_v0, %v2171_v45  ;;  %v6080_v49 = vmul.f32 %v5796_v61, %v4074_v31  ;;  %vm2665_vm0 = vmor %vm2521_vm11, %vm2601_vm13 }
 0x28b   : > { %v2256_v46 = vadd.f32 8.333329, %v2240_v26  ;;  %v2400_v43 = vadd.f32 41.666622, %v2384_v51  ;;  %v6087_v50 = vmul.f32 0.63661975, %v6069_v32  ;;  %v6093_v7 = vadd.f32 %v2068_v60, %v1988_v28 }
 0x28c   : > { %v2569_v59 = vsel %vm2553_vm14, %v2473_v48, %v2345_v40  ;;  %v2585_v11 = vsel %vm2553_vm14, %v2345_v40, %v2473_v48  ;;  %v6091_v52 = vmul.f32 %v6076_v30, %v6076_v30  ;;  %vm2512_vm1 = vcmp.eq.s32.totalorder %v6074_v24, 1 }
 0x28d   : > { %v2633_v31 = vsub.f32 0.0, %v2569_v59  ;;  %v2681_v38 = vsub.f32 0.0, %v2585_v11  ;;  %v2272_v15 = vmul.f32 %v2256_v46, %v6042_v53  ;;  %v2416_v41 = vmul.f32 %v2400_v43, %v6042_v53 }
 0x28e   : > { %v2219_v44 = vmul.f32 0.0027183115, %v6091_v52  ;;  %v2363_v3 = vmul.f32 0.024390448, %v6091_v52  ;;  %v3340_v16 = vcvt.f32.s32 %v6087_v50  ;;  %v2070_v23 = vmul.f32 %v6060_v5, %v2038_v12 }
 0x28f   : > { %v2649_v37 = vsel %vm2617_vm15, %v2633_v31, %v2569_v59  ;;  %v2697_v55 = vsel %vm2665_vm0, %v2681_v38, %v2585_v11  ;;  %v2288_v17 = vadd.f32 -166.66667, %v2272_v15  ;;  %v2432_v56 = vadd.f32 -500.0, %v2416_v41 }
 0x290   : > { %2905 = vst [vmem:[%s3982_s5 + $0x2d0] sm:$0xff] %v2649_v37  ;;  %2921 = vst [vmem:[%s3982_s5 + $0x2d8] sm:$0xff] %v2697_v55  ;;  %v2235_v14 = vadd.f32 -0.19839334, %v2219_v44  ;;  %v2379_v20 = vadd.f32 -1.3886764, %v2363_v3  ;;  %v3341_v36 = vcvt.s32.f32 %v3340_v16  ;;  %v6130_v63 = vadd.f32 %v2070_v23, %v6046_v1 }
 0x291   : > { %v2304_v18 = vmul.f32 %v2288_v17, %v6042_v53  ;;  %v2448_v22 = vmul.f32 %v2432_v56, %v6042_v53  ;;  %v3338_v58 = vand.u32 2147483647, %v6087_v50  ;;  %v6118_v42 = vmul.f32 0.63661975, %v6093_v7 }
 0x292   : > { %v2251_v6 = vmul.f32 %v2235_v14, %v6091_v52  ;;  %v2395_v28 = vmul.f32 %v2379_v20, %v6091_v52  ;;  %v3342_v39 = vand.u32 2147483647, %v3341_v36  ;;  %v3343_v19 = vand.u32 2147483648, %v6087_v50 }
 0x293   : > { %v2320_v47 = vadd.f32 1000.0, %v2304_v18  ;;  %vm2528_vm2 = vcmp.eq.s32.totalorder %v6074_v24, 3  ;;  %vm2592_vm3 = vcmp.eq.s32.totalorder %v6074_v24, 2  ;;  %v6127_v53 = vand.u32 3, %v3412_v29 }
 0x294   : > { %v2267_v8 = vadd.f32 8.333329, %v2251_v6  ;;  %v2411_v34 = vadd.f32 41.666622, %v2395_v28  ;;  %v3344_v57 = vor.u32 %v3343_v19, %v3342_v39  ;;  %v2464_v9 = vadd.f32 1000.0, %v2448_v22  ;;  %vm2544_vm5 = vmor %vm2512_vm1, %vm2528_vm2 }
 0x295   : > { %v2336_v27 = vmul.f32 %v2320_v47, %v6025_v10  ;;  %vm3339_vm4 = vcmp.lt.f32.partialorder %v3338_v58, 8388608.0  ;;  %v3356_v2 = vcvt.f32.s32 %v6118_v42  ;;  %v2072_v1 = vmul.f32 %v6060_v5, %v2046_v33  ;;  %vm2608_vm6 = vmor %vm2592_vm3, %vm2528_vm2  ;;  %v2054_v58 = vpop.permute.xlu1 %2053 }
 0x296   : > { %v2283_v4 = vmul.f32 %v2267_v8, %v6091_v52  ;;  %v2427_v29 = vmul.f32 %v2411_v34, %v6091_v52  ;;  %v3345_v62 = vsel %vm3339_vm4, %v3344_v57, %v6087_v50  ;;  %v3354_v54 = vand.u32 2147483647, %v6118_v42  ;;  %vm2656_vm7 = vmor %vm2512_vm1, %vm2592_vm3 }
 0x297   : > { %v2560_v13 = vsel %vm2544_vm5, %v2464_v9, %v2336_v27  ;;  %v2576_v25 = vsel %vm2544_vm5, %v2336_v27, %v2464_v9  ;;  %v2130_v10 = vmul.f32 1.5703125, %v3345_v62  ;;  %v2162_v51 = vmul.f32 0.0004838268, %v3345_v62 }
 0x298   : > { %v2624_v35 = vsub.f32 0.0, %v2560_v13  ;;  %v2672_v0 = vsub.f32 0.0, %v2576_v25  ;;  %v2299_v45 = vadd.f32 -166.66667, %v2283_v4  ;;  %v2443_v60 = vadd.f32 -500.0, %v2427_v29 }
 0x299   : > { %v2146_v26 = vsub.f32 %v6069_v32, %v2130_v10  ;;  %v3357_v40 = vcvt.s32.f32 %v3356_v2  ;;  %v6155_v48 = vmul.f32 0.63661975, %v6130_v63  ;;  %vm2523_vm8 = vcmp.eq.s32.totalorder %v6127_v53, 1 }
 0x29a   : > { %v2640_v46 = vsel %vm2608_vm6, %v2624_v35, %v2560_v13  ;;  %v2688_v43 = vsel %vm2656_vm7, %v2672_v0, %v2576_v25  ;;  %v2315_v59 = vmul.f32 %v2299_v45, %v6091_v52  ;;  %v2459_v11 = vmul.f32 %v2443_v60, %v6091_v52 }
 0x29b   : > { %2896 = vst [vmem:[%s3982_s5 + $0x240] sm:$0xff] %v2640_v46  ;;  %2912 = vst [vmem:[%s3982_s5 + $0x248] sm:$0xff] %v2688_v43  ;;  %v6162_v24 = vsub.f32 %v2146_v26, %v2162_v51  ;;  %v3358_v32 = vand.u32 2147483647, %v3357_v40  ;;  %v3359_v31 = vand.u32 2147483648, %v6118_v42  ;;  %vm2539_vm9 = vcmp.eq.s32.totalorder %v6127_v53, 3 }
 0x29c   : > { %v2331_v38 = vadd.f32 1000.0, %v2315_v59  ;;  %vm2603_vm10 = vcmp.eq.s32.totalorder %v6127_v53, 2  ;;  %v6169_v15 = vand.u32 3, %v3340_v16  ;;  %vm3355_vm11 = vcmp.lt.f32.partialorder %v3354_v54, 8388608.0  ;;  %vm2555_vm12 = vmor %vm2523_vm8, %vm2539_vm9 }
 0x29d   : > { %v2194_v52 = vmul.f32 %v6162_v24, %v6162_v24  ;;  %v3360_v41 = vor.u32 %v3359_v31, %v3358_v32  ;;  %v3372_v12 = vcvt.f32.s32 %v6155_v48  ;;  %v2475_v3 = vadd.f32 1000.0, %v2459_v11  ;;  %vm2619_vm13 = vmor %vm2603_vm10, %vm2539_vm9 }
 0x29e   : > { %v2347_v44 = vmul.f32 %v2331_v38, %v6076_v30  ;;  %v3370_v37 = vand.u32 2147483647, %v6155_v48  ;;  %v6177_v55 = vadd.f32 %v2072_v1, %v6080_v49  ;;  %v3375_v36 = vand.u32 2147483648, %v6155_v48  ;;  %vm2667_vm14 = vmor %vm2523_vm8, %vm2603_vm10 }
 0x29f   : > { %v2210_v50 = vmul.f32 0.0027183115, %v2194_v52  ;;  %v2354_v16 = vmul.f32 0.024390448, %v2194_v52  ;;  %v3361_v17 = vsel %vm3355_vm11, %v3360_v41, %v6118_v42  ;;  %v3373_v56 = vcvt.s32.f32 %v3372_v12 }
 0x2a0   : > { %v2571_v14 = vsel %vm2555_vm12, %v2475_v3, %v2347_v44  ;;  %v2587_v30 = vsel %vm2555_vm12, %v2347_v44, %v2475_v3  ;;  %v2132_v20 = vmul.f32 1.5703125, %v3361_v17  ;;  %v2164_v28 = vmul.f32 0.0004838268, %v3361_v17 }
 0x2a1   : > { %v2635_v49 = vsub.f32 0.0, %v2571_v14  ;;  %v2683_v23 = vsub.f32 0.0, %v2587_v30  ;;  %v2226_v18 = vadd.f32 -0.19839334, %v2210_v50  ;;  %v2370_v22 = vadd.f32 -1.3886764, %v2354_v16 }
 0x2a2   : > { %v2148_v6 = vsub.f32 %v6093_v7, %v2132_v20  ;;  %v3374_v39 = vand.u32 2147483647, %v3373_v56  ;;  %v6197_v19 = vmul.f32 0.63661975, %v6177_v55  ;;  %v2074_v9 = vmul.f32 %v6060_v5, %v2054_v58 }
 0x2a3   : > { %v2651_v47 = vsel %vm2619_vm13, %v2635_v49, %v2571_v14  ;;  %v2699_v33 = vsel %vm2667_vm14, %v2683_v23, %v2587_v30  ;;  %v2242_v8 = vmul.f32 %v2226_v18, %v2194_v52  ;;  %v2386_v34 = vmul.f32 %v2370_v22, %v2194_v52 }
 0x2a4   : > { %2907 = vst [vmem:[%s3982_s5 + $0x2f0] sm:$0xff] %v2651_v47  ;;  %2923 = vst [vmem:[%s3982_s5 + $0x2f8] sm:$0xff] %v2699_v33  ;;  %v6201_v57 = vsub.f32 %v2148_v6, %v2164_v28  ;;  %v3376_v27 = vor.u32 %v3375_v36, %v3374_v39  ;;  %vm3371_vm15 = vcmp.lt.f32.partialorder %v3370_v37, 8388608.0  ;;  %v3388_v7 = vcvt.f32.s32 %v6197_v19 }
 0x2a5   : > { %v2258_v53 = vadd.f32 8.333329, %v2242_v8  ;;  %v2402_v4 = vadd.f32 41.666622, %v2386_v34  ;;  %vm2514_vm0 = vcmp.eq.s32.totalorder %v6169_v15, 1  ;;  %vm2530_vm1 = vcmp.eq.s32.totalorder %v6169_v15, 3 }
 0x2a6   : > { %v2196_v29 = vmul.f32 %v6201_v57, %v6201_v57  ;;  %v3377_v62 = vsel %vm3371_vm15, %v3376_v27, %v6155_v48  ;;  %v3386_v10 = vand.u32 2147483647, %v6197_v19  ;;  %v3389_v35 = vcvt.s32.f32 %v3388_v7  ;;  %vm2546_vm4 = vmor %vm2514_vm0, %vm2530_vm1 }
 0x2a7   : > { %v2274_v1 = vmul.f32 %v2258_v53, %v2194_v52  ;;  %v2418_v13 = vmul.f32 %v2402_v4, %v2194_v52  ;;  %v2134_v25 = vmul.f32 1.5703125, %v3377_v62  ;;  %v3391_v0 = vand.u32 2147483648, %v6197_v19 }
 0x2a8   : > { %v2212_v5 = vmul.f32 0.0027183115, %v2196_v29  ;;  %v2356_v54 = vmul.f32 0.024390448, %v2196_v29  ;;  %v2166_v51 = vmul.f32 0.0004838268, %v3377_v62  ;;  %v1994_v40 = vmul.f32 %v5796_v61, %v4093_v21 }
 0x2a9   : > { %v2290_v45 = vadd.f32 -166.66667, %v2274_v1  ;;  %v2434_v60 = vadd.f32 -500.0, %v2418_v13  ;;  %v2150_v26 = vsub.f32 %v6130_v63, %v2134_v25  ;;  %v3390_v59 = vand.u32 2147483647, %v3389_v35 }
 0x2aa   : > { %v2228_v46 = vadd.f32 -0.19839334, %v2212_v5  ;;  %v2372_v43 = vadd.f32 -1.3886764, %v2356_v54  ;;  %vm2594_vm2 = vcmp.eq.s32.totalorder %v6169_v15, 2  ;;  %v6220_v3 = vadd.f32 %v2074_v9, %v1994_v40 }
 0x2ab   : > { %v2306_v11 = vmul.f32 %v2290_v45, %v2194_v52  ;;  %v2450_v32 = vmul.f32 %v2434_v60, %v2194_v52  ;;  %v6218_v31 = vsub.f32 %v2150_v26, %v2166_v51  ;;  %v3392_v44 = vor.u32 %v3391_v0, %v3390_v59  ;;  %vm2610_vm5 = vmor %vm2594_vm2, %vm2530_vm1 }
 0x2ac   : > { %v2244_v38 = vmul.f32 %v2228_v46, %v2196_v29  ;;  %v2388_v41 = vmul.f32 %v2372_v43, %v2196_v29  ;;  %v6224_v63 = vand.u32 3, %v3356_v2  ;;  %vm3387_vm3 = vcmp.lt.f32.partialorder %v3386_v10, 8388608.0  ;;  %vm2658_vm6 = vmor %vm2514_vm0, %vm2594_vm2 }
 0x2ad   : > { %v2322_v37 = vadd.f32 1000.0, %v2306_v11  ;;  %v6228_v21 = vmul.f32 %v6218_v31, %v6218_v31  ;;  %v2466_v61 = vadd.f32 1000.0, %v2450_v32  ;;  %v3393_v16 = vsel %vm3387_vm3, %v3392_v44, %v6197_v19 }
 0x2ae   : > { %v2260_v52 = vadd.f32 8.333329, %v2244_v38  ;;  %v2404_v50 = vadd.f32 41.666622, %v2388_v41  ;;  %v2136_v30 = vmul.f32 1.5703125, %v3393_v16  ;;  %v6240_v20 = vand.u32 3, %v3372_v12 }
 0x2af   : > { %v2338_v17 = vmul.f32 %v2322_v37, %v6162_v24  ;;  %v2214_v56 = vmul.f32 0.0027183115, %v6228_v21  ;;  %v2358_v14 = vmul.f32 0.024390448, %v6228_v21  ;;  %v6243_v36 = vmul.f32 0.63661975, %v6220_v3 }
 0x2b0   : > { %v2276_v42 = vmul.f32 %v2260_v52, %v2196_v29  ;;  %v2420_v2 = vmul.f32 %v2404_v50, %v2196_v29  ;;  %v2152_v39 = vsub.f32 %v6177_v55, %v2136_v30  ;;  %v2168_v47 = vmul.f32 0.0004838268, %v3393_v16 }
 0x2b1   : > { %v2562_v24 = vsel %vm2546_vm4, %v2466_v61, %v2338_v17  ;;  %v2578_v49 = vsel %vm2546_vm4, %v2338_v17, %v2466_v61  ;;  %v2230_v23 = vadd.f32 -0.19839334, %v2214_v56  ;;  %v2374_v18 = vadd.f32 -1.3886764, %v2358_v14 }
 0x2b2   : > { %v2626_v22 = vsub.f32 0.0, %v2562_v24  ;;  %v2674_v58 = vsub.f32 0.0, %v2578_v49  ;;  %v2292_v6 = vadd.f32 -166.66667, %v2276_v42  ;;  %v2436_v48 = vadd.f32 -500.0, %v2420_v2 }
 0x2b3   : > { %v2246_v12 = vmul.f32 %v2230_v23, %v6228_v21  ;;  %v2390_v28 = vmul.f32 %v2374_v18, %v6228_v21  ;;  %v6258_v4 = vsub.f32 %v2152_v39, %v2168_v47  ;;  %v3404_v15 = vcvt.f32.s32 %v6243_v36 }
 0x2b4   : > { %v2642_v33 = vsel %vm2610_vm5, %v2626_v22, %v2562_v24  ;;  %v2690_v8 = vsel %vm2658_vm6, %v2674_v58, %v2578_v49  ;;  %v2308_v34 = vmul.f32 %v2292_v6, %v2196_v29  ;;  %v2452_v27 = vmul.f32 %v2436_v48, %v2196_v29 }
 0x2b5   : > { %2898 = vst [vmem:[%s3982_s5 + $0x260] sm:$0xff] %v2642_v33  ;;  %2914 = vst [vmem:[%s3982_s5 + $0x268] sm:$0xff] %v2690_v8  ;;  %v2262_v9 = vadd.f32 8.333329, %v2246_v12  ;;  %v2406_v53 = vadd.f32 41.666622, %v2390_v28  ;;  %v2200_v29 = vmul.f32 %v6258_v4, %v6258_v4  ;;  %v3405_v13 = vcvt.s32.f32 %v3404_v15 }
 0x2b6   : > { %v2324_v62 = vadd.f32 1000.0, %v2308_v34  ;;  %vm2516_vm7 = vcmp.eq.s32.totalorder %v6224_v63, 1  ;;  %vm2532_vm8 = vcmp.eq.s32.totalorder %v6224_v63, 3  ;;  %vm2596_vm9 = vcmp.eq.s32.totalorder %v6224_v63, 2 }
 0x2b7   : > { %v2278_v55 = vmul.f32 %v2262_v9, %v6228_v21  ;;  %v2422_v1 = vmul.f32 %v2406_v53, %v6228_v21  ;;  %v2468_v10 = vadd.f32 1000.0, %v2452_v27  ;;  %vm2518_vm10 = vcmp.eq.s32.totalorder %v6240_v20, 1  ;;  %vm2548_vm11 = vmor %vm2516_vm7, %vm2532_vm8 }
 0x2b8   : > { %v2340_v25 = vmul.f32 %v2324_v62, %v6201_v57  ;;  %v3402_v5 = vand.u32 2147483647, %v6243_v36  ;;  %v2216_v0 = vmul.f32 0.0027183115, %v2200_v29  ;;  %v3407_v45 = vand.u32 2147483648, %v6243_v36  ;;  %vm2612_vm12 = vmor %vm2596_vm9, %vm2532_vm8 }
 0x2b9   : > { %v2294_v54 = vadd.f32 -166.66667, %v2278_v55  ;;  %v2438_v35 = vadd.f32 -500.0, %v2422_v1  ;;  %v2360_v51 = vmul.f32 0.024390448, %v2200_v29  ;;  %vm2660_vm13 = vmor %vm2516_vm7, %vm2596_vm9  ;;  %vm2534_vm14 = vcmp.eq.s32.totalorder %v6240_v20, 3 }
 0x2ba   : > { %v2564_v60 = vsel %vm2548_vm11, %v2468_v10, %v2340_v25  ;;  %v2580_v26 = vsel %vm2548_vm11, %v2340_v25, %v2468_v10  ;;  %v3406_v57 = vand.u32 2147483647, %v3405_v13  ;;  %v2232_v11 = vadd.f32 -0.19839334, %v2216_v0  ;;  %vm2550_vm1 = vmor %vm2518_vm10, %vm2534_vm14 }
 0x2bb   : > { %v2628_v40 = vsub.f32 0.0, %v2564_v60  ;;  %v2676_v46 = vsub.f32 0.0, %v2580_v26  ;;  %v2310_v43 = vmul.f32 %v2294_v54, %v6228_v21  ;;  %v2454_v59 = vmul.f32 %v2438_v35, %v6228_v21 }
 0x2bc   : > { %v2376_v32 = vadd.f32 -1.3886764, %v2360_v51  ;;  %v3408_v38 = vor.u32 %v3407_v45, %v3406_v57  ;;  %vm3403_vm15 = vcmp.lt.f32.partialorder %v3402_v5, 8388608.0  ;;  %v2248_v61 = vmul.f32 %v2232_v11, %v2200_v29 }
 0x2bd   : > { %v2644_v41 = vsel %vm2612_vm12, %v2628_v40, %v2564_v60  ;;  %v2692_v44 = vsel %vm2660_vm13, %v2676_v46, %v2580_v26  ;;  %v2326_v37 = vadd.f32 1000.0, %v2310_v43  ;;  %v2470_v16 = vadd.f32 1000.0, %v2454_v59 }
 0x2be   : > { %2900 = vst [vmem:[%s3982_s5 + $0x280] sm:$0xff] %v2644_v41  ;;  %2916 = vst [vmem:[%s3982_s5 + $0x288] sm:$0xff] %v2692_v44  ;;  %v2392_v52 = vmul.f32 %v2376_v32, %v2200_v29  ;;  %v3409_v21 = vsel %vm3403_vm15, %v3408_v38, %v6243_v36  ;;  %vm2598_vm0 = vcmp.eq.s32.totalorder %v6240_v20, 2  ;;  %v2264_v17 = vadd.f32 8.333329, %v2248_v61 }
 0x2bf   : > { %v2342_v50 = vmul.f32 %v2326_v37, %v6218_v31  ;;  %v2138_v63 = vmul.f32 1.5703125, %v3409_v21  ;;  %v2170_v2 = vmul.f32 0.0004838268, %v3409_v21  ;;  %vm2614_vm2 = vmor %vm2598_vm0, %vm2534_vm14  ;;  %v2504_v18 = vand.u32 3, %v3388_v7 }
 0x2c0   : > { %v2408_v56 = vadd.f32 41.666622, %v2392_v52  ;;  %v2280_v49 = vmul.f32 %v2264_v17, %v2200_v29  ;;  %vm2662_vm3 = vmor %vm2518_vm10, %vm2598_vm0  ;;  %v2506_v0 = vand.u32 3, %v3404_v15 }
 0x2c1   : > { %v2566_v14 = vsel %vm2550_vm1, %v2470_v16, %v2342_v50  ;;  %v2582_v30 = vsel %vm2550_vm1, %v2342_v50, %v2470_v16  ;;  %v2154_v42 = vsub.f32 %v6220_v3, %v2138_v63  ;;  %vm2520_vm4 = vcmp.eq.s32.totalorder %v2504_v18, 1 }
 0x2c2   : > { %v2630_v31 = vsub.f32 0.0, %v2566_v14  ;;  %v2678_v24 = vsub.f32 0.0, %v2582_v30  ;;  %v2424_v23 = vmul.f32 %v2408_v56, %v2200_v29  ;;  %v2296_v48 = vadd.f32 -166.66667, %v2280_v49 }
 0x2c3   : > { %v2186_v22 = vsub.f32 %v2154_v42, %v2170_v2  ;;  %vm2536_vm5 = vcmp.eq.s32.totalorder %v2504_v18, 3  ;;  %vm2600_vm6 = vcmp.eq.s32.totalorder %v2504_v18, 2  ;;  %vm2522_vm10 = vcmp.eq.s32.totalorder %v2506_v0, 1 }
 0x2c4   : > { %v2646_v58 = vsel %vm2614_vm2, %v2630_v31, %v2566_v14  ;;  %v2694_v6 = vsel %vm2662_vm3, %v2678_v24, %v2582_v30  ;;  %v2440_v12 = vadd.f32 -500.0, %v2424_v23  ;;  %v2312_v28 = vmul.f32 %v2296_v48, %v2200_v29  ;;  %vm2552_vm7 = vmor %vm2520_vm4, %vm2536_vm5 }
 0x2c5   : > { %2902 = vst [vmem:[%s3982_s5 + $0x2a0] sm:$0xff] %v2646_v58  ;;  %2918 = vst [vmem:[%s3982_s5 + $0x2a8] sm:$0xff] %v2694_v6  ;;  %v2202_v3 = vmul.f32 %v2186_v22, %v2186_v22  ;;  %vm2538_vm11 = vcmp.eq.s32.totalorder %v2506_v0, 3  ;;  %vm2602_vm12 = vcmp.eq.s32.totalorder %v2506_v0, 2 }
 0x2c6   : > { %v2456_v39 = vmul.f32 %v2440_v12, %v2200_v29  ;;  %v2328_v8 = vadd.f32 1000.0, %v2312_v28  ;;  %vm2616_vm8 = vmor %vm2600_vm6, %vm2536_vm5 }
 0x2c7   : > { %v2218_v47 = vmul.f32 0.0027183115, %v2202_v3  ;;  %v2362_v33 = vmul.f32 0.024390448, %v2202_v3  ;;  %vm2664_vm9 = vmor %vm2520_vm4, %vm2600_vm6 }
 0x2c8   : > { %v2344_v19 = vmul.f32 %v2328_v8, %v6258_v4  ;;  %v2472_v7 = vadd.f32 1000.0, %v2456_v39  ;;  %vm2554_vm13 = vmor %vm2522_vm10, %vm2538_vm11 }
 0x2c9   : > { %v2234_v20 = vadd.f32 -0.19839334, %v2218_v47  ;;  %v2378_v34 = vadd.f32 -1.3886764, %v2362_v33  ;;  %vm2618_vm14 = vmor %vm2602_vm12, %vm2538_vm11 }
 0x2ca   : > { %v2568_v53 = vsel %vm2552_vm7, %v2472_v7, %v2344_v19  ;;  %v2584_v62 = vsel %vm2552_vm7, %v2344_v19, %v2472_v7  ;;  %vm2666_vm15 = vmor %vm2522_vm10, %vm2602_vm12 }
 0x2cb   : > { %v2250_v27 = vmul.f32 %v2234_v20, %v2202_v3  ;;  %v2394_v9 = vmul.f32 %v2378_v34, %v2202_v3  ;;  %v2632_v55 = vsub.f32 0.0, %v2568_v53  ;;  %v2680_v1 = vsub.f32 0.0, %v2584_v62 }
 0x2cd   : > { %v2266_v29 = vadd.f32 8.333329, %v2250_v27  ;;  %v2410_v13 = vadd.f32 41.666622, %v2394_v9  ;;  %v2648_v25 = vsel %vm2616_vm8, %v2632_v55, %v2568_v53  ;;  %v2696_v10 = vsel %vm2664_vm9, %v2680_v1, %v2584_v62 }
 0x2ce   : > { %2904 = vst [vmem:[%s3982_s5 + $0x2c0] sm:$0xff] %v2648_v25  ;;  %2920 = vst [vmem:[%s3982_s5 + $0x2c8] sm:$0xff] %v2696_v10 }
 0x2cf   : > { %v2282_v4 = vmul.f32 %v2266_v29, %v2202_v3  ;;  %v2426_v5 = vmul.f32 %v2410_v13, %v2202_v3 }
 0x2d1   : > { %v2298_v54 = vadd.f32 -166.66667, %v2282_v4  ;;  %v2442_v35 = vadd.f32 -500.0, %v2426_v5 }
 0x2d3   : > { %v2314_v45 = vmul.f32 %v2298_v54, %v2202_v3  ;;  %v2458_v60 = vmul.f32 %v2442_v35, %v2202_v3 }
 0x2d5   : > { %v2330_v26 = vadd.f32 1000.0, %v2314_v45  ;;  %v2474_v57 = vadd.f32 1000.0, %v2458_v60 }
 0x2d7   : > { %v2346_v51 = vmul.f32 %v2330_v26, %v2186_v22 }
 0x2d9   : > { %v2570_v40 = vsel %vm2554_vm13, %v2474_v57, %v2346_v51  ;;  %v2586_v46 = vsel %vm2554_vm13, %v2346_v51, %v2474_v57  ;;  %2742 = sbr.rel (!%p3643_p5) target bundleno = 761 (0x2f9), region = 32 }
 0x2da   : > { %v2634_v43 = vsub.f32 0.0, %v2570_v40  ;;  %v2682_v59 = vsub.f32 0.0, %v2586_v46 }
 0x2dc   : > { %v2650_v36 = vsel %vm2618_vm14, %v2634_v43, %v2570_v40  ;;  %v2698_v15 = vsel %vm2666_vm15, %v2682_v59, %v2586_v46 }
 0x2dd   : > { %2906 = vst [vmem:[%s3982_s5 + $0x2e0] sm:$0xff] %v2650_v36  ;;  %2922 = vst [vmem:[%s3982_s5 + $0x2e8] sm:$0xff] %v2698_v15 }
 0x2de   : > { %s6398_s4 = smov (!%p2745_p11, %s2744_s4), 48 }
 0x2df   : > { %s6323_s6 = sshll.u32 %s6398_s4, 8 }
 0x2e0   : > { %s2750_s7 = ssub.s32 12288, %s6323_s6 }
 0x2e1   : > { %2751 = vsyncadd %s6318_s30, %s2750_s7  ;;  %p2926_p12 = scmp.ne.s32.totalorder %s6323_s6, 0  ;;  %s2936_s3 = smul.u32 12288, %s3626_s13 }
 0x2e2   : > { %s2757_s8 = sshll.u32 %s3982_s5, 4  ;;  %s3587_s17 = smov [#allocation2]   ;;  %s6335_s8 = int_to_ptr.vmem [resolvable:$true] %s2757_s8 }
 0x2e3   : > { %s6333_s16 = scalar_lea.hbm %s6380_s2, %s2936_s3  ;;  %s3523_s21 = scalar_lea.vmem %s6335_s8, %s6323_s6 }
 0x2e4   : > { %p3524_p13 = scmp.ne.s32.totalorder %s6335_s8, %s3523_s21  ;;  %s3527_s22 = sshll.u32 %s3587_s17, 4  ;;  %s3528_s22 = int_to_ptr.vmem [resolvable:$false] %s3527_s22 }
 0x2e5   : > { %s3529_s13 = scalar_lea.vmem %s3528_s22, 24576  ;;  %p3530_p2 = scmp.lt.s32.totalorder %s6335_s8, %s3528_s22 }
 0x2e6   : > { %p3525_p0 = pnand %p3524_p13, %p2926_p12  ;;  %p3531_p3 = scmp.lt.s32.totalorder %s3529_s13, %s3523_s21 }
 0x2e8   : > { %p3526_p1 = pneg %p3525_p0  ;;  %p3532_p4 = por %p3531_p3, %p3530_p2 }
 0x2ea   : > { %p3533_p5 = pnand %p3532_p4, %p3526_p1 }
 0x2ec   : > { %3536 = shalt.err (!%p3533_p5)
}
 0x2ed   : > { %s3537_s5 = scalar_lea.hbm %s6333_s16, %s6323_s6  ;;  %s3541_s25 = scalar_lea.hbm %s6380_s2, 19200 }
 0x2ee   : > { %p3538_p7 = scmp.ne.s32.totalorder %s6333_s16, %s3537_s5  ;;  %p3542_p10 = scmp.lt.s32.totalorder %s6333_s16, %s6380_s2 }
 0x2ef   : > { %p3543_p11 = scmp.lt.s32.totalorder %s3541_s25, %s3537_s5 }
 0x2f0   : > { %p3539_p8 = pnand %p3538_p7, %p2926_p12 }
 0x2f1   : > { %p3544_p13 = por %p3543_p11, %p3542_p10 }
 0x2f2   : > { %p3540_p9 = pneg %p3539_p8 }
 0x2f4   : > { %p3545_p0 = pnand %p3544_p13, %p3540_p9 }
 0x2f6   : > { %3548 = shalt.err (!%p3545_p0)
}
 0x2f7   : > { %s3588_s28 = smov 256   ;;  %s3589_s29 = smov 16  }
 0x2f8   : > { %2763 = dma.vmem_to_hbm [thread:$0]  (%p2926_p12), %s6335_s8, %s6323_s6, %s6333_s16, %s6318_s30, %s3588_s28, %s3588_s28, %s3589_s29  }
 0x2f9 PF: > { %p3471_p1 = scmp.ge.s32.totalorder %s3583_s12, 2  ;;  %s2772_s4 = sand.u32 1, %s3571_s9  }
 0x2fa   : > { %s2773_s7 = scalar_lea.sflag [#allocation3], %s2772_s4 }
 0x2fb   : > { %p3468_p2 = pnand %p3471_p1, %p3647_p6 }
 0x2fd   : > { %p3469_p3 = pneg %p3468_p2 }
 0x2ff   : > { %3566 = dma.done.wait (%p3469_p3), %s2773_s7, 12288  }
 0x300   : > { %3568 = vsyncadd (%p3469_p3), %s2773_s7, 4294955008  ;;  %p12_p4 = scmp.ge.s32.totalorder %s3630_s15, 4   ;;  %s6393_s9 = smov %s3575_s10 }
 0x301   : > { %s6394_s10 = smov %s3579_s11  ;;  %s6395_s11 = smov %s3641_s18 }
 0x302   : > { %s6396_s12 = smov %s3630_s15  ;;  %14 = sbr.rel (!%p12_p4) target bundleno = 3 (0x3), region = 68 }
 0x307   :  { %2778 = vsyncpa [#allocation3], 1 }
 0x308   :  { %2780 = vsyncpa [#allocation3 + $0x1], 1 }

</bundles_post_ra>
